<compile_context>
chip_gen: v6e
topology: v6e:2x2x1
jax: 0.10.0
libtpu: 0.0.40
codegen_flags: <defaults>
</compile_context>

<pallas_src>
import functools

import numpy as np
import jax
import jax.numpy as jnp
from jax.experimental import pallas as pl
from jax.experimental.pallas import tpu as pltpu

LN_EPS = 1e-12      # funasr LayerNorm eps
BN_EPS = 1e-5       # torch BatchNorm1d eps
NEG_MIN = float(jnp.finfo(jnp.float32).min)

# Parameter order for the fused kernel (must match kernel unpacking below).
PARAM_ORDER = [
    "ln_ff_mac_g", "ln_ff_mac_b", "ff_mac_w1", "ff_mac_b1", "ff_mac_w2", "ff_mac_b2",
    "ln_mha_g", "ln_mha_b", "wq", "bq", "wk", "bk", "wv", "bv", "wo", "bo",
    "ln_conv_g", "ln_conv_b", "conv_wa", "conv_ba", "conv_wg", "conv_bg",
    "conv_wdw", "conv_bdw", "bn_scale", "bn_shift", "conv_wp2", "conv_bp2",
    "ln_ff_g", "ln_ff_b", "ff_w1", "ff_b1", "ff_w2", "ff_b2",
    "ln_final_g", "ln_final_b",
]

# Weights that feed the MXU — these (and only these) are pre-cast to the
# compute dtype on the host so the bf16 path halves weight DMA bytes.
MATMUL_WEIGHTS = frozenset([
    "ff_mac_w1", "ff_mac_w2", "ff_w1", "ff_w2",
    "wq", "wk", "wv", "wo",
    "conv_wa", "conv_wg", "conv_wp2",
])


def _layer_norm(x, gamma, beta):
    mu = jnp.mean(x, axis=-1, keepdims=True)
    var = jnp.mean(jnp.square(x - mu), axis=-1, keepdims=True)
    return (x - mu) * jax.lax.rsqrt(var + LN_EPS) * gamma + beta


# ----------------------------- fused Pallas kernel ---------------------------

def _encoder_layer_kernel(x_ref, mask_ref, *refs, num_heads, compute_dtype):
    """Whole EncoderLayer for `Bb` batch rows (grid axis = batch tiles)."""
    (ln_ffm_g, ln_ffm_b, ffm_w1, ffm_b1, ffm_w2, ffm_b2,
     ln_mha_g, ln_mha_b, wq_ref, bq_ref, wk_ref, bk_ref, wv_ref, bv_ref,
     wo_ref, bo_ref,
     ln_conv_g, ln_conv_b, wa_ref, ba_ref, wg_ref, bg_ref,
     wdw_ref, bdw_ref, bns_ref, bnb_ref, wp2_ref, bp2_ref,
     ln_ff_g, ln_ff_b, ff_w1_ref, ff_b1_ref, ff_w2_ref, ff_b2_ref,
     ln_fin_g, ln_fin_b,
     o_ref, ctx_ref, upad_ref) = refs

    Bb, T, D = x_ref.shape
    M = Bb * T
    # Fold batch rows into the matmul M dimension (lane/sublane layout is
    # preserved because T is a multiple of the 8-row sublane tile).
    x = x_ref[...].reshape(M, D)                     # (M, D) f32

    def mxu(a, b):
        # MXU matmul, f32 accumulation.  Weights arrive pre-cast from the host;
        # the casts below are trace-time no-ops when dtypes already match.
        a = a if a.dtype == compute_dtype else a.astype(compute_dtype)
        b = b if b.dtype == compute_dtype else b.astype(compute_dtype)
        return jnp.dot(a, b, preferred_element_type=jnp.float32)

    def ffn(z, g_r, b_r, w1_r, b1_r, w2_r, b2_r):
        y = _layer_norm(z, g_r[...], b_r[...])
        h = jnp.maximum(mxu(y, w1_r[...]) + b1_r[...], 0.0)     # ReLU
        return mxu(h, w2_r[...]) + b2_r[...]

    # ---- 1) macaron feed-forward half-step: x + 0.5 * FFN(LN(x)) -----------
    x = x + 0.5 * ffn(x, ln_ffm_g, ln_ffm_b, ffm_w1, ffm_b1, ffm_w2, ffm_b2)

    # ---- 2) multi-head self-attention: x + MHA(LN(x)) -----------------------
    y = _layer_norm(x, ln_mha_g[...], ln_mha_b[...])
    q = mxu(y, wq_ref[...]) + bq_ref[...]            # fused full-width projections
    k = mxu(y, wk_ref[...]) + bk_ref[...]
    v = mxu(y, wv_ref[...]) + bv_ref[...]
    valid_all = mask_ref[...] > 0.5                  # (Bb, 1, T) key-padding mask
    dk = D // num_heads
    inv_sqrt_dk = 1.0 / float(dk) ** 0.5
    # NOTE: the score matmul contracts over dk; for best v6e/v7x MXU
    # utilization pick head counts such that dk >= 128 (model-config choice).
    # TODO(synk): for long T, make this stage flash-style (stream K/V tiles
    # with online softmax) so the (T,T) scores never live whole in VMEM.
    for r in range(Bb):                              # attention never mixes batch rows
        valid = valid_all[r]                         # (1, T)
        q_r = q[r * T:(r + 1) * T]
        k_r = k[r * T:(r + 1) * T]
        v_r = v[r * T:(r + 1) * T]
        for h in range(num_heads):                   # only the (T,T) part is per-head
            sl = slice(h * dk, (h + 1) * dk)
            s = mxu(q_r[:, sl], k_r[:, sl].T) * inv_sqrt_dk      # (T, T) f32
            s = jnp.where(valid, s, NEG_MIN)                     # masked_fill(min)
            s = s - jnp.max(s, axis=-1, keepdims=True)
            # TODO(synk): if EUP-bound at long T on v6e/v7x, compute exp in
            # bf16 (requires a bf16-safe large-negative constant, not f32 min).
            e = jnp.exp(s)
            denom = jnp.sum(e, axis=-1, keepdims=True)
            if compute_dtype == jnp.float32:
                p = e / denom                                    # exact on f32 path
            else:
                p = e * pl.reciprocal(denom, approx=True)        # EUP slot on bf16 path
            p = jnp.where(valid, p, 0.0)                         # masked_fill(0)
            # Write this head's context straight into the (M, D) scratch at a
            # static lane offset — no concatenate, only one head live at a time.
            ctx_ref[r * T:(r + 1) * T, sl] = mxu(p, v_r[:, sl])
    x = x + mxu(ctx_ref[...], wo_ref[...]) + bo_ref[...]         # one output matmul

    # ---- 3) convolution module: x + Conv(LN(x)) -----------------------------
    y = _layer_norm(x, ln_conv_g[...], ln_conv_b[...])
    a = mxu(y, wa_ref[...]) + ba_ref[...]            # pointwise conv, GLU value half
    g = mxu(y, wg_ref[...]) + bg_ref[...]            # pointwise conv, GLU gate half
    u = a * jax.nn.sigmoid(g)                        # GLU
    wdw = wdw_ref[...]                               # (K, 1, D), hoisted load
    K = wdw.shape[0]
    pad = (K - 1) // 2
    # Depthwise conv via a zero-padded scratch and K static sublane slices.
    # Each batch row has its own padded strip, so windows never cross rows.
    if pad > 0:
        zeros_pad = jnp.zeros((Bb, pad, D), jnp.float32)
        upad_ref[:, 0:pad, :] = zeros_pad
        upad_ref[:, pad + T:pad + T + pad, :] = zeros_pad
    upad_ref[:, pad:pad + T, :] = u.reshape(Bb, T, D)
    acc = bdw_ref[...]                               # (1, D) bias, broadcasts on add
    for kk in range(K):
        win = upad_ref[:, kk:kk + T, :].reshape(M, D)
        acc = acc + win * wdw[kk]
    acc = acc * bns_ref[...] + bnb_ref[...]          # folded BatchNorm (eval)
    acc = acc * jax.nn.sigmoid(acc)                  # Swish
    x = x + mxu(acc, wp2_ref[...]) + bp2_ref[...]    # pointwise conv 2

    # ---- 4) feed-forward half-step: x + 0.5 * FFN(LN(x)) --------------------
    x = x + 0.5 * ffn(x, ln_ff_g, ln_ff_b, ff_w1_ref, ff_b1_ref, ff_w2_ref, ff_b2_ref)

    # ---- 5) final LayerNorm --------------------------------------------------
    o_ref[...] = _layer_norm(x, ln_fin_g[...], ln_fin_b[...]).reshape(Bb, T, D).astype(o_ref.dtype)


# ------------------------------ call wrapper ---------------------------------

def _vmem_limit_bytes():
    """Generation-aware VMEM budget: ~96 MiB on v5e/v6e, ~48 MiB on v7x."""
    try:
        cap = int(pltpu.get_tpu_info().vmem_capacity_bytes)
    except Exception:
        cap = 64 * 1024 * 1024                       # conservative fallback
    return min(cap * 3 // 4, 100 * 1024 * 1024)


def encoder_layer_forward(params, x, mask, *, compute_dtype=jnp.float32,
                          rows_per_step=1, donate_input=False):
    """x: (B, T, D) float32; mask: (B, 1, T) float32 {0,1}. Returns (x, mask)."""
    B, T, D = x.shape
    compute_dtype = np.dtype(compute_dtype)
    if B % rows_per_step != 0:
        raise ValueError("rows_per_step must divide the batch size")
    if rows_per_step > 1 and T % 8 != 0:
        rows_per_step = 1        # keep the (Bb,T,D)->(Bb*T,D) reshape layout-trivial
    grid_b = B // rows_per_step

    K = params["conv_wdw"].shape[0]
    pad = (K - 1) // 2

    # Host-side cast of MXU weights to the compute dtype (halves weight DMA
    # bytes and VMEM residency on the bf16 path).  Biases / LN / BN / depthwise
    # weights stay f32 — they only touch f32 VPU math.
    param_list = []
    for name in PARAM_ORDER:
        arr = params[name]
        if name in MATMUL_WEIGHTS and arr.dtype != compute_dtype:
            arr = arr.astype(compute_dtype)
        param_list.append(arr)

    kernel = functools.partial(
        _encoder_layer_kernel,
        num_heads=params["num_heads"],
        compute_dtype=compute_dtype,
    )

    scratch_shapes = [
        pltpu.VMEM((rows_per_step * T, D), jnp.float32),            # head-context assembly
        pltpu.VMEM((rows_per_step, T + 2 * pad, D), jnp.float32),   # padded depthwise input
    ]

    def run(single_buffer_weights):
        def weight_spec(arr):
            zeros = (0,) * arr.ndim
            idx = lambda b, _z=zeros: _z                            # constant block
            if single_buffer_weights:
                # Constant index_map => double-buffering buys nothing; single-buffer
                # to halve weight VMEM (matters on v7x's 64 MiB).
                return pl.BlockSpec(arr.shape, idx, pipeline_mode=pl.Buffered(1))
            return pl.BlockSpec(arr.shape, idx)

        in_specs = [
            pl.BlockSpec((rows_per_step, T, D), lambda b: (b, 0, 0)),   # activations
            pl.BlockSpec((rows_per_step, 1, T), lambda b: (b, 0, 0)),   # key-padding mask
        ] + [weight_spec(a) for a in param_list]

        return pl.pallas_call(
            kernel,
            out_shape=jax.ShapeDtypeStruct((B, T, D), x.dtype),
            grid=(grid_b,),
            in_specs=in_specs,
            out_specs=pl.BlockSpec((rows_per_step, T, D), lambda b: (b, 0, 0)),
            scratch_shapes=scratch_shapes,
            input_output_aliases={0: 0} if donate_input else {},
            compiler_params=pltpu.CompilerParams(
                dimension_semantics=("parallel",),       # shard batch tiles across TCs
                vmem_limit_bytes=_vmem_limit_bytes(),
            ),
        )(x, mask, *param_list)

    try:
        out = run(single_buffer_weights=True)
    except Exception:
        # pipeline_mode=pl.Buffered(1) not supported by this jax build / backend:
        # fall back to default (double-buffered) weight specs.
        out = run(single_buffer_weights=False)

    # TODO(synk): dropout / stochastic-depth / cache / pos_emb branches are
    # no-ops in eval mode with cache=None and are intentionally not emitted.
    # TODO(synk): for very long T / large `units`, add a time-tile grid axis
    # (flash-style attention + K-1 halo for the depthwise conv) so live
    # activations stay bounded; also gives v7x's second TensorCore work when
    # B == 1.
    return out, mask


# ------------------------------ pure-JAX reference ---------------------------

def reference_forward(params, x, mask):
    p = params
    H = p["num_heads"]
    hp = jax.lax.Precision.HIGHEST

    def ln(z, g, b):
        mu = jnp.mean(z, -1, keepdims=True)
        var = jnp.mean((z - mu) ** 2, -1, keepdims=True)
        return (z - mu) / jnp.sqrt(var + LN_EPS) * g + b

    def mm(a, b):
        return jnp.dot(a, b, precision=hp)

    B, T, D = x.shape
    dk = D // H

    # macaron FFN
    y = ln(x, p["ln_ff_mac_g"], p["ln_ff_mac_b"])
    y = jnp.maximum(mm(y, p["ff_mac_w1"]) + p["ff_mac_b1"], 0.0)
    x = x + 0.5 * (mm(y, p["ff_mac_w2"]) + p["ff_mac_b2"])

    # MHA
    y = ln(x, p["ln_mha_g"], p["ln_mha_b"])
    q = (mm(y, p["wq"]) + p["bq"]).reshape(B, T, H, dk)
    k = (mm(y, p["wk"]) + p["bk"]).reshape(B, T, H, dk)
    v = (mm(y, p["wv"]) + p["bv"]).reshape(B, T, H, dk)
    s = jnp.einsum("bthd,bshd->bhts", q, k, precision=hp) / jnp.sqrt(float(dk))
    valid = (mask > 0.5)[:, :, None, :]            # (B,1,1,T)
    s = jnp.where(valid, s, NEG_MIN)
    attn = jax.nn.softmax(s, axis=-1)
    attn = jnp.where(valid, attn, 0.0)
    ctx = jnp.einsum("bhts,bshd->bthd", attn, v, precision=hp).reshape(B, T, D)
    x = x + mm(ctx, p["wo"]) + p["bo"]

    # conv module
    y = ln(x, p["ln_conv_g"], p["ln_conv_b"])
    a = mm(y, p["conv_wa"]) + p["conv_ba"]
    g = mm(y, p["conv_wg"]) + p["conv_bg"]
    u = a * jax.nn.sigmoid(g)
    K = p["conv_wdw"].shape[0]
    pad = (K - 1) // 2
    u_pad = jnp.pad(u, ((0, 0), (pad, pad), (0, 0)))
    dw = p["conv_bdw"]
    for kk in range(K):
        dw = dw + u_pad[:, kk:kk + T, :] * p["conv_wdw"][kk]
    dw = dw * p["bn_scale"] + p["bn_shift"]
    dw = dw * jax.nn.sigmoid(dw)
    x = x + mm(dw, p["conv_wp2"]) + p["conv_bp2"]

    # FFN
    y = ln(x, p["ln_ff_g"], p["ln_ff_b"])
    y = jnp.maximum(mm(y, p["ff_w1"]) + p["ff_b1"], 0.0)
    x = x + 0.5 * (mm(y, p["ff_w2"]) + p["ff_b2"])

    x = ln(x, p["ln_final_g"], p["ln_final_b"])
    return x, mask


# ------------------------------ parameter setup -------------------------------

def make_params(key, D, units, H, K):
    keys = iter(jax.random.split(key, 40))

    def w(shape, scale=0.1):
        return (scale * jax.random.normal(next(keys), shape)).astype(jnp.float32)

    p = dict(num_heads=H)
    for name in ["ln_ff_mac", "ln_mha", "ln_conv", "ln_ff", "ln_final"]:
        p[name + "_g"] = 1.0 + w((1, D), 0.05)
        p[name + "_b"] = w((1, D), 0.05)
    for pre in ["ff_mac", "ff"]:
        p[pre + "_w1"] = w((D, units))
        p[pre + "_b1"] = w((1, units))
        p[pre + "_w2"] = w((units, D))
        p[pre + "_b2"] = w((1, D))
    # Fused MHA projections: (D, D) weights, head h owns columns/rows [h*dk,(h+1)*dk).
    p["wq"], p["bq"] = w((D, D)), w((1, D))
    p["wk"], p["bk"] = w((D, D)), w((1, D))
    p["wv"], p["bv"] = w((D, D)), w((1, D))
    p["wo"], p["bo"] = w((D, D)), w((1, D))
    # Conv module: pointwise1 split into GLU halves (value / gate), depthwise (K,1,C)
    p["conv_wa"], p["conv_ba"] = w((D, D)), w((1, D))
    p["conv_wg"], p["conv_bg"] = w((D, D)), w((1, D))
    p["conv_wdw"], p["conv_bdw"] = w((K, 1, D)), w((1, D))
    p["conv_wp2"], p["conv_bp2"] = w((D, D)), w((1, D))
    # BatchNorm1d (eval), folded into per-channel scale/shift
    gamma = 1.0 + w((1, D), 0.05)
    beta = w((1, D), 0.05)
    mean = w((1, D), 0.05)
    var = 1.0 + jnp.abs(w((1, D), 0.05))
    p["bn_scale"] = gamma / jnp.sqrt(var + BN_EPS)
    p["bn_shift"] = beta - mean * p["bn_scale"]
    return p


if __name__ == "__main__":
    B, T, D, UNITS, H, K = 2, 8, 32, 64, 4, 7
    key = jax.random.PRNGKey(0)
    kx, kp = jax.random.split(key)
    x = jax.random.normal(kx, (B, T, D), dtype=jnp.float32)
    lengths = jnp.array([T, T - 3], dtype=jnp.int32)
    mask = (jnp.arange(T)[None, None, :] < lengths[:, None, None]).astype(jnp.float32)  # (B,1,T)
    params = make_params(kp, D, UNITS, H, K)

    ref, _ = reference_forward(params, x, mask)

    # f32 MXU path, one batch row per grid step.
    out1, out_mask = encoder_layer_forward(params, x, mask,
                                           compute_dtype=jnp.float32, rows_per_step=1)
    out1 = jax.block_until_ready(out1)
    assert out1.shape == (B, T, D) and out1.dtype == jnp.float32
    err1 = float(jnp.max(jnp.abs(out1 - ref)))
    if err1 >= 1e-2:
        raise AssertionError(f"f32 (rows_per_step=1) mismatch vs reference: max abs err {err1}")

    # f32 MXU path, both batch rows folded into the matmul M dimension.
    out2, _ = encoder_layer_forward(params, x, mask,
                                    compute_dtype=jnp.float32, rows_per_step=2)
    out2 = jax.block_until_ready(out2)
    err2 = float(jnp.max(jnp.abs(out2 - ref)))
    if err2 >= 1e-2:
        raise AssertionError(f"f32 (rows_per_step=2) mismatch vs reference: max abs err {err2}")

    # bf16 MXU path (weights pre-cast on host, f32 accumulation) — looser tolerance.
    out3, _ = encoder_layer_forward(params, x, mask,
                                    compute_dtype=jnp.bfloat16, rows_per_step=2)
    out3 = jax.block_until_ready(out3)
    err3 = float(jnp.max(jnp.abs(out3 - ref)))
    if err3 >= 1e-1:
        raise AssertionError(f"bf16 mismatch vs reference: max abs err {err3}")

    print("KERNEL_OK")
</pallas_src>

<mosaic_0001>
module attributes {stable_mosaic.version = 11 : i64} {
  func.func @_encoder_layer_kernel(%arg0: i32, %arg1: memref<1x8x32xf32, #tpu.memory_space<vmem>>, %arg2: memref<1x1x8xf32, #tpu.memory_space<vmem>>, %arg3: memref<1x32xf32, #tpu.memory_space<vmem>>, %arg4: memref<1x32xf32, #tpu.memory_space<vmem>>, %arg5: memref<32x64xf32, #tpu.memory_space<vmem>>, %arg6: memref<1x64xf32, #tpu.memory_space<vmem>>, %arg7: memref<64x32xf32, #tpu.memory_space<vmem>>, %arg8: memref<1x32xf32, #tpu.memory_space<vmem>>, %arg9: memref<1x32xf32, #tpu.memory_space<vmem>>, %arg10: memref<1x32xf32, #tpu.memory_space<vmem>>, %arg11: memref<32x32xf32, #tpu.memory_space<vmem>>, %arg12: memref<1x32xf32, #tpu.memory_space<vmem>>, %arg13: memref<32x32xf32, #tpu.memory_space<vmem>>, %arg14: memref<1x32xf32, #tpu.memory_space<vmem>>, %arg15: memref<32x32xf32, #tpu.memory_space<vmem>>, %arg16: memref<1x32xf32, #tpu.memory_space<vmem>>, %arg17: memref<32x32xf32, #tpu.memory_space<vmem>>, %arg18: memref<1x32xf32, #tpu.memory_space<vmem>>, %arg19: memref<1x32xf32, #tpu.memory_space<vmem>>, %arg20: memref<1x32xf32, #tpu.memory_space<vmem>>, %arg21: memref<32x32xf32, #tpu.memory_space<vmem>>, %arg22: memref<1x32xf32, #tpu.memory_space<vmem>>, %arg23: memref<32x32xf32, #tpu.memory_space<vmem>>, %arg24: memref<1x32xf32, #tpu.memory_space<vmem>>, %arg25: memref<7x1x32xf32, #tpu.memory_space<vmem>>, %arg26: memref<1x32xf32, #tpu.memory_space<vmem>>, %arg27: memref<1x32xf32, #tpu.memory_space<vmem>>, %arg28: memref<1x32xf32, #tpu.memory_space<vmem>>, %arg29: memref<32x32xf32, #tpu.memory_space<vmem>>, %arg30: memref<1x32xf32, #tpu.memory_space<vmem>>, %arg31: memref<1x32xf32, #tpu.memory_space<vmem>>, %arg32: memref<1x32xf32, #tpu.memory_space<vmem>>, %arg33: memref<32x64xf32, #tpu.memory_space<vmem>>, %arg34: memref<1x64xf32, #tpu.memory_space<vmem>>, %arg35: memref<64x32xf32, #tpu.memory_space<vmem>>, %arg36: memref<1x32xf32, #tpu.memory_space<vmem>>, %arg37: memref<1x32xf32, #tpu.memory_space<vmem>>, %arg38: memref<1x32xf32, #tpu.memory_space<vmem>>, %arg39: memref<1x8x32xf32, #tpu.memory_space<vmem>>, %arg40: memref<8x32xf32, #tpu.memory_space<vmem>>, %arg41: memref<1x14x32xf32, #tpu.memory_space<vmem>>) attributes {dimension_semantics = [#tpu.dimension_semantics<parallel>], iteration_bounds = array<i64: 2>, scalar_prefetch = 0 : i64, scratch_operands = 2 : i64, tpu.core_type = #tpu.core_type<tc>, window_params = [{transform_indices = @transform_0, window_bounds = array<i64: 1, 8, 32>}, {transform_indices = @transform_1, window_bounds = array<i64: 1, 1, 8>}, {pipeline_mode = #tpu.pipeline_mode<synchronous>, transform_indices = @transform_2, window_bounds = array<i64: 1, 32>}, {pipeline_mode = #tpu.pipeline_mode<synchronous>, transform_indices = @transform_3, window_bounds = array<i64: 1, 32>}, {pipeline_mode = #tpu.pipeline_mode<synchronous>, transform_indices = @transform_4, window_bounds = array<i64: 32, 64>}, {pipeline_mode = #tpu.pipeline_mode<synchronous>, transform_indices = @transform_5, window_bounds = array<i64: 1, 64>}, {pipeline_mode = #tpu.pipeline_mode<synchronous>, transform_indices = @transform_6, window_bounds = array<i64: 64, 32>}, {pipeline_mode = #tpu.pipeline_mode<synchronous>, transform_indices = @transform_7, window_bounds = array<i64: 1, 32>}, {pipeline_mode = #tpu.pipeline_mode<synchronous>, transform_indices = @transform_8, window_bounds = array<i64: 1, 32>}, {pipeline_mode = #tpu.pipeline_mode<synchronous>, transform_indices = @transform_9, window_bounds = array<i64: 1, 32>}, {pipeline_mode = #tpu.pipeline_mode<synchronous>, transform_indices = @transform_10, window_bounds = array<i64: 32, 32>}, {pipeline_mode = #tpu.pipeline_mode<synchronous>, transform_indices = @transform_11, window_bounds = array<i64: 1, 32>}, {pipeline_mode = #tpu.pipeline_mode<synchronous>, transform_indices = @transform_12, window_bounds = array<i64: 32, 32>}, {pipeline_mode = #tpu.pipeline_mode<synchronous>, transform_indices = @transform_13, window_bounds = array<i64: 1, 32>}, {pipeline_mode = #tpu.pipeline_mode<synchronous>, transform_indices = @transform_14, window_bounds = array<i64: 32, 32>}, {pipeline_mode = #tpu.pipeline_mode<synchronous>, transform_indices = @transform_15, window_bounds = array<i64: 1, 32>}, {pipeline_mode = #tpu.pipeline_mode<synchronous>, transform_indices = @transform_16, window_bounds = array<i64: 32, 32>}, {pipeline_mode = #tpu.pipeline_mode<synchronous>, transform_indices = @transform_17, window_bounds = array<i64: 1, 32>}, {pipeline_mode = #tpu.pipeline_mode<synchronous>, transform_indices = @transform_18, window_bounds = array<i64: 1, 32>}, {pipeline_mode = #tpu.pipeline_mode<synchronous>, transform_indices = @transform_19, window_bounds = array<i64: 1, 32>}, {pipeline_mode = #tpu.pipeline_mode<synchronous>, transform_indices = @transform_20, window_bounds = array<i64: 32, 32>}, {pipeline_mode = #tpu.pipeline_mode<synchronous>, transform_indices = @transform_21, window_bounds = array<i64: 1, 32>}, {pipeline_mode = #tpu.pipeline_mode<synchronous>, transform_indices = @transform_22, window_bounds = array<i64: 32, 32>}, {pipeline_mode = #tpu.pipeline_mode<synchronous>, transform_indices = @transform_23, window_bounds = array<i64: 1, 32>}, {pipeline_mode = #tpu.pipeline_mode<synchronous>, transform_indices = @transform_24, window_bounds = array<i64: 7, 1, 32>}, {pipeline_mode = #tpu.pipeline_mode<synchronous>, transform_indices = @transform_25, window_bounds = array<i64: 1, 32>}, {pipeline_mode = #tpu.pipeline_mode<synchronous>, transform_indices = @transform_26, window_bounds = array<i64: 1, 32>}, {pipeline_mode = #tpu.pipeline_mode<synchronous>, transform_indices = @transform_27, window_bounds = array<i64: 1, 32>}, {pipeline_mode = #tpu.pipeline_mode<synchronous>, transform_indices = @transform_28, window_bounds = array<i64: 32, 32>}, {pipeline_mode = #tpu.pipeline_mode<synchronous>, transform_indices = @transform_29, window_bounds = array<i64: 1, 32>}, {pipeline_mode = #tpu.pipeline_mode<synchronous>, transform_indices = @transform_30, window_bounds = array<i64: 1, 32>}, {pipeline_mode = #tpu.pipeline_mode<synchronous>, transform_indices = @transform_31, window_bounds = array<i64: 1, 32>}, {pipeline_mode = #tpu.pipeline_mode<synchronous>, transform_indices = @transform_32, window_bounds = array<i64: 32, 64>}, {pipeline_mode = #tpu.pipeline_mode<synchronous>, transform_indices = @transform_33, window_bounds = array<i64: 1, 64>}, {pipeline_mode = #tpu.pipeline_mode<synchronous>, transform_indices = @transform_34, window_bounds = array<i64: 64, 32>}, {pipeline_mode = #tpu.pipeline_mode<synchronous>, transform_indices = @transform_35, window_bounds = array<i64: 1, 32>}, {pipeline_mode = #tpu.pipeline_mode<synchronous>, transform_indices = @transform_36, window_bounds = array<i64: 1, 32>}, {pipeline_mode = #tpu.pipeline_mode<synchronous>, transform_indices = @transform_37, window_bounds = array<i64: 1, 32>}, {transform_indices = @transform_38, window_bounds = array<i64: 1, 8, 32>}]} {
    %c0 = arith.constant 0 : index
    %c0_0 = arith.constant 0 : index
    %c0_1 = arith.constant 0 : index
    %0 = vector.load %arg1[%c0, %c0_0, %c0_1] : memref<1x8x32xf32, #tpu.memory_space<vmem>>, vector<1x8x32xf32>
    %1 = vector.shape_cast %0 : vector<1x8x32xf32> to vector<8x32xf32>
    %c0_2 = arith.constant 0 : index
    %c0_3 = arith.constant 0 : index
    %2 = vector.load %arg3[%c0_2, %c0_3] : memref<1x32xf32, #tpu.memory_space<vmem>>, vector<1x32xf32>
    %c0_4 = arith.constant 0 : index
    %c0_5 = arith.constant 0 : index
    %3 = vector.load %arg4[%c0_4, %c0_5] : memref<1x32xf32, #tpu.memory_space<vmem>>, vector<1x32xf32>
    %cst = arith.constant dense<0.000000e+00> : vector<8xf32>
    %4 = vector.multi_reduction <add>, %1, %cst [1] : vector<8x32xf32> to vector<8xf32>
    %5 = vector.shape_cast %4 : vector<8xf32> to vector<8x1xf32>
    %cst_6 = arith.constant 3.200000e+01 : f32
    %6 = vector.broadcast %cst_6 : f32 to vector<8x1xf32>
    %7 = arith.divf %5, %6 : vector<8x1xf32>
    %8 = vector.broadcast %7 : vector<8x1xf32> to vector<8x32xf32>
    %9 = arith.subf %1, %8 : vector<8x32xf32>
    %10 = arith.mulf %9, %9 : vector<8x32xf32>
    %cst_7 = arith.constant dense<0.000000e+00> : vector<8xf32>
    %11 = vector.multi_reduction <add>, %10, %cst_7 [1] : vector<8x32xf32> to vector<8xf32>
    %12 = vector.shape_cast %11 : vector<8xf32> to vector<8x1xf32>
    %cst_8 = arith.constant 3.200000e+01 : f32
    %13 = vector.broadcast %cst_8 : f32 to vector<8x1xf32>
    %14 = arith.divf %12, %13 : vector<8x1xf32>
    %15 = vector.broadcast %7 : vector<8x1xf32> to vector<8x32xf32>
    %16 = arith.subf %1, %15 : vector<8x32xf32>
    %cst_9 = arith.constant 9.99999996E-13 : f32
    %17 = vector.broadcast %cst_9 : f32 to vector<8x1xf32>
    %18 = arith.addf %14, %17 : vector<8x1xf32>
    %19 = math.rsqrt %18 : vector<8x1xf32>
    %20 = vector.broadcast %19 : vector<8x1xf32> to vector<8x32xf32>
    %21 = arith.mulf %16, %20 : vector<8x32xf32>
    %22 = vector.broadcast %2 : vector<1x32xf32> to vector<8x32xf32>
    %23 = arith.mulf %21, %22 : vector<8x32xf32>
    %24 = vector.broadcast %3 : vector<1x32xf32> to vector<8x32xf32>
    %25 = arith.addf %23, %24 : vector<8x32xf32>
    %c0_10 = arith.constant 0 : index
    %c0_11 = arith.constant 0 : index
    %26 = vector.load %arg5[%c0_10, %c0_11] : memref<32x64xf32, #tpu.memory_space<vmem>>, vector<32x64xf32>
    %cst_12 = arith.constant dense<0.000000e+00> : vector<8x64xf32>
    %27 = tpu.matmul %25, %26, %cst_12 {dimension_numbers = #tpu.dot_dimension_numbers<[1], [0], [0], [1], [0, 0, 1, 1], [], []>} : vector<8x32xf32>, vector<32x64xf32>, vector<8x64xf32> -> vector<8x64xf32>
    %c0_13 = arith.constant 0 : index
    %c0_14 = arith.constant 0 : index
    %28 = vector.load %arg6[%c0_13, %c0_14] : memref<1x64xf32, #tpu.memory_space<vmem>>, vector<1x64xf32>
    %29 = vector.broadcast %28 : vector<1x64xf32> to vector<8x64xf32>
    %30 = arith.addf %27, %29 : vector<8x64xf32>
    %cst_15 = arith.constant 0.000000e+00 : f32
    %31 = vector.broadcast %cst_15 : f32 to vector<8x64xf32>
    %32 = arith.maximumf %30, %31 : vector<8x64xf32>
    %c0_16 = arith.constant 0 : index
    %c0_17 = arith.constant 0 : index
    %33 = vector.load %arg7[%c0_16, %c0_17] : memref<64x32xf32, #tpu.memory_space<vmem>>, vector<64x32xf32>
    %cst_18 = arith.constant dense<0.000000e+00> : vector<8x32xf32>
    %34 = tpu.matmul %32, %33, %cst_18 {dimension_numbers = #tpu.dot_dimension_numbers<[1], [0], [0], [1], [0, 0, 1, 1], [], []>} : vector<8x64xf32>, vector<64x32xf32>, vector<8x32xf32> -> vector<8x32xf32>
    %c0_19 = arith.constant 0 : index
    %c0_20 = arith.constant 0 : index
    %35 = vector.load %arg8[%c0_19, %c0_20] : memref<1x32xf32, #tpu.memory_space<vmem>>, vector<1x32xf32>
    %36 = vector.broadcast %35 : vector<1x32xf32> to vector<8x32xf32>
    %37 = arith.addf %34, %36 : vector<8x32xf32>
    %cst_21 = arith.constant 5.000000e-01 : f32
    %38 = vector.broadcast %cst_21 : f32 to vector<8x32xf32>
    %39 = arith.mulf %38, %37 : vector<8x32xf32>
    %40 = arith.addf %1, %39 : vector<8x32xf32>
    %c0_22 = arith.constant 0 : index
    %c0_23 = arith.constant 0 : index
    %41 = vector.load %arg9[%c0_22, %c0_23] : memref<1x32xf32, #tpu.memory_space<vmem>>, vector<1x32xf32>
    %c0_24 = arith.constant 0 : index
    %c0_25 = arith.constant 0 : index
    %42 = vector.load %arg10[%c0_24, %c0_25] : memref<1x32xf32, #tpu.memory_space<vmem>>, vector<1x32xf32>
    %cst_26 = arith.constant dense<0.000000e+00> : vector<8xf32>
    %43 = vector.multi_reduction <add>, %40, %cst_26 [1] : vector<8x32xf32> to vector<8xf32>
    %44 = vector.shape_cast %43 : vector<8xf32> to vector<8x1xf32>
    %cst_27 = arith.constant 3.200000e+01 : f32
    %45 = vector.broadcast %cst_27 : f32 to vector<8x1xf32>
    %46 = arith.divf %44, %45 : vector<8x1xf32>
    %47 = vector.broadcast %46 : vector<8x1xf32> to vector<8x32xf32>
    %48 = arith.subf %40, %47 : vector<8x32xf32>
    %49 = arith.mulf %48, %48 : vector<8x32xf32>
    %cst_28 = arith.constant dense<0.000000e+00> : vector<8xf32>
    %50 = vector.multi_reduction <add>, %49, %cst_28 [1] : vector<8x32xf32> to vector<8xf32>
    %51 = vector.shape_cast %50 : vector<8xf32> to vector<8x1xf32>
    %cst_29 = arith.constant 3.200000e+01 : f32
    %52 = vector.broadcast %cst_29 : f32 to vector<8x1xf32>
    %53 = arith.divf %51, %52 : vector<8x1xf32>
    %54 = vector.broadcast %46 : vector<8x1xf32> to vector<8x32xf32>
    %55 = arith.subf %40, %54 : vector<8x32xf32>
    %cst_30 = arith.constant 9.99999996E-13 : f32
    %56 = vector.broadcast %cst_30 : f32 to vector<8x1xf32>
    %57 = arith.addf %53, %56 : vector<8x1xf32>
    %58 = math.rsqrt %57 : vector<8x1xf32>
    %59 = vector.broadcast %58 : vector<8x1xf32> to vector<8x32xf32>
    %60 = arith.mulf %55, %59 : vector<8x32xf32>
    %61 = vector.broadcast %41 : vector<1x32xf32> to vector<8x32xf32>
    %62 = arith.mulf %60, %61 : vector<8x32xf32>
    %63 = vector.broadcast %42 : vector<1x32xf32> to vector<8x32xf32>
    %64 = arith.addf %62, %63 : vector<8x32xf32>
    %c0_31 = arith.constant 0 : index
    %c0_32 = arith.constant 0 : index
    %65 = vector.load %arg11[%c0_31, %c0_32] : memref<32x32xf32, #tpu.memory_space<vmem>>, vector<32x32xf32>
    %cst_33 = arith.constant dense<0.000000e+00> : vector<8x32xf32>
    %66 = tpu.matmul %64, %65, %cst_33 {dimension_numbers = #tpu.dot_dimension_numbers<[1], [0], [0], [1], [0, 0, 1, 1], [], []>} : vector<8x32xf32>, vector<32x32xf32>, vector<8x32xf32> -> vector<8x32xf32>
    %c0_34 = arith.constant 0 : index
    %c0_35 = arith.constant 0 : index
    %67 = vector.load %arg12[%c0_34, %c0_35] : memref<1x32xf32, #tpu.memory_space<vmem>>, vector<1x32xf32>
    %68 = vector.broadcast %67 : vector<1x32xf32> to vector<8x32xf32>
    %69 = arith.addf %66, %68 : vector<8x32xf32>
    %c0_36 = arith.constant 0 : index
    %c0_37 = arith.constant 0 : index
    %70 = vector.load %arg13[%c0_36, %c0_37] : memref<32x32xf32, #tpu.memory_space<vmem>>, vector<32x32xf32>
    %cst_38 = arith.constant dense<0.000000e+00> : vector<8x32xf32>
    %71 = tpu.matmul %64, %70, %cst_38 {dimension_numbers = #tpu.dot_dimension_numbers<[1], [0], [0], [1], [0, 0, 1, 1], [], []>} : vector<8x32xf32>, vector<32x32xf32>, vector<8x32xf32> -> vector<8x32xf32>
    %c0_39 = arith.constant 0 : index
    %c0_40 = arith.constant 0 : index
    %72 = vector.load %arg14[%c0_39, %c0_40] : memref<1x32xf32, #tpu.memory_space<vmem>>, vector<1x32xf32>
    %73 = vector.broadcast %72 : vector<1x32xf32> to vector<8x32xf32>
    %74 = arith.addf %71, %73 : vector<8x32xf32>
    %c0_41 = arith.constant 0 : index
    %c0_42 = arith.constant 0 : index
    %75 = vector.load %arg15[%c0_41, %c0_42] : memref<32x32xf32, #tpu.memory_space<vmem>>, vector<32x32xf32>
    %cst_43 = arith.constant dense<0.000000e+00> : vector<8x32xf32>
    %76 = tpu.matmul %64, %75, %cst_43 {dimension_numbers = #tpu.dot_dimension_numbers<[1], [0], [0], [1], [0, 0, 1, 1], [], []>} : vector<8x32xf32>, vector<32x32xf32>, vector<8x32xf32> -> vector<8x32xf32>
    %c0_44 = arith.constant 0 : index
    %c0_45 = arith.constant 0 : index
    %77 = vector.load %arg16[%c0_44, %c0_45] : memref<1x32xf32, #tpu.memory_space<vmem>>, vector<1x32xf32>
    %78 = vector.broadcast %77 : vector<1x32xf32> to vector<8x32xf32>
    %79 = arith.addf %76, %78 : vector<8x32xf32>
    %c0_46 = arith.constant 0 : index
    %c0_47 = arith.constant 0 : index
    %c0_48 = arith.constant 0 : index
    %80 = vector.load %arg2[%c0_46, %c0_47, %c0_48] : memref<1x1x8xf32, #tpu.memory_space<vmem>>, vector<1x1x8xf32>
    %cst_49 = arith.constant 5.000000e-01 : f32
    %81 = vector.broadcast %cst_49 : f32 to vector<1x1x8xf32>
    %82 = arith.cmpf ogt, %80, %81 : vector<1x1x8xf32>
    %83 = vector.shape_cast %82 : vector<1x1x8xi1> to vector<1x8xi1>
    %84 = vector.extract_strided_slice %69 {offsets = [0, 0], sizes = [8, 8], strides = [1, 1]} : vector<8x32xf32> to vector<8x8xf32>
    %85 = vector.extract_strided_slice %74 {offsets = [0, 0], sizes = [8, 8], strides = [1, 1]} : vector<8x32xf32> to vector<8x8xf32>
    %86 = tpu.transpose %85, [1, 0] : vector<8x8xf32> -> vector<8x8xf32>
    %cst_50 = arith.constant dense<0.000000e+00> : vector<8x8xf32>
    %87 = tpu.matmul %84, %86, %cst_50 {dimension_numbers = #tpu.dot_dimension_numbers<[1], [0], [0], [1], [0, 0, 1, 1], [], []>} : vector<8x8xf32>, vector<8x8xf32>, vector<8x8xf32> -> vector<8x8xf32>
    %cst_51 = arith.constant 0.353553385 : f32
    %88 = vector.broadcast %cst_51 : f32 to vector<8x8xf32>
    %89 = arith.mulf %87, %88 : vector<8x8xf32>
    %cst_52 = arith.constant -3.40282347E+38 : f32
    %90 = vector.shape_cast %83 : vector<1x8xi1> to vector<1x8xi1>
    %91 = vector.broadcast %90 : vector<1x8xi1> to vector<8x8xi1>
    %92 = vector.broadcast %cst_52 : f32 to vector<8x8xf32>
    %93 = arith.select %91, %89, %92 : vector<8x8xi1>, vector<8x8xf32>
    %cst_53 = arith.constant dense<0xFF800000> : vector<8xf32>
    %94 = vector.multi_reduction <maximumf>, %93, %cst_53 [1] : vector<8x8xf32> to vector<8xf32>
    %95 = vector.shape_cast %94 : vector<8xf32> to vector<8x1xf32>
    %96 = vector.broadcast %95 : vector<8x1xf32> to vector<8x8xf32>
    %97 = arith.subf %93, %96 : vector<8x8xf32>
    %98 = math.exp %97 : vector<8x8xf32>
    %cst_54 = arith.constant dense<0.000000e+00> : vector<8xf32>
    %99 = vector.multi_reduction <add>, %98, %cst_54 [1] : vector<8x8xf32> to vector<8xf32>
    %100 = vector.shape_cast %99 : vector<8xf32> to vector<8x1xf32>
    %101 = vector.broadcast %100 : vector<8x1xf32> to vector<8x8xf32>
    %102 = arith.divf %98, %101 : vector<8x8xf32>
    %cst_55 = arith.constant 0.000000e+00 : f32
    %103 = vector.shape_cast %83 : vector<1x8xi1> to vector<1x8xi1>
    %104 = vector.broadcast %103 : vector<1x8xi1> to vector<8x8xi1>
    %105 = vector.broadcast %cst_55 : f32 to vector<8x8xf32>
    %106 = arith.select %104, %102, %105 : vector<8x8xi1>, vector<8x8xf32>
    %107 = vector.extract_strided_slice %79 {offsets = [0, 0], sizes = [8, 8], strides = [1, 1]} : vector<8x32xf32> to vector<8x8xf32>
    %cst_56 = arith.constant dense<0.000000e+00> : vector<8x8xf32>
    %108 = tpu.matmul %106, %107, %cst_56 {dimension_numbers = #tpu.dot_dimension_numbers<[1], [0], [0], [1], [0, 0, 1, 1], [], []>} : vector<8x8xf32>, vector<8x8xf32>, vector<8x8xf32> -> vector<8x8xf32>
    %c0_57 = arith.constant 0 : index
    %c0_58 = arith.constant 0 : index
    %109 = vector.load %arg40[%c0_57, %c0_58] : memref<8x32xf32, #tpu.memory_space<vmem>>, vector<8x8xf32>
    tpu.vector_store %arg40[%c0_57, %c0_58], %108 {strides = array<i32>} : memref<8x32xf32, #tpu.memory_space<vmem>>, vector<8x8xf32>,
    %110 = vector.extract_strided_slice %69 {offsets = [0, 8], sizes = [8, 8], strides = [1, 1]} : vector<8x32xf32> to vector<8x8xf32>
    %111 = vector.extract_strided_slice %74 {offsets = [0, 8], sizes = [8, 8], strides = [1, 1]} : vector<8x32xf32> to vector<8x8xf32>
    %112 = tpu.transpose %111, [1, 0] : vector<8x8xf32> -> vector<8x8xf32>
    %cst_59 = arith.constant dense<0.000000e+00> : vector<8x8xf32>
    %113 = tpu.matmul %110, %112, %cst_59 {dimension_numbers = #tpu.dot_dimension_numbers<[1], [0], [0], [1], [0, 0, 1, 1], [], []>} : vector<8x8xf32>, vector<8x8xf32>, vector<8x8xf32> -> vector<8x8xf32>
    %cst_60 = arith.constant 0.353553385 : f32
    %114 = vector.broadcast %cst_60 : f32 to vector<8x8xf32>
    %115 = arith.mulf %113, %114 : vector<8x8xf32>
    %cst_61 = arith.constant -3.40282347E+38 : f32
    %116 = vector.shape_cast %83 : vector<1x8xi1> to vector<1x8xi1>
    %117 = vector.broadcast %116 : vector<1x8xi1> to vector<8x8xi1>
    %118 = vector.broadcast %cst_61 : f32 to vector<8x8xf32>
    %119 = arith.select %117, %115, %118 : vector<8x8xi1>, vector<8x8xf32>
    %cst_62 = arith.constant dense<0xFF800000> : vector<8xf32>
    %120 = vector.multi_reduction <maximumf>, %119, %cst_62 [1] : vector<8x8xf32> to vector<8xf32>
    %121 = vector.shape_cast %120 : vector<8xf32> to vector<8x1xf32>
    %122 = vector.broadcast %121 : vector<8x1xf32> to vector<8x8xf32>
    %123 = arith.subf %119, %122 : vector<8x8xf32>
    %124 = math.exp %123 : vector<8x8xf32>
    %cst_63 = arith.constant dense<0.000000e+00> : vector<8xf32>
    %125 = vector.multi_reduction <add>, %124, %cst_63 [1] : vector<8x8xf32> to vector<8xf32>
    %126 = vector.shape_cast %125 : vector<8xf32> to vector<8x1xf32>
    %127 = vector.broadcast %126 : vector<8x1xf32> to vector<8x8xf32>
    %128 = arith.divf %124, %127 : vector<8x8xf32>
    %cst_64 = arith.constant 0.000000e+00 : f32
    %129 = vector.shape_cast %83 : vector<1x8xi1> to vector<1x8xi1>
    %130 = vector.broadcast %129 : vector<1x8xi1> to vector<8x8xi1>
    %131 = vector.broadcast %cst_64 : f32 to vector<8x8xf32>
    %132 = arith.select %130, %128, %131 : vector<8x8xi1>, vector<8x8xf32>
    %133 = vector.extract_strided_slice %79 {offsets = [0, 8], sizes = [8, 8], strides = [1, 1]} : vector<8x32xf32> to vector<8x8xf32>
    %cst_65 = arith.constant dense<0.000000e+00> : vector<8x8xf32>
    %134 = tpu.matmul %132, %133, %cst_65 {dimension_numbers = #tpu.dot_dimension_numbers<[1], [0], [0], [1], [0, 0, 1, 1], [], []>} : vector<8x8xf32>, vector<8x8xf32>, vector<8x8xf32> -> vector<8x8xf32>
    %c0_66 = arith.constant 0 : index
    %c8 = arith.constant 8 : index
    %135 = vector.load %arg40[%c0_66, %c8] : memref<8x32xf32, #tpu.memory_space<vmem>>, vector<8x8xf32>
    tpu.vector_store %arg40[%c0_66, %c8], %134 {strides = array<i32>} : memref<8x32xf32, #tpu.memory_space<vmem>>, vector<8x8xf32>,
    %136 = vector.extract_strided_slice %69 {offsets = [0, 16], sizes = [8, 8], strides = [1, 1]} : vector<8x32xf32> to vector<8x8xf32>
    %137 = vector.extract_strided_slice %74 {offsets = [0, 16], sizes = [8, 8], strides = [1, 1]} : vector<8x32xf32> to vector<8x8xf32>
    %138 = tpu.transpose %137, [1, 0] : vector<8x8xf32> -> vector<8x8xf32>
    %cst_67 = arith.constant dense<0.000000e+00> : vector<8x8xf32>
    %139 = tpu.matmul %136, %138, %cst_67 {dimension_numbers = #tpu.dot_dimension_numbers<[1], [0], [0], [1], [0, 0, 1, 1], [], []>} : vector<8x8xf32>, vector<8x8xf32>, vector<8x8xf32> -> vector<8x8xf32>
    %cst_68 = arith.constant 0.353553385 : f32
    %140 = vector.broadcast %cst_68 : f32 to vector<8x8xf32>
    %141 = arith.mulf %139, %140 : vector<8x8xf32>
    %cst_69 = arith.constant -3.40282347E+38 : f32
    %142 = vector.shape_cast %83 : vector<1x8xi1> to vector<1x8xi1>
    %143 = vector.broadcast %142 : vector<1x8xi1> to vector<8x8xi1>
    %144 = vector.broadcast %cst_69 : f32 to vector<8x8xf32>
    %145 = arith.select %143, %141, %144 : vector<8x8xi1>, vector<8x8xf32>
    %cst_70 = arith.constant dense<0xFF800000> : vector<8xf32>
    %146 = vector.multi_reduction <maximumf>, %145, %cst_70 [1] : vector<8x8xf32> to vector<8xf32>
    %147 = vector.shape_cast %146 : vector<8xf32> to vector<8x1xf32>
    %148 = vector.broadcast %147 : vector<8x1xf32> to vector<8x8xf32>
    %149 = arith.subf %145, %148 : vector<8x8xf32>
    %150 = math.exp %149 : vector<8x8xf32>
    %cst_71 = arith.constant dense<0.000000e+00> : vector<8xf32>
    %151 = vector.multi_reduction <add>, %150, %cst_71 [1] : vector<8x8xf32> to vector<8xf32>
    %152 = vector.shape_cast %151 : vector<8xf32> to vector<8x1xf32>
    %153 = vector.broadcast %152 : vector<8x1xf32> to vector<8x8xf32>
    %154 = arith.divf %150, %153 : vector<8x8xf32>
    %cst_72 = arith.constant 0.000000e+00 : f32
    %155 = vector.shape_cast %83 : vector<1x8xi1> to vector<1x8xi1>
    %156 = vector.broadcast %155 : vector<1x8xi1> to vector<8x8xi1>
    %157 = vector.broadcast %cst_72 : f32 to vector<8x8xf32>
    %158 = arith.select %156, %154, %157 : vector<8x8xi1>, vector<8x8xf32>
    %159 = vector.extract_strided_slice %79 {offsets = [0, 16], sizes = [8, 8], strides = [1, 1]} : vector<8x32xf32> to vector<8x8xf32>
    %cst_73 = arith.constant dense<0.000000e+00> : vector<8x8xf32>
    %160 = tpu.matmul %158, %159, %cst_73 {dimension_numbers = #tpu.dot_dimension_numbers<[1], [0], [0], [1], [0, 0, 1, 1], [], []>} : vector<8x8xf32>, vector<8x8xf32>, vector<8x8xf32> -> vector<8x8xf32>
    %c0_74 = arith.constant 0 : index
    %c16 = arith.constant 16 : index
    %161 = vector.load %arg40[%c0_74, %c16] : memref<8x32xf32, #tpu.memory_space<vmem>>, vector<8x8xf32>
    tpu.vector_store %arg40[%c0_74, %c16], %160 {strides = array<i32>} : memref<8x32xf32, #tpu.memory_space<vmem>>, vector<8x8xf32>,
    %162 = vector.extract_strided_slice %69 {offsets = [0, 24], sizes = [8, 8], strides = [1, 1]} : vector<8x32xf32> to vector<8x8xf32>
    %163 = vector.extract_strided_slice %74 {offsets = [0, 24], sizes = [8, 8], strides = [1, 1]} : vector<8x32xf32> to vector<8x8xf32>
    %164 = tpu.transpose %163, [1, 0] : vector<8x8xf32> -> vector<8x8xf32>
    %cst_75 = arith.constant dense<0.000000e+00> : vector<8x8xf32>
    %165 = tpu.matmul %162, %164, %cst_75 {dimension_numbers = #tpu.dot_dimension_numbers<[1], [0], [0], [1], [0, 0, 1, 1], [], []>} : vector<8x8xf32>, vector<8x8xf32>, vector<8x8xf32> -> vector<8x8xf32>
    %cst_76 = arith.constant 0.353553385 : f32
    %166 = vector.broadcast %cst_76 : f32 to vector<8x8xf32>
    %167 = arith.mulf %165, %166 : vector<8x8xf32>
    %cst_77 = arith.constant -3.40282347E+38 : f32
    %168 = vector.shape_cast %83 : vector<1x8xi1> to vector<1x8xi1>
    %169 = vector.broadcast %168 : vector<1x8xi1> to vector<8x8xi1>
    %170 = vector.broadcast %cst_77 : f32 to vector<8x8xf32>
    %171 = arith.select %169, %167, %170 : vector<8x8xi1>, vector<8x8xf32>
    %cst_78 = arith.constant dense<0xFF800000> : vector<8xf32>
    %172 = vector.multi_reduction <maximumf>, %171, %cst_78 [1] : vector<8x8xf32> to vector<8xf32>
    %173 = vector.shape_cast %172 : vector<8xf32> to vector<8x1xf32>
    %174 = vector.broadcast %173 : vector<8x1xf32> to vector<8x8xf32>
    %175 = arith.subf %171, %174 : vector<8x8xf32>
    %176 = math.exp %175 : vector<8x8xf32>
    %cst_79 = arith.constant dense<0.000000e+00> : vector<8xf32>
    %177 = vector.multi_reduction <add>, %176, %cst_79 [1] : vector<8x8xf32> to vector<8xf32>
    %178 = vector.shape_cast %177 : vector<8xf32> to vector<8x1xf32>
    %179 = vector.broadcast %178 : vector<8x1xf32> to vector<8x8xf32>
    %180 = arith.divf %176, %179 : vector<8x8xf32>
    %cst_80 = arith.constant 0.000000e+00 : f32
    %181 = vector.shape_cast %83 : vector<1x8xi1> to vector<1x8xi1>
    %182 = vector.broadcast %181 : vector<1x8xi1> to vector<8x8xi1>
    %183 = vector.broadcast %cst_80 : f32 to vector<8x8xf32>
    %184 = arith.select %182, %180, %183 : vector<8x8xi1>, vector<8x8xf32>
    %185 = vector.extract_strided_slice %79 {offsets = [0, 24], sizes = [8, 8], strides = [1, 1]} : vector<8x32xf32> to vector<8x8xf32>
    %cst_81 = arith.constant dense<0.000000e+00> : vector<8x8xf32>
    %186 = tpu.matmul %184, %185, %cst_81 {dimension_numbers = #tpu.dot_dimension_numbers<[1], [0], [0], [1], [0, 0, 1, 1], [], []>} : vector<8x8xf32>, vector<8x8xf32>, vector<8x8xf32> -> vector<8x8xf32>
    %c0_82 = arith.constant 0 : index
    %c24 = arith.constant 24 : index
    %187 = vector.load %arg40[%c0_82, %c24] : memref<8x32xf32, #tpu.memory_space<vmem>>, vector<8x8xf32>
    tpu.vector_store %arg40[%c0_82, %c24], %186 {strides = array<i32>} : memref<8x32xf32, #tpu.memory_space<vmem>>, vector<8x8xf32>,
    %c0_83 = arith.constant 0 : index
    %c0_84 = arith.constant 0 : index
    %188 = vector.load %arg40[%c0_83, %c0_84] : memref<8x32xf32, #tpu.memory_space<vmem>>, vector<8x32xf32>
    %c0_85 = arith.constant 0 : index
    %c0_86 = arith.constant 0 : index
    %189 = vector.load %arg17[%c0_85, %c0_86] : memref<32x32xf32, #tpu.memory_space<vmem>>, vector<32x32xf32>
    %cst_87 = arith.constant dense<0.000000e+00> : vector<8x32xf32>
    %190 = tpu.matmul %188, %189, %cst_87 {dimension_numbers = #tpu.dot_dimension_numbers<[1], [0], [0], [1], [0, 0, 1, 1], [], []>} : vector<8x32xf32>, vector<32x32xf32>, vector<8x32xf32> -> vector<8x32xf32>
    %191 = arith.addf %40, %190 : vector<8x32xf32>
    %c0_88 = arith.constant 0 : index
    %c0_89 = arith.constant 0 : index
    %192 = vector.load %arg18[%c0_88, %c0_89] : memref<1x32xf32, #tpu.memory_space<vmem>>, vector<1x32xf32>
    %193 = vector.broadcast %192 : vector<1x32xf32> to vector<8x32xf32>
    %194 = arith.addf %191, %193 : vector<8x32xf32>
    %c0_90 = arith.constant 0 : index
    %c0_91 = arith.constant 0 : index
    %195 = vector.load %arg19[%c0_90, %c0_91] : memref<1x32xf32, #tpu.memory_space<vmem>>, vector<1x32xf32>
    %c0_92 = arith.constant 0 : index
    %c0_93 = arith.constant 0 : index
    %196 = vector.load %arg20[%c0_92, %c0_93] : memref<1x32xf32, #tpu.memory_space<vmem>>, vector<1x32xf32>
    %cst_94 = arith.constant dense<0.000000e+00> : vector<8xf32>
    %197 = vector.multi_reduction <add>, %194, %cst_94 [1] : vector<8x32xf32> to vector<8xf32>
    %198 = vector.shape_cast %197 : vector<8xf32> to vector<8x1xf32>
    %cst_95 = arith.constant 3.200000e+01 : f32
    %199 = vector.broadcast %cst_95 : f32 to vector<8x1xf32>
    %200 = arith.divf %198, %199 : vector<8x1xf32>
    %201 = vector.broadcast %200 : vector<8x1xf32> to vector<8x32xf32>
    %202 = arith.subf %194, %201 : vector<8x32xf32>
    %203 = arith.mulf %202, %202 : vector<8x32xf32>
    %cst_96 = arith.constant dense<0.000000e+00> : vector<8xf32>
    %204 = vector.multi_reduction <add>, %203, %cst_96 [1] : vector<8x32xf32> to vector<8xf32>
    %205 = vector.shape_cast %204 : vector<8xf32> to vector<8x1xf32>
    %cst_97 = arith.constant 3.200000e+01 : f32
    %206 = vector.broadcast %cst_97 : f32 to vector<8x1xf32>
    %207 = arith.divf %205, %206 : vector<8x1xf32>
    %208 = vector.broadcast %200 : vector<8x1xf32> to vector<8x32xf32>
    %209 = arith.subf %194, %208 : vector<8x32xf32>
    %cst_98 = arith.constant 9.99999996E-13 : f32
    %210 = vector.broadcast %cst_98 : f32 to vector<8x1xf32>
    %211 = arith.addf %207, %210 : vector<8x1xf32>
    %212 = math.rsqrt %211 : vector<8x1xf32>
    %213 = vector.broadcast %212 : vector<8x1xf32> to vector<8x32xf32>
    %214 = arith.mulf %209, %213 : vector<8x32xf32>
    %215 = vector.broadcast %195 : vector<1x32xf32> to vector<8x32xf32>
    %216 = arith.mulf %214, %215 : vector<8x32xf32>
    %217 = vector.broadcast %196 : vector<1x32xf32> to vector<8x32xf32>
    %218 = arith.addf %216, %217 : vector<8x32xf32>
    %c0_99 = arith.constant 0 : index
    %c0_100 = arith.constant 0 : index
    %219 = vector.load %arg21[%c0_99, %c0_100] : memref<32x32xf32, #tpu.memory_space<vmem>>, vector<32x32xf32>
    %cst_101 = arith.constant dense<0.000000e+00> : vector<8x32xf32>
    %220 = tpu.matmul %218, %219, %cst_101 {dimension_numbers = #tpu.dot_dimension_numbers<[1], [0], [0], [1], [0, 0, 1, 1], [], []>} : vector<8x32xf32>, vector<32x32xf32>, vector<8x32xf32> -> vector<8x32xf32>
    %c0_102 = arith.constant 0 : index
    %c0_103 = arith.constant 0 : index
    %221 = vector.load %arg22[%c0_102, %c0_103] : memref<1x32xf32, #tpu.memory_space<vmem>>, vector<1x32xf32>
    %222 = vector.broadcast %221 : vector<1x32xf32> to vector<8x32xf32>
    %223 = arith.addf %220, %222 : vector<8x32xf32>
    %c0_104 = arith.constant 0 : index
    %c0_105 = arith.constant 0 : index
    %224 = vector.load %arg23[%c0_104, %c0_105] : memref<32x32xf32, #tpu.memory_space<vmem>>, vector<32x32xf32>
    %cst_106 = arith.constant dense<0.000000e+00> : vector<8x32xf32>
    %225 = tpu.matmul %218, %224, %cst_106 {dimension_numbers = #tpu.dot_dimension_numbers<[1], [0], [0], [1], [0, 0, 1, 1], [], []>} : vector<8x32xf32>, vector<32x32xf32>, vector<8x32xf32> -> vector<8x32xf32>
    %c0_107 = arith.constant 0 : index
    %c0_108 = arith.constant 0 : index
    %226 = vector.load %arg24[%c0_107, %c0_108] : memref<1x32xf32, #tpu.memory_space<vmem>>, vector<1x32xf32>
    %227 = vector.broadcast %226 : vector<1x32xf32> to vector<8x32xf32>
    %228 = arith.addf %225, %227 : vector<8x32xf32>
    %229 = arith.negf %228 : vector<8x32xf32>
    %230 = math.exp %229 : vector<8x32xf32>
    %cst_109 = arith.constant 1.000000e+00 : f32
    %231 = vector.broadcast %cst_109 : f32 to vector<8x32xf32>
    %232 = arith.addf %231, %230 : vector<8x32xf32>
    %233 = arith.divf %231, %232 : vector<8x32xf32>
    %234 = arith.mulf %223, %233 : vector<8x32xf32>
    %c0_110 = arith.constant 0 : index
    %c0_111 = arith.constant 0 : index
    %c0_112 = arith.constant 0 : index
    %235 = vector.load %arg25[%c0_110, %c0_111, %c0_112] : memref<7x1x32xf32, #tpu.memory_space<vmem>>, vector<7x1x32xf32>
    %cst_113 = arith.constant 0.000000e+00 : f32
    %236 = vector.broadcast %cst_113 : f32 to vector<1x3x32xf32>
    %c0_114 = arith.constant 0 : index
    %c0_115 = arith.constant 0 : index
    %c0_116 = arith.constant 0 : index
    %237 = vector.load %arg41[%c0_114, %c0_115, %c0_116] : memref<1x14x32xf32, #tpu.memory_space<vmem>>, vector<1x3x32xf32>
    tpu.vector_store %arg41[%c0_114, %c0_115, %c0_116], %236 {strides = array<i32>} : memref<1x14x32xf32, #tpu.memory_space<vmem>>, vector<1x3x32xf32>,
    %c0_117 = arith.constant 0 : index
    %c11 = arith.constant 11 : index
    %c0_118 = arith.constant 0 : index
    %238 = vector.load %arg41[%c0_117, %c11, %c0_118] : memref<1x14x32xf32, #tpu.memory_space<vmem>>, vector<1x3x32xf32>
    tpu.vector_store %arg41[%c0_117, %c11, %c0_118], %236 {strides = array<i32>} : memref<1x14x32xf32, #tpu.memory_space<vmem>>, vector<1x3x32xf32>,
    %239 = vector.shape_cast %234 : vector<8x32xf32> to vector<1x8x32xf32>
    %c0_119 = arith.constant 0 : index
    %c3 = arith.constant 3 : index
    %c0_120 = arith.constant 0 : index
    %240 = vector.load %arg41[%c0_119, %c3, %c0_120] : memref<1x14x32xf32, #tpu.memory_space<vmem>>, vector<1x8x32xf32>
    tpu.vector_store %arg41[%c0_119, %c3, %c0_120], %239 {strides = array<i32>} : memref<1x14x32xf32, #tpu.memory_space<vmem>>, vector<1x8x32xf32>,
    %c0_121 = arith.constant 0 : index
    %c0_122 = arith.constant 0 : index
    %241 = vector.load %arg26[%c0_121, %c0_122] : memref<1x32xf32, #tpu.memory_space<vmem>>, vector<1x32xf32>
    %c0_123 = arith.constant 0 : index
    %c0_124 = arith.constant 0 : index
    %c0_125 = arith.constant 0 : index
    %242 = vector.load %arg41[%c0_123, %c0_124, %c0_125] : memref<1x14x32xf32, #tpu.memory_space<vmem>>, vector<1x8x32xf32>
    %243 = vector.shape_cast %242 : vector<1x8x32xf32> to vector<8x32xf32>
    %244 = vector.extract_strided_slice %235 {offsets = [0, 0, 0], sizes = [1, 1, 32], strides = [1, 1, 1]} : vector<7x1x32xf32> to vector<1x1x32xf32>
    %245 = vector.shape_cast %244 : vector<1x1x32xf32> to vector<1x32xf32>
    %246 = vector.broadcast %245 : vector<1x32xf32> to vector<8x32xf32>
    %247 = arith.mulf %243, %246 : vector<8x32xf32>
    %248 = vector.broadcast %241 : vector<1x32xf32> to vector<8x32xf32>
    %249 = arith.addf %248, %247 : vector<8x32xf32>
    %c0_126 = arith.constant 0 : index
    %c1 = arith.constant 1 : index
    %c0_127 = arith.constant 0 : index
    %250 = vector.load %arg41[%c0_126, %c1, %c0_127] : memref<1x14x32xf32, #tpu.memory_space<vmem>>, vector<1x8x32xf32>
    %251 = vector.shape_cast %250 : vector<1x8x32xf32> to vector<8x32xf32>
    %252 = vector.extract_strided_slice %235 {offsets = [1, 0, 0], sizes = [1, 1, 32], strides = [1, 1, 1]} : vector<7x1x32xf32> to vector<1x1x32xf32>
    %253 = vector.shape_cast %252 : vector<1x1x32xf32> to vector<1x32xf32>
    %254 = vector.broadcast %253 : vector<1x32xf32> to vector<8x32xf32>
    %255 = arith.mulf %251, %254 : vector<8x32xf32>
    %256 = arith.addf %249, %255 : vector<8x32xf32>
    %c0_128 = arith.constant 0 : index
    %c2 = arith.constant 2 : index
    %c0_129 = arith.constant 0 : index
    %257 = vector.load %arg41[%c0_128, %c2, %c0_129] : memref<1x14x32xf32, #tpu.memory_space<vmem>>, vector<1x8x32xf32>
    %258 = vector.shape_cast %257 : vector<1x8x32xf32> to vector<8x32xf32>
    %259 = vector.extract_strided_slice %235 {offsets = [2, 0, 0], sizes = [1, 1, 32], strides = [1, 1, 1]} : vector<7x1x32xf32> to vector<1x1x32xf32>
    %260 = vector.shape_cast %259 : vector<1x1x32xf32> to vector<1x32xf32>
    %261 = vector.broadcast %260 : vector<1x32xf32> to vector<8x32xf32>
    %262 = arith.mulf %258, %261 : vector<8x32xf32>
    %263 = arith.addf %256, %262 : vector<8x32xf32>
    %c0_130 = arith.constant 0 : index
    %c3_131 = arith.constant 3 : index
    %c0_132 = arith.constant 0 : index
    %264 = vector.load %arg41[%c0_130, %c3_131, %c0_132] : memref<1x14x32xf32, #tpu.memory_space<vmem>>, vector<1x8x32xf32>
    %265 = vector.shape_cast %264 : vector<1x8x32xf32> to vector<8x32xf32>
    %266 = vector.extract_strided_slice %235 {offsets = [3, 0, 0], sizes = [1, 1, 32], strides = [1, 1, 1]} : vector<7x1x32xf32> to vector<1x1x32xf32>
    %267 = vector.shape_cast %266 : vector<1x1x32xf32> to vector<1x32xf32>
    %268 = vector.broadcast %267 : vector<1x32xf32> to vector<8x32xf32>
    %269 = arith.mulf %265, %268 : vector<8x32xf32>
    %270 = arith.addf %263, %269 : vector<8x32xf32>
    %c0_133 = arith.constant 0 : index
    %c4 = arith.constant 4 : index
    %c0_134 = arith.constant 0 : index
    %271 = vector.load %arg41[%c0_133, %c4, %c0_134] : memref<1x14x32xf32, #tpu.memory_space<vmem>>, vector<1x8x32xf32>
    %272 = vector.shape_cast %271 : vector<1x8x32xf32> to vector<8x32xf32>
    %273 = vector.extract_strided_slice %235 {offsets = [4, 0, 0], sizes = [1, 1, 32], strides = [1, 1, 1]} : vector<7x1x32xf32> to vector<1x1x32xf32>
    %274 = vector.shape_cast %273 : vector<1x1x32xf32> to vector<1x32xf32>
    %275 = vector.broadcast %274 : vector<1x32xf32> to vector<8x32xf32>
    %276 = arith.mulf %272, %275 : vector<8x32xf32>
    %277 = arith.addf %270, %276 : vector<8x32xf32>
    %c0_135 = arith.constant 0 : index
    %c5 = arith.constant 5 : index
    %c0_136 = arith.constant 0 : index
    %278 = vector.load %arg41[%c0_135, %c5, %c0_136] : memref<1x14x32xf32, #tpu.memory_space<vmem>>, vector<1x8x32xf32>
    %279 = vector.shape_cast %278 : vector<1x8x32xf32> to vector<8x32xf32>
    %280 = vector.extract_strided_slice %235 {offsets = [5, 0, 0], sizes = [1, 1, 32], strides = [1, 1, 1]} : vector<7x1x32xf32> to vector<1x1x32xf32>
    %281 = vector.shape_cast %280 : vector<1x1x32xf32> to vector<1x32xf32>
    %282 = vector.broadcast %281 : vector<1x32xf32> to vector<8x32xf32>
    %283 = arith.mulf %279, %282 : vector<8x32xf32>
    %284 = arith.addf %277, %283 : vector<8x32xf32>
    %c0_137 = arith.constant 0 : index
    %c6 = arith.constant 6 : index
    %c0_138 = arith.constant 0 : index
    %285 = vector.load %arg41[%c0_137, %c6, %c0_138] : memref<1x14x32xf32, #tpu.memory_space<vmem>>, vector<1x8x32xf32>
    %286 = vector.shape_cast %285 : vector<1x8x32xf32> to vector<8x32xf32>
    %287 = vector.extract_strided_slice %235 {offsets = [6, 0, 0], sizes = [1, 1, 32], strides = [1, 1, 1]} : vector<7x1x32xf32> to vector<1x1x32xf32>
    %288 = vector.shape_cast %287 : vector<1x1x32xf32> to vector<1x32xf32>
    %289 = vector.broadcast %288 : vector<1x32xf32> to vector<8x32xf32>
    %290 = arith.mulf %286, %289 : vector<8x32xf32>
    %291 = arith.addf %284, %290 : vector<8x32xf32>
    %c0_139 = arith.constant 0 : index
    %c0_140 = arith.constant 0 : index
    %292 = vector.load %arg27[%c0_139, %c0_140] : memref<1x32xf32, #tpu.memory_space<vmem>>, vector<1x32xf32>
    %293 = vector.broadcast %292 : vector<1x32xf32> to vector<8x32xf32>
    %294 = arith.mulf %291, %293 : vector<8x32xf32>
    %c0_141 = arith.constant 0 : index
    %c0_142 = arith.constant 0 : index
    %295 = vector.load %arg28[%c0_141, %c0_142] : memref<1x32xf32, #tpu.memory_space<vmem>>, vector<1x32xf32>
    %296 = vector.broadcast %295 : vector<1x32xf32> to vector<8x32xf32>
    %297 = arith.addf %294, %296 : vector<8x32xf32>
    %298 = arith.negf %297 : vector<8x32xf32>
    %299 = math.exp %298 : vector<8x32xf32>
    %cst_143 = arith.constant 1.000000e+00 : f32
    %300 = vector.broadcast %cst_143 : f32 to vector<8x32xf32>
    %301 = arith.addf %300, %299 : vector<8x32xf32>
    %302 = arith.divf %300, %301 : vector<8x32xf32>
    %303 = arith.mulf %297, %302 : vector<8x32xf32>
    %c0_144 = arith.constant 0 : index
    %c0_145 = arith.constant 0 : index
    %304 = vector.load %arg29[%c0_144, %c0_145] : memref<32x32xf32, #tpu.memory_space<vmem>>, vector<32x32xf32>
    %cst_146 = arith.constant dense<0.000000e+00> : vector<8x32xf32>
    %305 = tpu.matmul %303, %304, %cst_146 {dimension_numbers = #tpu.dot_dimension_numbers<[1], [0], [0], [1], [0, 0, 1, 1], [], []>} : vector<8x32xf32>, vector<32x32xf32>, vector<8x32xf32> -> vector<8x32xf32>
    %306 = arith.addf %194, %305 : vector<8x32xf32>
    %c0_147 = arith.constant 0 : index
    %c0_148 = arith.constant 0 : index
    %307 = vector.load %arg30[%c0_147, %c0_148] : memref<1x32xf32, #tpu.memory_space<vmem>>, vector<1x32xf32>
    %308 = vector.broadcast %307 : vector<1x32xf32> to vector<8x32xf32>
    %309 = arith.addf %306, %308 : vector<8x32xf32>
    %c0_149 = arith.constant 0 : index
    %c0_150 = arith.constant 0 : index
    %310 = vector.load %arg31[%c0_149, %c0_150] : memref<1x32xf32, #tpu.memory_space<vmem>>, vector<1x32xf32>
    %c0_151 = arith.constant 0 : index
    %c0_152 = arith.constant 0 : index
    %311 = vector.load %arg32[%c0_151, %c0_152] : memref<1x32xf32, #tpu.memory_space<vmem>>, vector<1x32xf32>
    %cst_153 = arith.constant dense<0.000000e+00> : vector<8xf32>
    %312 = vector.multi_reduction <add>, %309, %cst_153 [1] : vector<8x32xf32> to vector<8xf32>
    %313 = vector.shape_cast %312 : vector<8xf32> to vector<8x1xf32>
    %cst_154 = arith.constant 3.200000e+01 : f32
    %314 = vector.broadcast %cst_154 : f32 to vector<8x1xf32>
    %315 = arith.divf %313, %314 : vector<8x1xf32>
    %316 = vector.broadcast %315 : vector<8x1xf32> to vector<8x32xf32>
    %317 = arith.subf %309, %316 : vector<8x32xf32>
    %318 = arith.mulf %317, %317 : vector<8x32xf32>
    %cst_155 = arith.constant dense<0.000000e+00> : vector<8xf32>
    %319 = vector.multi_reduction <add>, %318, %cst_155 [1] : vector<8x32xf32> to vector<8xf32>
    %320 = vector.shape_cast %319 : vector<8xf32> to vector<8x1xf32>
    %cst_156 = arith.constant 3.200000e+01 : f32
    %321 = vector.broadcast %cst_156 : f32 to vector<8x1xf32>
    %322 = arith.divf %320, %321 : vector<8x1xf32>
    %323 = vector.broadcast %315 : vector<8x1xf32> to vector<8x32xf32>
    %324 = arith.subf %309, %323 : vector<8x32xf32>
    %cst_157 = arith.constant 9.99999996E-13 : f32
    %325 = vector.broadcast %cst_157 : f32 to vector<8x1xf32>
    %326 = arith.addf %322, %325 : vector<8x1xf32>
    %327 = math.rsqrt %326 : vector<8x1xf32>
    %328 = vector.broadcast %327 : vector<8x1xf32> to vector<8x32xf32>
    %329 = arith.mulf %324, %328 : vector<8x32xf32>
    %330 = vector.broadcast %310 : vector<1x32xf32> to vector<8x32xf32>
    %331 = arith.mulf %329, %330 : vector<8x32xf32>
    %332 = vector.broadcast %311 : vector<1x32xf32> to vector<8x32xf32>
    %333 = arith.addf %331, %332 : vector<8x32xf32>
    %c0_158 = arith.constant 0 : index
    %c0_159 = arith.constant 0 : index
    %334 = vector.load %arg33[%c0_158, %c0_159] : memref<32x64xf32, #tpu.memory_space<vmem>>, vector<32x64xf32>
    %cst_160 = arith.constant dense<0.000000e+00> : vector<8x64xf32>
    %335 = tpu.matmul %333, %334, %cst_160 {dimension_numbers = #tpu.dot_dimension_numbers<[1], [0], [0], [1], [0, 0, 1, 1], [], []>} : vector<8x32xf32>, vector<32x64xf32>, vector<8x64xf32> -> vector<8x64xf32>
    %c0_161 = arith.constant 0 : index
    %c0_162 = arith.constant 0 : index
    %336 = vector.load %arg34[%c0_161, %c0_162] : memref<1x64xf32, #tpu.memory_space<vmem>>, vector<1x64xf32>
    %337 = vector.broadcast %336 : vector<1x64xf32> to vector<8x64xf32>
    %338 = arith.addf %335, %337 : vector<8x64xf32>
    %cst_163 = arith.constant 0.000000e+00 : f32
    %339 = vector.broadcast %cst_163 : f32 to vector<8x64xf32>
    %340 = arith.maximumf %338, %339 : vector<8x64xf32>
    %c0_164 = arith.constant 0 : index
    %c0_165 = arith.constant 0 : index
    %341 = vector.load %arg35[%c0_164, %c0_165] : memref<64x32xf32, #tpu.memory_space<vmem>>, vector<64x32xf32>
    %cst_166 = arith.constant dense<0.000000e+00> : vector<8x32xf32>
    %342 = tpu.matmul %340, %341, %cst_166 {dimension_numbers = #tpu.dot_dimension_numbers<[1], [0], [0], [1], [0, 0, 1, 1], [], []>} : vector<8x64xf32>, vector<64x32xf32>, vector<8x32xf32> -> vector<8x32xf32>
    %c0_167 = arith.constant 0 : index
    %c0_168 = arith.constant 0 : index
    %343 = vector.load %arg36[%c0_167, %c0_168] : memref<1x32xf32, #tpu.memory_space<vmem>>, vector<1x32xf32>
    %344 = vector.broadcast %343 : vector<1x32xf32> to vector<8x32xf32>
    %345 = arith.addf %342, %344 : vector<8x32xf32>
    %cst_169 = arith.constant 5.000000e-01 : f32
    %346 = vector.broadcast %cst_169 : f32 to vector<8x32xf32>
    %347 = arith.mulf %346, %345 : vector<8x32xf32>
    %348 = arith.addf %309, %347 : vector<8x32xf32>
    %c0_170 = arith.constant 0 : index
    %c0_171 = arith.constant 0 : index
    %349 = vector.load %arg37[%c0_170, %c0_171] : memref<1x32xf32, #tpu.memory_space<vmem>>, vector<1x32xf32>
    %c0_172 = arith.constant 0 : index
    %c0_173 = arith.constant 0 : index
    %350 = vector.load %arg38[%c0_172, %c0_173] : memref<1x32xf32, #tpu.memory_space<vmem>>, vector<1x32xf32>
    %cst_174 = arith.constant dense<0.000000e+00> : vector<8xf32>
    %351 = vector.multi_reduction <add>, %348, %cst_174 [1] : vector<8x32xf32> to vector<8xf32>
    %352 = vector.shape_cast %351 : vector<8xf32> to vector<8x1xf32>
    %cst_175 = arith.constant 3.200000e+01 : f32
    %353 = vector.broadcast %cst_175 : f32 to vector<8x1xf32>
    %354 = arith.divf %352, %353 : vector<8x1xf32>
    %355 = vector.broadcast %354 : vector<8x1xf32> to vector<8x32xf32>
    %356 = arith.subf %348, %355 : vector<8x32xf32>
    %357 = arith.mulf %356, %356 : vector<8x32xf32>
    %cst_176 = arith.constant dense<0.000000e+00> : vector<8xf32>
    %358 = vector.multi_reduction <add>, %357, %cst_176 [1] : vector<8x32xf32> to vector<8xf32>
    %359 = vector.shape_cast %358 : vector<8xf32> to vector<8x1xf32>
    %cst_177 = arith.constant 3.200000e+01 : f32
    %360 = vector.broadcast %cst_177 : f32 to vector<8x1xf32>
    %361 = arith.divf %359, %360 : vector<8x1xf32>
    %362 = vector.broadcast %354 : vector<8x1xf32> to vector<8x32xf32>
    %363 = arith.subf %348, %362 : vector<8x32xf32>
    %cst_178 = arith.constant 9.99999996E-13 : f32
    %364 = vector.broadcast %cst_178 : f32 to vector<8x1xf32>
    %365 = arith.addf %361, %364 : vector<8x1xf32>
    %366 = math.rsqrt %365 : vector<8x1xf32>
    %367 = vector.broadcast %366 : vector<8x1xf32> to vector<8x32xf32>
    %368 = arith.mulf %363, %367 : vector<8x32xf32>
    %369 = vector.broadcast %349 : vector<1x32xf32> to vector<8x32xf32>
    %370 = arith.mulf %368, %369 : vector<8x32xf32>
    %371 = vector.broadcast %350 : vector<1x32xf32> to vector<8x32xf32>
    %372 = arith.addf %370, %371 : vector<8x32xf32>
    %373 = vector.shape_cast %372 : vector<8x32xf32> to vector<1x8x32xf32>
    %c0_179 = arith.constant 0 : index
    %c0_180 = arith.constant 0 : index
    %c0_181 = arith.constant 0 : index
    %374 = vector.load %arg39[%c0_179, %c0_180, %c0_181] : memref<1x8x32xf32, #tpu.memory_space<vmem>>, vector<1x8x32xf32>
    tpu.vector_store %arg39[%c0_179, %c0_180, %c0_181], %373 {strides = array<i32>} : memref<1x8x32xf32, #tpu.memory_space<vmem>>, vector<1x8x32xf32>,
    return
  }
  func.func @transform_0(%arg0: i32) -> (i32, i32, i32) {
    %c0_i32 = arith.constant 0 : i32
    %c0_i32_0 = arith.constant 0 : i32
    %c0_i32_1 = arith.constant 0 : i32
    return %arg0, %c0_i32, %c0_i32_0 : i32, i32, i32
  }
  func.func @transform_1(%arg0: i32) -> (i32, i32, i32) {
    %c0_i32 = arith.constant 0 : i32
    %c0_i32_0 = arith.constant 0 : i32
    %c0_i32_1 = arith.constant 0 : i32
    return %arg0, %c0_i32, %c0_i32_0 : i32, i32, i32
  }
  func.func @transform_2(%arg0: i32) -> (i32, i32) {
    %c0_i32 = arith.constant 0 : i32
    %c0_i32_0 = arith.constant 0 : i32
    %c0_i32_1 = arith.constant 0 : i32
    return %c0_i32, %c0_i32_0 : i32, i32
  }
  func.func @transform_3(%arg0: i32) -> (i32, i32) {
    %c0_i32 = arith.constant 0 : i32
    %c0_i32_0 = arith.constant 0 : i32
    %c0_i32_1 = arith.constant 0 : i32
    return %c0_i32, %c0_i32_0 : i32, i32
  }
  func.func @transform_4(%arg0: i32) -> (i32, i32) {
    %c0_i32 = arith.constant 0 : i32
    %c0_i32_0 = arith.constant 0 : i32
    %c0_i32_1 = arith.constant 0 : i32
    return %c0_i32, %c0_i32_0 : i32, i32
  }
  func.func @transform_5(%arg0: i32) -> (i32, i32) {
    %c0_i32 = arith.constant 0 : i32
    %c0_i32_0 = arith.constant 0 : i32
    %c0_i32_1 = arith.constant 0 : i32
    return %c0_i32, %c0_i32_0 : i32, i32
  }
  func.func @transform_6(%arg0: i32) -> (i32, i32) {
    %c0_i32 = arith.constant 0 : i32
    %c0_i32_0 = arith.constant 0 : i32
    %c0_i32_1 = arith.constant 0 : i32
    return %c0_i32, %c0_i32_0 : i32, i32
  }
  func.func @transform_7(%arg0: i32) -> (i32, i32) {
    %c0_i32 = arith.constant 0 : i32
    %c0_i32_0 = arith.constant 0 : i32
    %c0_i32_1 = arith.constant 0 : i32
    return %c0_i32, %c0_i32_0 : i32, i32
  }
  func.func @transform_8(%arg0: i32) -> (i32, i32) {
    %c0_i32 = arith.constant 0 : i32
    %c0_i32_0 = arith.constant 0 : i32
    %c0_i32_1 = arith.constant 0 : i32
    return %c0_i32, %c0_i32_0 : i32, i32
  }
  func.func @transform_9(%arg0: i32) -> (i32, i32) {
    %c0_i32 = arith.constant 0 : i32
    %c0_i32_0 = arith.constant 0 : i32
    %c0_i32_1 = arith.constant 0 : i32
    return %c0_i32, %c0_i32_0 : i32, i32
  }
  func.func @transform_10(%arg0: i32) -> (i32, i32) {
    %c0_i32 = arith.constant 0 : i32
    %c0_i32_0 = arith.constant 0 : i32
    %c0_i32_1 = arith.constant 0 : i32
    return %c0_i32, %c0_i32_0 : i32, i32
  }
  func.func @transform_11(%arg0: i32) -> (i32, i32) {
    %c0_i32 = arith.constant 0 : i32
    %c0_i32_0 = arith.constant 0 : i32
    %c0_i32_1 = arith.constant 0 : i32
    return %c0_i32, %c0_i32_0 : i32, i32
  }
  func.func @transform_12(%arg0: i32) -> (i32, i32) {
    %c0_i32 = arith.constant 0 : i32
    %c0_i32_0 = arith.constant 0 : i32
    %c0_i32_1 = arith.constant 0 : i32
    return %c0_i32, %c0_i32_0 : i32, i32
  }
  func.func @transform_13(%arg0: i32) -> (i32, i32) {
    %c0_i32 = arith.constant 0 : i32
    %c0_i32_0 = arith.constant 0 : i32
    %c0_i32_1 = arith.constant 0 : i32
    return %c0_i32, %c0_i32_0 : i32, i32
  }
  func.func @transform_14(%arg0: i32) -> (i32, i32) {
    %c0_i32 = arith.constant 0 : i32
    %c0_i32_0 = arith.constant 0 : i32
    %c0_i32_1 = arith.constant 0 : i32
    return %c0_i32, %c0_i32_0 : i32, i32
  }
  func.func @transform_15(%arg0: i32) -> (i32, i32) {
    %c0_i32 = arith.constant 0 : i32
    %c0_i32_0 = arith.constant 0 : i32
    %c0_i32_1 = arith.constant 0 : i32
    return %c0_i32, %c0_i32_0 : i32, i32
  }
  func.func @transform_16(%arg0: i32) -> (i32, i32) {
    %c0_i32 = arith.constant 0 : i32
    %c0_i32_0 = arith.constant 0 : i32
    %c0_i32_1 = arith.constant 0 : i32
    return %c0_i32, %c0_i32_0 : i32, i32
  }
  func.func @transform_17(%arg0: i32) -> (i32, i32) {
    %c0_i32 = arith.constant 0 : i32
    %c0_i32_0 = arith.constant 0 : i32
    %c0_i32_1 = arith.constant 0 : i32
    return %c0_i32, %c0_i32_0 : i32, i32
  }
  func.func @transform_18(%arg0: i32) -> (i32, i32) {
    %c0_i32 = arith.constant 0 : i32
    %c0_i32_0 = arith.constant 0 : i32
    %c0_i32_1 = arith.constant 0 : i32
    return %c0_i32, %c0_i32_0 : i32, i32
  }
  func.func @transform_19(%arg0: i32) -> (i32, i32) {
    %c0_i32 = arith.constant 0 : i32
    %c0_i32_0 = arith.constant 0 : i32
    %c0_i32_1 = arith.constant 0 : i32
    return %c0_i32, %c0_i32_0 : i32, i32
  }
  func.func @transform_20(%arg0: i32) -> (i32, i32) {
    %c0_i32 = arith.constant 0 : i32
    %c0_i32_0 = arith.constant 0 : i32
    %c0_i32_1 = arith.constant 0 : i32
    return %c0_i32, %c0_i32_0 : i32, i32
  }
  func.func @transform_21(%arg0: i32) -> (i32, i32) {
    %c0_i32 = arith.constant 0 : i32
    %c0_i32_0 = arith.constant 0 : i32
    %c0_i32_1 = arith.constant 0 : i32
    return %c0_i32, %c0_i32_0 : i32, i32
  }
  func.func @transform_22(%arg0: i32) -> (i32, i32) {
    %c0_i32 = arith.constant 0 : i32
    %c0_i32_0 = arith.constant 0 : i32
    %c0_i32_1 = arith.constant 0 : i32
    return %c0_i32, %c0_i32_0 : i32, i32
  }
  func.func @transform_23(%arg0: i32) -> (i32, i32) {
    %c0_i32 = arith.constant 0 : i32
    %c0_i32_0 = arith.constant 0 : i32
    %c0_i32_1 = arith.constant 0 : i32
    return %c0_i32, %c0_i32_0 : i32, i32
  }
  func.func @transform_24(%arg0: i32) -> (i32, i32, i32) {
    %c0_i32 = arith.constant 0 : i32
    %c0_i32_0 = arith.constant 0 : i32
    %c0_i32_1 = arith.constant 0 : i32
    %c0_i32_2 = arith.constant 0 : i32
    return %c0_i32, %c0_i32_0, %c0_i32_1 : i32, i32, i32
  }
  func.func @transform_25(%arg0: i32) -> (i32, i32) {
    %c0_i32 = arith.constant 0 : i32
    %c0_i32_0 = arith.constant 0 : i32
    %c0_i32_1 = arith.constant 0 : i32
    return %c0_i32, %c0_i32_0 : i32, i32
  }
  func.func @transform_26(%arg0: i32) -> (i32, i32) {
    %c0_i32 = arith.constant 0 : i32
    %c0_i32_0 = arith.constant 0 : i32
    %c0_i32_1 = arith.constant 0 : i32
    return %c0_i32, %c0_i32_0 : i32, i32
  }
  func.func @transform_27(%arg0: i32) -> (i32, i32) {
    %c0_i32 = arith.constant 0 : i32
    %c0_i32_0 = arith.constant 0 : i32
    %c0_i32_1 = arith.constant 0 : i32
    return %c0_i32, %c0_i32_0 : i32, i32
  }
  func.func @transform_28(%arg0: i32) -> (i32, i32) {
    %c0_i32 = arith.constant 0 : i32
    %c0_i32_0 = arith.constant 0 : i32
    %c0_i32_1 = arith.constant 0 : i32
    return %c0_i32, %c0_i32_0 : i32, i32
  }
  func.func @transform_29(%arg0: i32) -> (i32, i32) {
    %c0_i32 = arith.constant 0 : i32
    %c0_i32_0 = arith.constant 0 : i32
    %c0_i32_1 = arith.constant 0 : i32
    return %c0_i32, %c0_i32_0 : i32, i32
  }
  func.func @transform_30(%arg0: i32) -> (i32, i32) {
    %c0_i32 = arith.constant 0 : i32
    %c0_i32_0 = arith.constant 0 : i32
    %c0_i32_1 = arith.constant 0 : i32
    return %c0_i32, %c0_i32_0 : i32, i32
  }
  func.func @transform_31(%arg0: i32) -> (i32, i32) {
    %c0_i32 = arith.constant 0 : i32
    %c0_i32_0 = arith.constant 0 : i32
    %c0_i32_1 = arith.constant 0 : i32
    return %c0_i32, %c0_i32_0 : i32, i32
  }
  func.func @transform_32(%arg0: i32) -> (i32, i32) {
    %c0_i32 = arith.constant 0 : i32
    %c0_i32_0 = arith.constant 0 : i32
    %c0_i32_1 = arith.constant 0 : i32
    return %c0_i32, %c0_i32_0 : i32, i32
  }
  func.func @transform_33(%arg0: i32) -> (i32, i32) {
    %c0_i32 = arith.constant 0 : i32
    %c0_i32_0 = arith.constant 0 : i32
    %c0_i32_1 = arith.constant 0 : i32
    return %c0_i32, %c0_i32_0 : i32, i32
  }
  func.func @transform_34(%arg0: i32) -> (i32, i32) {
    %c0_i32 = arith.constant 0 : i32
    %c0_i32_0 = arith.constant 0 : i32
    %c0_i32_1 = arith.constant 0 : i32
    return %c0_i32, %c0_i32_0 : i32, i32
  }
  func.func @transform_35(%arg0: i32) -> (i32, i32) {
    %c0_i32 = arith.constant 0 : i32
    %c0_i32_0 = arith.constant 0 : i32
    %c0_i32_1 = arith.constant 0 : i32
    return %c0_i32, %c0_i32_0 : i32, i32
  }
  func.func @transform_36(%arg0: i32) -> (i32, i32) {
    %c0_i32 = arith.constant 0 : i32
    %c0_i32_0 = arith.constant 0 : i32
    %c0_i32_1 = arith.constant 0 : i32
    return %c0_i32, %c0_i32_0 : i32, i32
  }
  func.func @transform_37(%arg0: i32) -> (i32, i32) {
    %c0_i32 = arith.constant 0 : i32
    %c0_i32_0 = arith.constant 0 : i32
    %c0_i32_1 = arith.constant 0 : i32
    return %c0_i32, %c0_i32_0 : i32, i32
  }
  func.func @transform_38(%arg0: i32) -> (i32, i32, i32) {
    %c0_i32 = arith.constant 0 : i32
    %c0_i32_0 = arith.constant 0 : i32
    %c0_i32_1 = arith.constant 0 : i32
    return %arg0, %c0_i32, %c0_i32_0 : i32, i32, i32
  }
}

module attributes {stable_mosaic.version = 11 : i64} {
  func.func @_encoder_layer_kernel(%arg0: i32, %arg1: memref<1x8x32xf32, #tpu.memory_space<vmem>>, %arg2: memref<1x1x8xf32, #tpu.memory_space<vmem>>, %arg3: memref<1x32xf32, #tpu.memory_space<vmem>>, %arg4: memref<1x32xf32, #tpu.memory_space<vmem>>, %arg5: memref<32x64xf32, #tpu.memory_space<vmem>>, %arg6: memref<1x64xf32, #tpu.memory_space<vmem>>, %arg7: memref<64x32xf32, #tpu.memory_space<vmem>>, %arg8: memref<1x32xf32, #tpu.memory_space<vmem>>, %arg9: memref<1x32xf32, #tpu.memory_space<vmem>>, %arg10: memref<1x32xf32, #tpu.memory_space<vmem>>, %arg11: memref<32x32xf32, #tpu.memory_space<vmem>>, %arg12: memref<1x32xf32, #tpu.memory_space<vmem>>, %arg13: memref<32x32xf32, #tpu.memory_space<vmem>>, %arg14: memref<1x32xf32, #tpu.memory_space<vmem>>, %arg15: memref<32x32xf32, #tpu.memory_space<vmem>>, %arg16: memref<1x32xf32, #tpu.memory_space<vmem>>, %arg17: memref<32x32xf32, #tpu.memory_space<vmem>>, %arg18: memref<1x32xf32, #tpu.memory_space<vmem>>, %arg19: memref<1x32xf32, #tpu.memory_space<vmem>>, %arg20: memref<1x32xf32, #tpu.memory_space<vmem>>, %arg21: memref<32x32xf32, #tpu.memory_space<vmem>>, %arg22: memref<1x32xf32, #tpu.memory_space<vmem>>, %arg23: memref<32x32xf32, #tpu.memory_space<vmem>>, %arg24: memref<1x32xf32, #tpu.memory_space<vmem>>, %arg25: memref<7x1x32xf32, #tpu.memory_space<vmem>>, %arg26: memref<1x32xf32, #tpu.memory_space<vmem>>, %arg27: memref<1x32xf32, #tpu.memory_space<vmem>>, %arg28: memref<1x32xf32, #tpu.memory_space<vmem>>, %arg29: memref<32x32xf32, #tpu.memory_space<vmem>>, %arg30: memref<1x32xf32, #tpu.memory_space<vmem>>, %arg31: memref<1x32xf32, #tpu.memory_space<vmem>>, %arg32: memref<1x32xf32, #tpu.memory_space<vmem>>, %arg33: memref<32x64xf32, #tpu.memory_space<vmem>>, %arg34: memref<1x64xf32, #tpu.memory_space<vmem>>, %arg35: memref<64x32xf32, #tpu.memory_space<vmem>>, %arg36: memref<1x32xf32, #tpu.memory_space<vmem>>, %arg37: memref<1x32xf32, #tpu.memory_space<vmem>>, %arg38: memref<1x32xf32, #tpu.memory_space<vmem>>, %arg39: memref<1x8x32xf32, #tpu.memory_space<vmem>>, %arg40: memref<8x32xf32, #tpu.memory_space<vmem>>, %arg41: memref<1x14x32xf32, #tpu.memory_space<vmem>>) attributes {dimension_semantics = [#tpu.dimension_semantics<parallel>], iteration_bounds = array<i64: 2>, scalar_prefetch = 0 : i64, scratch_operands = 2 : i64, tpu.core_type = #tpu.core_type<tc>, window_params = [{transform_indices = @transform_0, window_bounds = array<i64: 1, 8, 32>}, {transform_indices = @transform_1, window_bounds = array<i64: 1, 1, 8>}, {pipeline_mode = #tpu.pipeline_mode<synchronous>, transform_indices = @transform_2, window_bounds = array<i64: 1, 32>}, {pipeline_mode = #tpu.pipeline_mode<synchronous>, transform_indices = @transform_3, window_bounds = array<i64: 1, 32>}, {pipeline_mode = #tpu.pipeline_mode<synchronous>, transform_indices = @transform_4, window_bounds = array<i64: 32, 64>}, {pipeline_mode = #tpu.pipeline_mode<synchronous>, transform_indices = @transform_5, window_bounds = array<i64: 1, 64>}, {pipeline_mode = #tpu.pipeline_mode<synchronous>, transform_indices = @transform_6, window_bounds = array<i64: 64, 32>}, {pipeline_mode = #tpu.pipeline_mode<synchronous>, transform_indices = @transform_7, window_bounds = array<i64: 1, 32>}, {pipeline_mode = #tpu.pipeline_mode<synchronous>, transform_indices = @transform_8, window_bounds = array<i64: 1, 32>}, {pipeline_mode = #tpu.pipeline_mode<synchronous>, transform_indices = @transform_9, window_bounds = array<i64: 1, 32>}, {pipeline_mode = #tpu.pipeline_mode<synchronous>, transform_indices = @transform_10, window_bounds = array<i64: 32, 32>}, {pipeline_mode = #tpu.pipeline_mode<synchronous>, transform_indices = @transform_11, window_bounds = array<i64: 1, 32>}, {pipeline_mode = #tpu.pipeline_mode<synchronous>, transform_indices = @transform_12, window_bounds = array<i64: 32, 32>}, {pipeline_mode = #tpu.pipeline_mode<synchronous>, transform_indices = @transform_13, window_bounds = array<i64: 1, 32>}, {pipeline_mode = #tpu.pipeline_mode<synchronous>, transform_indices = @transform_14, window_bounds = array<i64: 32, 32>}, {pipeline_mode = #tpu.pipeline_mode<synchronous>, transform_indices = @transform_15, window_bounds = array<i64: 1, 32>}, {pipeline_mode = #tpu.pipeline_mode<synchronous>, transform_indices = @transform_16, window_bounds = array<i64: 32, 32>}, {pipeline_mode = #tpu.pipeline_mode<synchronous>, transform_indices = @transform_17, window_bounds = array<i64: 1, 32>}, {pipeline_mode = #tpu.pipeline_mode<synchronous>, transform_indices = @transform_18, window_bounds = array<i64: 1, 32>}, {pipeline_mode = #tpu.pipeline_mode<synchronous>, transform_indices = @transform_19, window_bounds = array<i64: 1, 32>}, {pipeline_mode = #tpu.pipeline_mode<synchronous>, transform_indices = @transform_20, window_bounds = array<i64: 32, 32>}, {pipeline_mode = #tpu.pipeline_mode<synchronous>, transform_indices = @transform_21, window_bounds = array<i64: 1, 32>}, {pipeline_mode = #tpu.pipeline_mode<synchronous>, transform_indices = @transform_22, window_bounds = array<i64: 32, 32>}, {pipeline_mode = #tpu.pipeline_mode<synchronous>, transform_indices = @transform_23, window_bounds = array<i64: 1, 32>}, {pipeline_mode = #tpu.pipeline_mode<synchronous>, transform_indices = @transform_24, window_bounds = array<i64: 7, 1, 32>}, {pipeline_mode = #tpu.pipeline_mode<synchronous>, transform_indices = @transform_25, window_bounds = array<i64: 1, 32>}, {pipeline_mode = #tpu.pipeline_mode<synchronous>, transform_indices = @transform_26, window_bounds = array<i64: 1, 32>}, {pipeline_mode = #tpu.pipeline_mode<synchronous>, transform_indices = @transform_27, window_bounds = array<i64: 1, 32>}, {pipeline_mode = #tpu.pipeline_mode<synchronous>, transform_indices = @transform_28, window_bounds = array<i64: 32, 32>}, {pipeline_mode = #tpu.pipeline_mode<synchronous>, transform_indices = @transform_29, window_bounds = array<i64: 1, 32>}, {pipeline_mode = #tpu.pipeline_mode<synchronous>, transform_indices = @transform_30, window_bounds = array<i64: 1, 32>}, {pipeline_mode = #tpu.pipeline_mode<synchronous>, transform_indices = @transform_31, window_bounds = array<i64: 1, 32>}, {pipeline_mode = #tpu.pipeline_mode<synchronous>, transform_indices = @transform_32, window_bounds = array<i64: 32, 64>}, {pipeline_mode = #tpu.pipeline_mode<synchronous>, transform_indices = @transform_33, window_bounds = array<i64: 1, 64>}, {pipeline_mode = #tpu.pipeline_mode<synchronous>, transform_indices = @transform_34, window_bounds = array<i64: 64, 32>}, {pipeline_mode = #tpu.pipeline_mode<synchronous>, transform_indices = @transform_35, window_bounds = array<i64: 1, 32>}, {pipeline_mode = #tpu.pipeline_mode<synchronous>, transform_indices = @transform_36, window_bounds = array<i64: 1, 32>}, {pipeline_mode = #tpu.pipeline_mode<synchronous>, transform_indices = @transform_37, window_bounds = array<i64: 1, 32>}, {transform_indices = @transform_38, window_bounds = array<i64: 1, 8, 32>}]} {
    %c0 = arith.constant 0 : index
    %c0_0 = arith.constant 0 : index
    %c0_1 = arith.constant 0 : index
    %0 = vector.load %arg1[%c0, %c0_0, %c0_1] : memref<1x8x32xf32, #tpu.memory_space<vmem>>, vector<1x8x32xf32>
    %1 = vector.shape_cast %0 : vector<1x8x32xf32> to vector<8x32xf32>
    %c0_2 = arith.constant 0 : index
    %c0_3 = arith.constant 0 : index
    %2 = vector.load %arg3[%c0_2, %c0_3] : memref<1x32xf32, #tpu.memory_space<vmem>>, vector<1x32xf32>
    %c0_4 = arith.constant 0 : index
    %c0_5 = arith.constant 0 : index
    %3 = vector.load %arg4[%c0_4, %c0_5] : memref<1x32xf32, #tpu.memory_space<vmem>>, vector<1x32xf32>
    %cst = arith.constant dense<0.000000e+00> : vector<8xf32>
    %4 = vector.multi_reduction <add>, %1, %cst [1] : vector<8x32xf32> to vector<8xf32>
    %5 = vector.shape_cast %4 : vector<8xf32> to vector<8x1xf32>
    %cst_6 = arith.constant 3.200000e+01 : f32
    %6 = vector.broadcast %cst_6 : f32 to vector<8x1xf32>
    %7 = arith.divf %5, %6 : vector<8x1xf32>
    %8 = vector.broadcast %7 : vector<8x1xf32> to vector<8x32xf32>
    %9 = arith.subf %1, %8 : vector<8x32xf32>
    %10 = arith.mulf %9, %9 : vector<8x32xf32>
    %cst_7 = arith.constant dense<0.000000e+00> : vector<8xf32>
    %11 = vector.multi_reduction <add>, %10, %cst_7 [1] : vector<8x32xf32> to vector<8xf32>
    %12 = vector.shape_cast %11 : vector<8xf32> to vector<8x1xf32>
    %cst_8 = arith.constant 3.200000e+01 : f32
    %13 = vector.broadcast %cst_8 : f32 to vector<8x1xf32>
    %14 = arith.divf %12, %13 : vector<8x1xf32>
    %15 = vector.broadcast %7 : vector<8x1xf32> to vector<8x32xf32>
    %16 = arith.subf %1, %15 : vector<8x32xf32>
    %cst_9 = arith.constant 9.99999996E-13 : f32
    %17 = vector.broadcast %cst_9 : f32 to vector<8x1xf32>
    %18 = arith.addf %14, %17 : vector<8x1xf32>
    %19 = math.rsqrt %18 : vector<8x1xf32>
    %20 = vector.broadcast %19 : vector<8x1xf32> to vector<8x32xf32>
    %21 = arith.mulf %16, %20 : vector<8x32xf32>
    %22 = vector.broadcast %2 : vector<1x32xf32> to vector<8x32xf32>
    %23 = arith.mulf %21, %22 : vector<8x32xf32>
    %24 = vector.broadcast %3 : vector<1x32xf32> to vector<8x32xf32>
    %25 = arith.addf %23, %24 : vector<8x32xf32>
    %c0_10 = arith.constant 0 : index
    %c0_11 = arith.constant 0 : index
    %26 = vector.load %arg5[%c0_10, %c0_11] : memref<32x64xf32, #tpu.memory_space<vmem>>, vector<32x64xf32>
    %cst_12 = arith.constant dense<0.000000e+00> : vector<8x64xf32>
    %27 = tpu.matmul %25, %26, %cst_12 {dimension_numbers = #tpu.dot_dimension_numbers<[1], [0], [0], [1], [0, 0, 1, 1], [], []>} : vector<8x32xf32>, vector<32x64xf32>, vector<8x64xf32> -> vector<8x64xf32>
    %c0_13 = arith.constant 0 : index
    %c0_14 = arith.constant 0 : index
    %28 = vector.load %arg6[%c0_13, %c0_14] : memref<1x64xf32, #tpu.memory_space<vmem>>, vector<1x64xf32>
    %29 = vector.broadcast %28 : vector<1x64xf32> to vector<8x64xf32>
    %30 = arith.addf %27, %29 : vector<8x64xf32>
    %cst_15 = arith.constant 0.000000e+00 : f32
    %31 = vector.broadcast %cst_15 : f32 to vector<8x64xf32>
    %32 = arith.maximumf %30, %31 : vector<8x64xf32>
    %c0_16 = arith.constant 0 : index
    %c0_17 = arith.constant 0 : index
    %33 = vector.load %arg7[%c0_16, %c0_17] : memref<64x32xf32, #tpu.memory_space<vmem>>, vector<64x32xf32>
    %cst_18 = arith.constant dense<0.000000e+00> : vector<8x32xf32>
    %34 = tpu.matmul %32, %33, %cst_18 {dimension_numbers = #tpu.dot_dimension_numbers<[1], [0], [0], [1], [0, 0, 1, 1], [], []>} : vector<8x64xf32>, vector<64x32xf32>, vector<8x32xf32> -> vector<8x32xf32>
    %c0_19 = arith.constant 0 : index
    %c0_20 = arith.constant 0 : index
    %35 = vector.load %arg8[%c0_19, %c0_20] : memref<1x32xf32, #tpu.memory_space<vmem>>, vector<1x32xf32>
    %36 = vector.broadcast %35 : vector<1x32xf32> to vector<8x32xf32>
    %37 = arith.addf %34, %36 : vector<8x32xf32>
    %cst_21 = arith.constant 5.000000e-01 : f32
    %38 = vector.broadcast %cst_21 : f32 to vector<8x32xf32>
    %39 = arith.mulf %38, %37 : vector<8x32xf32>
    %40 = arith.addf %1, %39 : vector<8x32xf32>
    %c0_22 = arith.constant 0 : index
    %c0_23 = arith.constant 0 : index
    %41 = vector.load %arg9[%c0_22, %c0_23] : memref<1x32xf32, #tpu.memory_space<vmem>>, vector<1x32xf32>
    %c0_24 = arith.constant 0 : index
    %c0_25 = arith.constant 0 : index
    %42 = vector.load %arg10[%c0_24, %c0_25] : memref<1x32xf32, #tpu.memory_space<vmem>>, vector<1x32xf32>
    %cst_26 = arith.constant dense<0.000000e+00> : vector<8xf32>
    %43 = vector.multi_reduction <add>, %40, %cst_26 [1] : vector<8x32xf32> to vector<8xf32>
    %44 = vector.shape_cast %43 : vector<8xf32> to vector<8x1xf32>
    %cst_27 = arith.constant 3.200000e+01 : f32
    %45 = vector.broadcast %cst_27 : f32 to vector<8x1xf32>
    %46 = arith.divf %44, %45 : vector<8x1xf32>
    %47 = vector.broadcast %46 : vector<8x1xf32> to vector<8x32xf32>
    %48 = arith.subf %40, %47 : vector<8x32xf32>
    %49 = arith.mulf %48, %48 : vector<8x32xf32>
    %cst_28 = arith.constant dense<0.000000e+00> : vector<8xf32>
    %50 = vector.multi_reduction <add>, %49, %cst_28 [1] : vector<8x32xf32> to vector<8xf32>
    %51 = vector.shape_cast %50 : vector<8xf32> to vector<8x1xf32>
    %cst_29 = arith.constant 3.200000e+01 : f32
    %52 = vector.broadcast %cst_29 : f32 to vector<8x1xf32>
    %53 = arith.divf %51, %52 : vector<8x1xf32>
    %54 = vector.broadcast %46 : vector<8x1xf32> to vector<8x32xf32>
    %55 = arith.subf %40, %54 : vector<8x32xf32>
    %cst_30 = arith.constant 9.99999996E-13 : f32
    %56 = vector.broadcast %cst_30 : f32 to vector<8x1xf32>
    %57 = arith.addf %53, %56 : vector<8x1xf32>
    %58 = math.rsqrt %57 : vector<8x1xf32>
    %59 = vector.broadcast %58 : vector<8x1xf32> to vector<8x32xf32>
    %60 = arith.mulf %55, %59 : vector<8x32xf32>
    %61 = vector.broadcast %41 : vector<1x32xf32> to vector<8x32xf32>
    %62 = arith.mulf %60, %61 : vector<8x32xf32>
    %63 = vector.broadcast %42 : vector<1x32xf32> to vector<8x32xf32>
    %64 = arith.addf %62, %63 : vector<8x32xf32>
    %c0_31 = arith.constant 0 : index
    %c0_32 = arith.constant 0 : index
    %65 = vector.load %arg11[%c0_31, %c0_32] : memref<32x32xf32, #tpu.memory_space<vmem>>, vector<32x32xf32>
    %cst_33 = arith.constant dense<0.000000e+00> : vector<8x32xf32>
    %66 = tpu.matmul %64, %65, %cst_33 {dimension_numbers = #tpu.dot_dimension_numbers<[1], [0], [0], [1], [0, 0, 1, 1], [], []>} : vector<8x32xf32>, vector<32x32xf32>, vector<8x32xf32> -> vector<8x32xf32>
    %c0_34 = arith.constant 0 : index
    %c0_35 = arith.constant 0 : index
    %67 = vector.load %arg12[%c0_34, %c0_35] : memref<1x32xf32, #tpu.memory_space<vmem>>, vector<1x32xf32>
    %68 = vector.broadcast %67 : vector<1x32xf32> to vector<8x32xf32>
    %69 = arith.addf %66, %68 : vector<8x32xf32>
    %c0_36 = arith.constant 0 : index
    %c0_37 = arith.constant 0 : index
    %70 = vector.load %arg13[%c0_36, %c0_37] : memref<32x32xf32, #tpu.memory_space<vmem>>, vector<32x32xf32>
    %cst_38 = arith.constant dense<0.000000e+00> : vector<8x32xf32>
    %71 = tpu.matmul %64, %70, %cst_38 {dimension_numbers = #tpu.dot_dimension_numbers<[1], [0], [0], [1], [0, 0, 1, 1], [], []>} : vector<8x32xf32>, vector<32x32xf32>, vector<8x32xf32> -> vector<8x32xf32>
    %c0_39 = arith.constant 0 : index
    %c0_40 = arith.constant 0 : index
    %72 = vector.load %arg14[%c0_39, %c0_40] : memref<1x32xf32, #tpu.memory_space<vmem>>, vector<1x32xf32>
    %73 = vector.broadcast %72 : vector<1x32xf32> to vector<8x32xf32>
    %74 = arith.addf %71, %73 : vector<8x32xf32>
    %c0_41 = arith.constant 0 : index
    %c0_42 = arith.constant 0 : index
    %75 = vector.load %arg15[%c0_41, %c0_42] : memref<32x32xf32, #tpu.memory_space<vmem>>, vector<32x32xf32>
    %cst_43 = arith.constant dense<0.000000e+00> : vector<8x32xf32>
    %76 = tpu.matmul %64, %75, %cst_43 {dimension_numbers = #tpu.dot_dimension_numbers<[1], [0], [0], [1], [0, 0, 1, 1], [], []>} : vector<8x32xf32>, vector<32x32xf32>, vector<8x32xf32> -> vector<8x32xf32>
    %c0_44 = arith.constant 0 : index
    %c0_45 = arith.constant 0 : index
    %77 = vector.load %arg16[%c0_44, %c0_45] : memref<1x32xf32, #tpu.memory_space<vmem>>, vector<1x32xf32>
    %78 = vector.broadcast %77 : vector<1x32xf32> to vector<8x32xf32>
    %79 = arith.addf %76, %78 : vector<8x32xf32>
    %c0_46 = arith.constant 0 : index
    %c0_47 = arith.constant 0 : index
    %c0_48 = arith.constant 0 : index
    %80 = vector.load %arg2[%c0_46, %c0_47, %c0_48] : memref<1x1x8xf32, #tpu.memory_space<vmem>>, vector<1x1x8xf32>
    %cst_49 = arith.constant 5.000000e-01 : f32
    %81 = vector.broadcast %cst_49 : f32 to vector<1x1x8xf32>
    %82 = arith.cmpf ogt, %80, %81 : vector<1x1x8xf32>
    %83 = vector.shape_cast %82 : vector<1x1x8xi1> to vector<1x8xi1>
    %84 = vector.extract_strided_slice %69 {offsets = [0, 0], sizes = [8, 8], strides = [1, 1]} : vector<8x32xf32> to vector<8x8xf32>
    %85 = vector.extract_strided_slice %74 {offsets = [0, 0], sizes = [8, 8], strides = [1, 1]} : vector<8x32xf32> to vector<8x8xf32>
    %86 = tpu.transpose %85, [1, 0] : vector<8x8xf32> -> vector<8x8xf32>
    %cst_50 = arith.constant dense<0.000000e+00> : vector<8x8xf32>
    %87 = tpu.matmul %84, %86, %cst_50 {dimension_numbers = #tpu.dot_dimension_numbers<[1], [0], [0], [1], [0, 0, 1, 1], [], []>} : vector<8x8xf32>, vector<8x8xf32>, vector<8x8xf32> -> vector<8x8xf32>
    %cst_51 = arith.constant 0.353553385 : f32
    %88 = vector.broadcast %cst_51 : f32 to vector<8x8xf32>
    %89 = arith.mulf %87, %88 : vector<8x8xf32>
    %cst_52 = arith.constant -3.40282347E+38 : f32
    %90 = vector.shape_cast %83 : vector<1x8xi1> to vector<1x8xi1>
    %91 = vector.broadcast %90 : vector<1x8xi1> to vector<8x8xi1>
    %92 = vector.broadcast %cst_52 : f32 to vector<8x8xf32>
    %93 = arith.select %91, %89, %92 : vector<8x8xi1>, vector<8x8xf32>
    %cst_53 = arith.constant dense<0xFF800000> : vector<8xf32>
    %94 = vector.multi_reduction <maximumf>, %93, %cst_53 [1] : vector<8x8xf32> to vector<8xf32>
    %95 = vector.shape_cast %94 : vector<8xf32> to vector<8x1xf32>
    %96 = vector.broadcast %95 : vector<8x1xf32> to vector<8x8xf32>
    %97 = arith.subf %93, %96 : vector<8x8xf32>
    %98 = math.exp %97 : vector<8x8xf32>
    %cst_54 = arith.constant dense<0.000000e+00> : vector<8xf32>
    %99 = vector.multi_reduction <add>, %98, %cst_54 [1] : vector<8x8xf32> to vector<8xf32>
    %100 = vector.shape_cast %99 : vector<8xf32> to vector<8x1xf32>
    %101 = vector.broadcast %100 : vector<8x1xf32> to vector<8x8xf32>
    %102 = arith.divf %98, %101 : vector<8x8xf32>
    %cst_55 = arith.constant 0.000000e+00 : f32
    %103 = vector.shape_cast %83 : vector<1x8xi1> to vector<1x8xi1>
    %104 = vector.broadcast %103 : vector<1x8xi1> to vector<8x8xi1>
    %105 = vector.broadcast %cst_55 : f32 to vector<8x8xf32>
    %106 = arith.select %104, %102, %105 : vector<8x8xi1>, vector<8x8xf32>
    %107 = vector.extract_strided_slice %79 {offsets = [0, 0], sizes = [8, 8], strides = [1, 1]} : vector<8x32xf32> to vector<8x8xf32>
    %cst_56 = arith.constant dense<0.000000e+00> : vector<8x8xf32>
    %108 = tpu.matmul %106, %107, %cst_56 {dimension_numbers = #tpu.dot_dimension_numbers<[1], [0], [0], [1], [0, 0, 1, 1], [], []>} : vector<8x8xf32>, vector<8x8xf32>, vector<8x8xf32> -> vector<8x8xf32>
    %c0_57 = arith.constant 0 : index
    %c0_58 = arith.constant 0 : index
    %109 = vector.load %arg40[%c0_57, %c0_58] : memref<8x32xf32, #tpu.memory_space<vmem>>, vector<8x8xf32>
    tpu.vector_store %arg40[%c0_57, %c0_58], %108 {strides = array<i32>} : memref<8x32xf32, #tpu.memory_space<vmem>>, vector<8x8xf32>,
    %110 = vector.extract_strided_slice %69 {offsets = [0, 8], sizes = [8, 8], strides = [1, 1]} : vector<8x32xf32> to vector<8x8xf32>
    %111 = vector.extract_strided_slice %74 {offsets = [0, 8], sizes = [8, 8], strides = [1, 1]} : vector<8x32xf32> to vector<8x8xf32>
    %112 = tpu.transpose %111, [1, 0] : vector<8x8xf32> -> vector<8x8xf32>
    %cst_59 = arith.constant dense<0.000000e+00> : vector<8x8xf32>
    %113 = tpu.matmul %110, %112, %cst_59 {dimension_numbers = #tpu.dot_dimension_numbers<[1], [0], [0], [1], [0, 0, 1, 1], [], []>} : vector<8x8xf32>, vector<8x8xf32>, vector<8x8xf32> -> vector<8x8xf32>
    %cst_60 = arith.constant 0.353553385 : f32
    %114 = vector.broadcast %cst_60 : f32 to vector<8x8xf32>
    %115 = arith.mulf %113, %114 : vector<8x8xf32>
    %cst_61 = arith.constant -3.40282347E+38 : f32
    %116 = vector.shape_cast %83 : vector<1x8xi1> to vector<1x8xi1>
    %117 = vector.broadcast %116 : vector<1x8xi1> to vector<8x8xi1>
    %118 = vector.broadcast %cst_61 : f32 to vector<8x8xf32>
    %119 = arith.select %117, %115, %118 : vector<8x8xi1>, vector<8x8xf32>
    %cst_62 = arith.constant dense<0xFF800000> : vector<8xf32>
    %120 = vector.multi_reduction <maximumf>, %119, %cst_62 [1] : vector<8x8xf32> to vector<8xf32>
    %121 = vector.shape_cast %120 : vector<8xf32> to vector<8x1xf32>
    %122 = vector.broadcast %121 : vector<8x1xf32> to vector<8x8xf32>
    %123 = arith.subf %119, %122 : vector<8x8xf32>
    %124 = math.exp %123 : vector<8x8xf32>
    %cst_63 = arith.constant dense<0.000000e+00> : vector<8xf32>
    %125 = vector.multi_reduction <add>, %124, %cst_63 [1] : vector<8x8xf32> to vector<8xf32>
    %126 = vector.shape_cast %125 : vector<8xf32> to vector<8x1xf32>
    %127 = vector.broadcast %126 : vector<8x1xf32> to vector<8x8xf32>
    %128 = arith.divf %124, %127 : vector<8x8xf32>
    %cst_64 = arith.constant 0.000000e+00 : f32
    %129 = vector.shape_cast %83 : vector<1x8xi1> to vector<1x8xi1>
    %130 = vector.broadcast %129 : vector<1x8xi1> to vector<8x8xi1>
    %131 = vector.broadcast %cst_64 : f32 to vector<8x8xf32>
    %132 = arith.select %130, %128, %131 : vector<8x8xi1>, vector<8x8xf32>
    %133 = vector.extract_strided_slice %79 {offsets = [0, 8], sizes = [8, 8], strides = [1, 1]} : vector<8x32xf32> to vector<8x8xf32>
    %cst_65 = arith.constant dense<0.000000e+00> : vector<8x8xf32>
    %134 = tpu.matmul %132, %133, %cst_65 {dimension_numbers = #tpu.dot_dimension_numbers<[1], [0], [0], [1], [0, 0, 1, 1], [], []>} : vector<8x8xf32>, vector<8x8xf32>, vector<8x8xf32> -> vector<8x8xf32>
    %c0_66 = arith.constant 0 : index
    %c8 = arith.constant 8 : index
    %135 = vector.load %arg40[%c0_66, %c8] : memref<8x32xf32, #tpu.memory_space<vmem>>, vector<8x8xf32>
    tpu.vector_store %arg40[%c0_66, %c8], %134 {strides = array<i32>} : memref<8x32xf32, #tpu.memory_space<vmem>>, vector<8x8xf32>,
    %136 = vector.extract_strided_slice %69 {offsets = [0, 16], sizes = [8, 8], strides = [1, 1]} : vector<8x32xf32> to vector<8x8xf32>
    %137 = vector.extract_strided_slice %74 {offsets = [0, 16], sizes = [8, 8], strides = [1, 1]} : vector<8x32xf32> to vector<8x8xf32>
    %138 = tpu.transpose %137, [1, 0] : vector<8x8xf32> -> vector<8x8xf32>
    %cst_67 = arith.constant dense<0.000000e+00> : vector<8x8xf32>
    %139 = tpu.matmul %136, %138, %cst_67 {dimension_numbers = #tpu.dot_dimension_numbers<[1], [0], [0], [1], [0, 0, 1, 1], [], []>} : vector<8x8xf32>, vector<8x8xf32>, vector<8x8xf32> -> vector<8x8xf32>
    %cst_68 = arith.constant 0.353553385 : f32
    %140 = vector.broadcast %cst_68 : f32 to vector<8x8xf32>
    %141 = arith.mulf %139, %140 : vector<8x8xf32>
    %cst_69 = arith.constant -3.40282347E+38 : f32
    %142 = vector.shape_cast %83 : vector<1x8xi1> to vector<1x8xi1>
    %143 = vector.broadcast %142 : vector<1x8xi1> to vector<8x8xi1>
    %144 = vector.broadcast %cst_69 : f32 to vector<8x8xf32>
    %145 = arith.select %143, %141, %144 : vector<8x8xi1>, vector<8x8xf32>
    %cst_70 = arith.constant dense<0xFF800000> : vector<8xf32>
    %146 = vector.multi_reduction <maximumf>, %145, %cst_70 [1] : vector<8x8xf32> to vector<8xf32>
    %147 = vector.shape_cast %146 : vector<8xf32> to vector<8x1xf32>
    %148 = vector.broadcast %147 : vector<8x1xf32> to vector<8x8xf32>
    %149 = arith.subf %145, %148 : vector<8x8xf32>
    %150 = math.exp %149 : vector<8x8xf32>
    %cst_71 = arith.constant dense<0.000000e+00> : vector<8xf32>
    %151 = vector.multi_reduction <add>, %150, %cst_71 [1] : vector<8x8xf32> to vector<8xf32>
    %152 = vector.shape_cast %151 : vector<8xf32> to vector<8x1xf32>
    %153 = vector.broadcast %152 : vector<8x1xf32> to vector<8x8xf32>
    %154 = arith.divf %150, %153 : vector<8x8xf32>
    %cst_72 = arith.constant 0.000000e+00 : f32
    %155 = vector.shape_cast %83 : vector<1x8xi1> to vector<1x8xi1>
    %156 = vector.broadcast %155 : vector<1x8xi1> to vector<8x8xi1>
    %157 = vector.broadcast %cst_72 : f32 to vector<8x8xf32>
    %158 = arith.select %156, %154, %157 : vector<8x8xi1>, vector<8x8xf32>
    %159 = vector.extract_strided_slice %79 {offsets = [0, 16], sizes = [8, 8], strides = [1, 1]} : vector<8x32xf32> to vector<8x8xf32>
    %cst_73 = arith.constant dense<0.000000e+00> : vector<8x8xf32>
    %160 = tpu.matmul %158, %159, %cst_73 {dimension_numbers = #tpu.dot_dimension_numbers<[1], [0], [0], [1], [0, 0, 1, 1], [], []>} : vector<8x8xf32>, vector<8x8xf32>, vector<8x8xf32> -> vector<8x8xf32>
    %c0_74 = arith.constant 0 : index
    %c16 = arith.constant 16 : index
    %161 = vector.load %arg40[%c0_74, %c16] : memref<8x32xf32, #tpu.memory_space<vmem>>, vector<8x8xf32>
    tpu.vector_store %arg40[%c0_74, %c16], %160 {strides = array<i32>} : memref<8x32xf32, #tpu.memory_space<vmem>>, vector<8x8xf32>,
    %162 = vector.extract_strided_slice %69 {offsets = [0, 24], sizes = [8, 8], strides = [1, 1]} : vector<8x32xf32> to vector<8x8xf32>
    %163 = vector.extract_strided_slice %74 {offsets = [0, 24], sizes = [8, 8], strides = [1, 1]} : vector<8x32xf32> to vector<8x8xf32>
    %164 = tpu.transpose %163, [1, 0] : vector<8x8xf32> -> vector<8x8xf32>
    %cst_75 = arith.constant dense<0.000000e+00> : vector<8x8xf32>
    %165 = tpu.matmul %162, %164, %cst_75 {dimension_numbers = #tpu.dot_dimension_numbers<[1], [0], [0], [1], [0, 0, 1, 1], [], []>} : vector<8x8xf32>, vector<8x8xf32>, vector<8x8xf32> -> vector<8x8xf32>
    %cst_76 = arith.constant 0.353553385 : f32
    %166 = vector.broadcast %cst_76 : f32 to vector<8x8xf32>
    %167 = arith.mulf %165, %166 : vector<8x8xf32>
    %cst_77 = arith.constant -3.40282347E+38 : f32
    %168 = vector.shape_cast %83 : vector<1x8xi1> to vector<1x8xi1>
    %169 = vector.broadcast %168 : vector<1x8xi1> to vector<8x8xi1>
    %170 = vector.broadcast %cst_77 : f32 to vector<8x8xf32>
    %171 = arith.select %169, %167, %170 : vector<8x8xi1>, vector<8x8xf32>
    %cst_78 = arith.constant dense<0xFF800000> : vector<8xf32>
    %172 = vector.multi_reduction <maximumf>, %171, %cst_78 [1] : vector<8x8xf32> to vector<8xf32>
    %173 = vector.shape_cast %172 : vector<8xf32> to vector<8x1xf32>
    %174 = vector.broadcast %173 : vector<8x1xf32> to vector<8x8xf32>
    %175 = arith.subf %171, %174 : vector<8x8xf32>
    %176 = math.exp %175 : vector<8x8xf32>
    %cst_79 = arith.constant dense<0.000000e+00> : vector<8xf32>
    %177 = vector.multi_reduction <add>, %176, %cst_79 [1] : vector<8x8xf32> to vector<8xf32>
    %178 = vector.shape_cast %177 : vector<8xf32> to vector<8x1xf32>
    %179 = vector.broadcast %178 : vector<8x1xf32> to vector<8x8xf32>
    %180 = arith.divf %176, %179 : vector<8x8xf32>
    %cst_80 = arith.constant 0.000000e+00 : f32
    %181 = vector.shape_cast %83 : vector<1x8xi1> to vector<1x8xi1>
    %182 = vector.broadcast %181 : vector<1x8xi1> to vector<8x8xi1>
    %183 = vector.broadcast %cst_80 : f32 to vector<8x8xf32>
    %184 = arith.select %182, %180, %183 : vector<8x8xi1>, vector<8x8xf32>
    %185 = vector.extract_strided_slice %79 {offsets = [0, 24], sizes = [8, 8], strides = [1, 1]} : vector<8x32xf32> to vector<8x8xf32>
    %cst_81 = arith.constant dense<0.000000e+00> : vector<8x8xf32>
    %186 = tpu.matmul %184, %185, %cst_81 {dimension_numbers = #tpu.dot_dimension_numbers<[1], [0], [0], [1], [0, 0, 1, 1], [], []>} : vector<8x8xf32>, vector<8x8xf32>, vector<8x8xf32> -> vector<8x8xf32>
    %c0_82 = arith.constant 0 : index
    %c24 = arith.constant 24 : index
    %187 = vector.load %arg40[%c0_82, %c24] : memref<8x32xf32, #tpu.memory_space<vmem>>, vector<8x8xf32>
    tpu.vector_store %arg40[%c0_82, %c24], %186 {strides = array<i32>} : memref<8x32xf32, #tpu.memory_space<vmem>>, vector<8x8xf32>,
    %c0_83 = arith.constant 0 : index
    %c0_84 = arith.constant 0 : index
    %188 = vector.load %arg40[%c0_83, %c0_84] : memref<8x32xf32, #tpu.memory_space<vmem>>, vector<8x32xf32>
    %c0_85 = arith.constant 0 : index
    %c0_86 = arith.constant 0 : index
    %189 = vector.load %arg17[%c0_85, %c0_86] : memref<32x32xf32, #tpu.memory_space<vmem>>, vector<32x32xf32>
    %cst_87 = arith.constant dense<0.000000e+00> : vector<8x32xf32>
    %190 = tpu.matmul %188, %189, %cst_87 {dimension_numbers = #tpu.dot_dimension_numbers<[1], [0], [0], [1], [0, 0, 1, 1], [], []>} : vector<8x32xf32>, vector<32x32xf32>, vector<8x32xf32> -> vector<8x32xf32>
    %191 = arith.addf %40, %190 : vector<8x32xf32>
    %c0_88 = arith.constant 0 : index
    %c0_89 = arith.constant 0 : index
    %192 = vector.load %arg18[%c0_88, %c0_89] : memref<1x32xf32, #tpu.memory_space<vmem>>, vector<1x32xf32>
    %193 = vector.broadcast %192 : vector<1x32xf32> to vector<8x32xf32>
    %194 = arith.addf %191, %193 : vector<8x32xf32>
    %c0_90 = arith.constant 0 : index
    %c0_91 = arith.constant 0 : index
    %195 = vector.load %arg19[%c0_90, %c0_91] : memref<1x32xf32, #tpu.memory_space<vmem>>, vector<1x32xf32>
    %c0_92 = arith.constant 0 : index
    %c0_93 = arith.constant 0 : index
    %196 = vector.load %arg20[%c0_92, %c0_93] : memref<1x32xf32, #tpu.memory_space<vmem>>, vector<1x32xf32>
    %cst_94 = arith.constant dense<0.000000e+00> : vector<8xf32>
    %197 = vector.multi_reduction <add>, %194, %cst_94 [1] : vector<8x32xf32> to vector<8xf32>
    %198 = vector.shape_cast %197 : vector<8xf32> to vector<8x1xf32>
    %cst_95 = arith.constant 3.200000e+01 : f32
    %199 = vector.broadcast %cst_95 : f32 to vector<8x1xf32>
    %200 = arith.divf %198, %199 : vector<8x1xf32>
    %201 = vector.broadcast %200 : vector<8x1xf32> to vector<8x32xf32>
    %202 = arith.subf %194, %201 : vector<8x32xf32>
    %203 = arith.mulf %202, %202 : vector<8x32xf32>
    %cst_96 = arith.constant dense<0.000000e+00> : vector<8xf32>
    %204 = vector.multi_reduction <add>, %203, %cst_96 [1] : vector<8x32xf32> to vector<8xf32>
    %205 = vector.shape_cast %204 : vector<8xf32> to vector<8x1xf32>
    %cst_97 = arith.constant 3.200000e+01 : f32
    %206 = vector.broadcast %cst_97 : f32 to vector<8x1xf32>
    %207 = arith.divf %205, %206 : vector<8x1xf32>
    %208 = vector.broadcast %200 : vector<8x1xf32> to vector<8x32xf32>
    %209 = arith.subf %194, %208 : vector<8x32xf32>
    %cst_98 = arith.constant 9.99999996E-13 : f32
    %210 = vector.broadcast %cst_98 : f32 to vector<8x1xf32>
    %211 = arith.addf %207, %210 : vector<8x1xf32>
    %212 = math.rsqrt %211 : vector<8x1xf32>
    %213 = vector.broadcast %212 : vector<8x1xf32> to vector<8x32xf32>
    %214 = arith.mulf %209, %213 : vector<8x32xf32>
    %215 = vector.broadcast %195 : vector<1x32xf32> to vector<8x32xf32>
    %216 = arith.mulf %214, %215 : vector<8x32xf32>
    %217 = vector.broadcast %196 : vector<1x32xf32> to vector<8x32xf32>
    %218 = arith.addf %216, %217 : vector<8x32xf32>
    %c0_99 = arith.constant 0 : index
    %c0_100 = arith.constant 0 : index
    %219 = vector.load %arg21[%c0_99, %c0_100] : memref<32x32xf32, #tpu.memory_space<vmem>>, vector<32x32xf32>
    %cst_101 = arith.constant dense<0.000000e+00> : vector<8x32xf32>
    %220 = tpu.matmul %218, %219, %cst_101 {dimension_numbers = #tpu.dot_dimension_numbers<[1], [0], [0], [1], [0, 0, 1, 1], [], []>} : vector<8x32xf32>, vector<32x32xf32>, vector<8x32xf32> -> vector<8x32xf32>
    %c0_102 = arith.constant 0 : index
    %c0_103 = arith.constant 0 : index
    %221 = vector.load %arg22[%c0_102, %c0_103] : memref<1x32xf32, #tpu.memory_space<vmem>>, vector<1x32xf32>
    %222 = vector.broadcast %221 : vector<1x32xf32> to vector<8x32xf32>
    %223 = arith.addf %220, %222 : vector<8x32xf32>
    %c0_104 = arith.constant 0 : index
    %c0_105 = arith.constant 0 : index
    %224 = vector.load %arg23[%c0_104, %c0_105] : memref<32x32xf32, #tpu.memory_space<vmem>>, vector<32x32xf32>
    %cst_106 = arith.constant dense<0.000000e+00> : vector<8x32xf32>
    %225 = tpu.matmul %218, %224, %cst_106 {dimension_numbers = #tpu.dot_dimension_numbers<[1], [0], [0], [1], [0, 0, 1, 1], [], []>} : vector<8x32xf32>, vector<32x32xf32>, vector<8x32xf32> -> vector<8x32xf32>
    %c0_107 = arith.constant 0 : index
    %c0_108 = arith.constant 0 : index
    %226 = vector.load %arg24[%c0_107, %c0_108] : memref<1x32xf32, #tpu.memory_space<vmem>>, vector<1x32xf32>
    %227 = vector.broadcast %226 : vector<1x32xf32> to vector<8x32xf32>
    %228 = arith.addf %225, %227 : vector<8x32xf32>
    %229 = arith.negf %228 : vector<8x32xf32>
    %230 = math.exp %229 : vector<8x32xf32>
    %cst_109 = arith.constant 1.000000e+00 : f32
    %231 = vector.broadcast %cst_109 : f32 to vector<8x32xf32>
    %232 = arith.addf %231, %230 : vector<8x32xf32>
    %233 = arith.divf %231, %232 : vector<8x32xf32>
    %234 = arith.mulf %223, %233 : vector<8x32xf32>
    %c0_110 = arith.constant 0 : index
    %c0_111 = arith.constant 0 : index
    %c0_112 = arith.constant 0 : index
    %235 = vector.load %arg25[%c0_110, %c0_111, %c0_112] : memref<7x1x32xf32, #tpu.memory_space<vmem>>, vector<7x1x32xf32>
    %cst_113 = arith.constant 0.000000e+00 : f32
    %236 = vector.broadcast %cst_113 : f32 to vector<1x3x32xf32>
    %c0_114 = arith.constant 0 : index
    %c0_115 = arith.constant 0 : index
    %c0_116 = arith.constant 0 : index
    %237 = vector.load %arg41[%c0_114, %c0_115, %c0_116] : memref<1x14x32xf32, #tpu.memory_space<vmem>>, vector<1x3x32xf32>
    tpu.vector_store %arg41[%c0_114, %c0_115, %c0_116], %236 {strides = array<i32>} : memref<1x14x32xf32, #tpu.memory_space<vmem>>, vector<1x3x32xf32>,
    %c0_117 = arith.constant 0 : index
    %c11 = arith.constant 11 : index
    %c0_118 = arith.constant 0 : index
    %238 = vector.load %arg41[%c0_117, %c11, %c0_118] : memref<1x14x32xf32, #tpu.memory_space<vmem>>, vector<1x3x32xf32>
    tpu.vector_store %arg41[%c0_117, %c11, %c0_118], %236 {strides = array<i32>} : memref<1x14x32xf32, #tpu.memory_space<vmem>>, vector<1x3x32xf32>,
    %239 = vector.shape_cast %234 : vector<8x32xf32> to vector<1x8x32xf32>
    %c0_119 = arith.constant 0 : index
    %c3 = arith.constant 3 : index
    %c0_120 = arith.constant 0 : index
    %240 = vector.load %arg41[%c0_119, %c3, %c0_120] : memref<1x14x32xf32, #tpu.memory_space<vmem>>, vector<1x8x32xf32>
    tpu.vector_store %arg41[%c0_119, %c3, %c0_120], %239 {strides = array<i32>} : memref<1x14x32xf32, #tpu.memory_space<vmem>>, vector<1x8x32xf32>,
    %c0_121 = arith.constant 0 : index
    %c0_122 = arith.constant 0 : index
    %241 = vector.load %arg26[%c0_121, %c0_122] : memref<1x32xf32, #tpu.memory_space<vmem>>, vector<1x32xf32>
    %c0_123 = arith.constant 0 : index
    %c0_124 = arith.constant 0 : index
    %c0_125 = arith.constant 0 : index
    %242 = vector.load %arg41[%c0_123, %c0_124, %c0_125] : memref<1x14x32xf32, #tpu.memory_space<vmem>>, vector<1x8x32xf32>
    %243 = vector.shape_cast %242 : vector<1x8x32xf32> to vector<8x32xf32>
    %244 = vector.extract_strided_slice %235 {offsets = [0, 0, 0], sizes = [1, 1, 32], strides = [1, 1, 1]} : vector<7x1x32xf32> to vector<1x1x32xf32>
    %245 = vector.shape_cast %244 : vector<1x1x32xf32> to vector<1x32xf32>
    %246 = vector.broadcast %245 : vector<1x32xf32> to vector<8x32xf32>
    %247 = arith.mulf %243, %246 : vector<8x32xf32>
    %248 = vector.broadcast %241 : vector<1x32xf32> to vector<8x32xf32>
    %249 = arith.addf %248, %247 : vector<8x32xf32>
    %c0_126 = arith.constant 0 : index
    %c1 = arith.constant 1 : index
    %c0_127 = arith.constant 0 : index
    %250 = vector.load %arg41[%c0_126, %c1, %c0_127] : memref<1x14x32xf32, #tpu.memory_space<vmem>>, vector<1x8x32xf32>
    %251 = vector.shape_cast %250 : vector<1x8x32xf32> to vector<8x32xf32>
    %252 = vector.extract_strided_slice %235 {offsets = [1, 0, 0], sizes = [1, 1, 32], strides = [1, 1, 1]} : vector<7x1x32xf32> to vector<1x1x32xf32>
    %253 = vector.shape_cast %252 : vector<1x1x32xf32> to vector<1x32xf32>
    %254 = vector.broadcast %253 : vector<1x32xf32> to vector<8x32xf32>
    %255 = arith.mulf %251, %254 : vector<8x32xf32>
    %256 = arith.addf %249, %255 : vector<8x32xf32>
    %c0_128 = arith.constant 0 : index
    %c2 = arith.constant 2 : index
    %c0_129 = arith.constant 0 : index
    %257 = vector.load %arg41[%c0_128, %c2, %c0_129] : memref<1x14x32xf32, #tpu.memory_space<vmem>>, vector<1x8x32xf32>
    %258 = vector.shape_cast %257 : vector<1x8x32xf32> to vector<8x32xf32>
    %259 = vector.extract_strided_slice %235 {offsets = [2, 0, 0], sizes = [1, 1, 32], strides = [1, 1, 1]} : vector<7x1x32xf32> to vector<1x1x32xf32>
    %260 = vector.shape_cast %259 : vector<1x1x32xf32> to vector<1x32xf32>
    %261 = vector.broadcast %260 : vector<1x32xf32> to vector<8x32xf32>
    %262 = arith.mulf %258, %261 : vector<8x32xf32>
    %263 = arith.addf %256, %262 : vector<8x32xf32>
    %c0_130 = arith.constant 0 : index
    %c3_131 = arith.constant 3 : index
    %c0_132 = arith.constant 0 : index
    %264 = vector.load %arg41[%c0_130, %c3_131, %c0_132] : memref<1x14x32xf32, #tpu.memory_space<vmem>>, vector<1x8x32xf32>
    %265 = vector.shape_cast %264 : vector<1x8x32xf32> to vector<8x32xf32>
    %266 = vector.extract_strided_slice %235 {offsets = [3, 0, 0], sizes = [1, 1, 32], strides = [1, 1, 1]} : vector<7x1x32xf32> to vector<1x1x32xf32>
    %267 = vector.shape_cast %266 : vector<1x1x32xf32> to vector<1x32xf32>
    %268 = vector.broadcast %267 : vector<1x32xf32> to vector<8x32xf32>
    %269 = arith.mulf %265, %268 : vector<8x32xf32>
    %270 = arith.addf %263, %269 : vector<8x32xf32>
    %c0_133 = arith.constant 0 : index
    %c4 = arith.constant 4 : index
    %c0_134 = arith.constant 0 : index
    %271 = vector.load %arg41[%c0_133, %c4, %c0_134] : memref<1x14x32xf32, #tpu.memory_space<vmem>>, vector<1x8x32xf32>
    %272 = vector.shape_cast %271 : vector<1x8x32xf32> to vector<8x32xf32>
    %273 = vector.extract_strided_slice %235 {offsets = [4, 0, 0], sizes = [1, 1, 32], strides = [1, 1, 1]} : vector<7x1x32xf32> to vector<1x1x32xf32>
    %274 = vector.shape_cast %273 : vector<1x1x32xf32> to vector<1x32xf32>
    %275 = vector.broadcast %274 : vector<1x32xf32> to vector<8x32xf32>
    %276 = arith.mulf %272, %275 : vector<8x32xf32>
    %277 = arith.addf %270, %276 : vector<8x32xf32>
    %c0_135 = arith.constant 0 : index
    %c5 = arith.constant 5 : index
    %c0_136 = arith.constant 0 : index
    %278 = vector.load %arg41[%c0_135, %c5, %c0_136] : memref<1x14x32xf32, #tpu.memory_space<vmem>>, vector<1x8x32xf32>
    %279 = vector.shape_cast %278 : vector<1x8x32xf32> to vector<8x32xf32>
    %280 = vector.extract_strided_slice %235 {offsets = [5, 0, 0], sizes = [1, 1, 32], strides = [1, 1, 1]} : vector<7x1x32xf32> to vector<1x1x32xf32>
    %281 = vector.shape_cast %280 : vector<1x1x32xf32> to vector<1x32xf32>
    %282 = vector.broadcast %281 : vector<1x32xf32> to vector<8x32xf32>
    %283 = arith.mulf %279, %282 : vector<8x32xf32>
    %284 = arith.addf %277, %283 : vector<8x32xf32>
    %c0_137 = arith.constant 0 : index
    %c6 = arith.constant 6 : index
    %c0_138 = arith.constant 0 : index
    %285 = vector.load %arg41[%c0_137, %c6, %c0_138] : memref<1x14x32xf32, #tpu.memory_space<vmem>>, vector<1x8x32xf32>
    %286 = vector.shape_cast %285 : vector<1x8x32xf32> to vector<8x32xf32>
    %287 = vector.extract_strided_slice %235 {offsets = [6, 0, 0], sizes = [1, 1, 32], strides = [1, 1, 1]} : vector<7x1x32xf32> to vector<1x1x32xf32>
    %288 = vector.shape_cast %287 : vector<1x1x32xf32> to vector<1x32xf32>
    %289 = vector.broadcast %288 : vector<1x32xf32> to vector<8x32xf32>
    %290 = arith.mulf %286, %289 : vector<8x32xf32>
    %291 = arith.addf %284, %290 : vector<8x32xf32>
    %c0_139 = arith.constant 0 : index
    %c0_140 = arith.constant 0 : index
    %292 = vector.load %arg27[%c0_139, %c0_140] : memref<1x32xf32, #tpu.memory_space<vmem>>, vector<1x32xf32>
    %293 = vector.broadcast %292 : vector<1x32xf32> to vector<8x32xf32>
    %294 = arith.mulf %291, %293 : vector<8x32xf32>
    %c0_141 = arith.constant 0 : index
    %c0_142 = arith.constant 0 : index
    %295 = vector.load %arg28[%c0_141, %c0_142] : memref<1x32xf32, #tpu.memory_space<vmem>>, vector<1x32xf32>
    %296 = vector.broadcast %295 : vector<1x32xf32> to vector<8x32xf32>
    %297 = arith.addf %294, %296 : vector<8x32xf32>
    %298 = arith.negf %297 : vector<8x32xf32>
    %299 = math.exp %298 : vector<8x32xf32>
    %cst_143 = arith.constant 1.000000e+00 : f32
    %300 = vector.broadcast %cst_143 : f32 to vector<8x32xf32>
    %301 = arith.addf %300, %299 : vector<8x32xf32>
    %302 = arith.divf %300, %301 : vector<8x32xf32>
    %303 = arith.mulf %297, %302 : vector<8x32xf32>
    %c0_144 = arith.constant 0 : index
    %c0_145 = arith.constant 0 : index
    %304 = vector.load %arg29[%c0_144, %c0_145] : memref<32x32xf32, #tpu.memory_space<vmem>>, vector<32x32xf32>
    %cst_146 = arith.constant dense<0.000000e+00> : vector<8x32xf32>
    %305 = tpu.matmul %303, %304, %cst_146 {dimension_numbers = #tpu.dot_dimension_numbers<[1], [0], [0], [1], [0, 0, 1, 1], [], []>} : vector<8x32xf32>, vector<32x32xf32>, vector<8x32xf32> -> vector<8x32xf32>
    %306 = arith.addf %194, %305 : vector<8x32xf32>
    %c0_147 = arith.constant 0 : index
    %c0_148 = arith.constant 0 : index
    %307 = vector.load %arg30[%c0_147, %c0_148] : memref<1x32xf32, #tpu.memory_space<vmem>>, vector<1x32xf32>
    %308 = vector.broadcast %307 : vector<1x32xf32> to vector<8x32xf32>
    %309 = arith.addf %306, %308 : vector<8x32xf32>
    %c0_149 = arith.constant 0 : index
    %c0_150 = arith.constant 0 : index
    %310 = vector.load %arg31[%c0_149, %c0_150] : memref<1x32xf32, #tpu.memory_space<vmem>>, vector<1x32xf32>
    %c0_151 = arith.constant 0 : index
    %c0_152 = arith.constant 0 : index
    %311 = vector.load %arg32[%c0_151, %c0_152] : memref<1x32xf32, #tpu.memory_space<vmem>>, vector<1x32xf32>
    %cst_153 = arith.constant dense<0.000000e+00> : vector<8xf32>
    %312 = vector.multi_reduction <add>, %309, %cst_153 [1] : vector<8x32xf32> to vector<8xf32>
    %313 = vector.shape_cast %312 : vector<8xf32> to vector<8x1xf32>
    %cst_154 = arith.constant 3.200000e+01 : f32
    %314 = vector.broadcast %cst_154 : f32 to vector<8x1xf32>
    %315 = arith.divf %313, %314 : vector<8x1xf32>
    %316 = vector.broadcast %315 : vector<8x1xf32> to vector<8x32xf32>
    %317 = arith.subf %309, %316 : vector<8x32xf32>
    %318 = arith.mulf %317, %317 : vector<8x32xf32>
    %cst_155 = arith.constant dense<0.000000e+00> : vector<8xf32>
    %319 = vector.multi_reduction <add>, %318, %cst_155 [1] : vector<8x32xf32> to vector<8xf32>
    %320 = vector.shape_cast %319 : vector<8xf32> to vector<8x1xf32>
    %cst_156 = arith.constant 3.200000e+01 : f32
    %321 = vector.broadcast %cst_156 : f32 to vector<8x1xf32>
    %322 = arith.divf %320, %321 : vector<8x1xf32>
    %323 = vector.broadcast %315 : vector<8x1xf32> to vector<8x32xf32>
    %324 = arith.subf %309, %323 : vector<8x32xf32>
    %cst_157 = arith.constant 9.99999996E-13 : f32
    %325 = vector.broadcast %cst_157 : f32 to vector<8x1xf32>
    %326 = arith.addf %322, %325 : vector<8x1xf32>
    %327 = math.rsqrt %326 : vector<8x1xf32>
    %328 = vector.broadcast %327 : vector<8x1xf32> to vector<8x32xf32>
    %329 = arith.mulf %324, %328 : vector<8x32xf32>
    %330 = vector.broadcast %310 : vector<1x32xf32> to vector<8x32xf32>
    %331 = arith.mulf %329, %330 : vector<8x32xf32>
    %332 = vector.broadcast %311 : vector<1x32xf32> to vector<8x32xf32>
    %333 = arith.addf %331, %332 : vector<8x32xf32>
    %c0_158 = arith.constant 0 : index
    %c0_159 = arith.constant 0 : index
    %334 = vector.load %arg33[%c0_158, %c0_159] : memref<32x64xf32, #tpu.memory_space<vmem>>, vector<32x64xf32>
    %cst_160 = arith.constant dense<0.000000e+00> : vector<8x64xf32>
    %335 = tpu.matmul %333, %334, %cst_160 {dimension_numbers = #tpu.dot_dimension_numbers<[1], [0], [0], [1], [0, 0, 1, 1], [], []>} : vector<8x32xf32>, vector<32x64xf32>, vector<8x64xf32> -> vector<8x64xf32>
    %c0_161 = arith.constant 0 : index
    %c0_162 = arith.constant 0 : index
    %336 = vector.load %arg34[%c0_161, %c0_162] : memref<1x64xf32, #tpu.memory_space<vmem>>, vector<1x64xf32>
    %337 = vector.broadcast %336 : vector<1x64xf32> to vector<8x64xf32>
    %338 = arith.addf %335, %337 : vector<8x64xf32>
    %cst_163 = arith.constant 0.000000e+00 : f32
    %339 = vector.broadcast %cst_163 : f32 to vector<8x64xf32>
    %340 = arith.maximumf %338, %339 : vector<8x64xf32>
    %c0_164 = arith.constant 0 : index
    %c0_165 = arith.constant 0 : index
    %341 = vector.load %arg35[%c0_164, %c0_165] : memref<64x32xf32, #tpu.memory_space<vmem>>, vector<64x32xf32>
    %cst_166 = arith.constant dense<0.000000e+00> : vector<8x32xf32>
    %342 = tpu.matmul %340, %341, %cst_166 {dimension_numbers = #tpu.dot_dimension_numbers<[1], [0], [0], [1], [0, 0, 1, 1], [], []>} : vector<8x64xf32>, vector<64x32xf32>, vector<8x32xf32> -> vector<8x32xf32>
    %c0_167 = arith.constant 0 : index
    %c0_168 = arith.constant 0 : index
    %343 = vector.load %arg36[%c0_167, %c0_168] : memref<1x32xf32, #tpu.memory_space<vmem>>, vector<1x32xf32>
    %344 = vector.broadcast %343 : vector<1x32xf32> to vector<8x32xf32>
    %345 = arith.addf %342, %344 : vector<8x32xf32>
    %cst_169 = arith.constant 5.000000e-01 : f32
    %346 = vector.broadcast %cst_169 : f32 to vector<8x32xf32>
    %347 = arith.mulf %346, %345 : vector<8x32xf32>
    %348 = arith.addf %309, %347 : vector<8x32xf32>
    %c0_170 = arith.constant 0 : index
    %c0_171 = arith.constant 0 : index
    %349 = vector.load %arg37[%c0_170, %c0_171] : memref<1x32xf32, #tpu.memory_space<vmem>>, vector<1x32xf32>
    %c0_172 = arith.constant 0 : index
    %c0_173 = arith.constant 0 : index
    %350 = vector.load %arg38[%c0_172, %c0_173] : memref<1x32xf32, #tpu.memory_space<vmem>>, vector<1x32xf32>
    %cst_174 = arith.constant dense<0.000000e+00> : vector<8xf32>
    %351 = vector.multi_reduction <add>, %348, %cst_174 [1] : vector<8x32xf32> to vector<8xf32>
    %352 = vector.shape_cast %351 : vector<8xf32> to vector<8x1xf32>
    %cst_175 = arith.constant 3.200000e+01 : f32
    %353 = vector.broadcast %cst_175 : f32 to vector<8x1xf32>
    %354 = arith.divf %352, %353 : vector<8x1xf32>
    %355 = vector.broadcast %354 : vector<8x1xf32> to vector<8x32xf32>
    %356 = arith.subf %348, %355 : vector<8x32xf32>
    %357 = arith.mulf %356, %356 : vector<8x32xf32>
    %cst_176 = arith.constant dense<0.000000e+00> : vector<8xf32>
    %358 = vector.multi_reduction <add>, %357, %cst_176 [1] : vector<8x32xf32> to vector<8xf32>
    %359 = vector.shape_cast %358 : vector<8xf32> to vector<8x1xf32>
    %cst_177 = arith.constant 3.200000e+01 : f32
    %360 = vector.broadcast %cst_177 : f32 to vector<8x1xf32>
    %361 = arith.divf %359, %360 : vector<8x1xf32>
    %362 = vector.broadcast %354 : vector<8x1xf32> to vector<8x32xf32>
    %363 = arith.subf %348, %362 : vector<8x32xf32>
    %cst_178 = arith.constant 9.99999996E-13 : f32
    %364 = vector.broadcast %cst_178 : f32 to vector<8x1xf32>
    %365 = arith.addf %361, %364 : vector<8x1xf32>
    %366 = math.rsqrt %365 : vector<8x1xf32>
    %367 = vector.broadcast %366 : vector<8x1xf32> to vector<8x32xf32>
    %368 = arith.mulf %363, %367 : vector<8x32xf32>
    %369 = vector.broadcast %349 : vector<1x32xf32> to vector<8x32xf32>
    %370 = arith.mulf %368, %369 : vector<8x32xf32>
    %371 = vector.broadcast %350 : vector<1x32xf32> to vector<8x32xf32>
    %372 = arith.addf %370, %371 : vector<8x32xf32>
    %373 = vector.shape_cast %372 : vector<8x32xf32> to vector<1x8x32xf32>
    %c0_179 = arith.constant 0 : index
    %c0_180 = arith.constant 0 : index
    %c0_181 = arith.constant 0 : index
    %374 = vector.load %arg39[%c0_179, %c0_180, %c0_181] : memref<1x8x32xf32, #tpu.memory_space<vmem>>, vector<1x8x32xf32>
    tpu.vector_store %arg39[%c0_179, %c0_180, %c0_181], %373 {strides = array<i32>} : memref<1x8x32xf32, #tpu.memory_space<vmem>>, vector<1x8x32xf32>,
    return
  }
  func.func @transform_0(%arg0: i32) -> (i32, i32, i32) {
    %c0_i32 = arith.constant 0 : i32
    %c0_i32_0 = arith.constant 0 : i32
    %c0_i32_1 = arith.constant 0 : i32
    return %arg0, %c0_i32, %c0_i32_0 : i32, i32, i32
  }
  func.func @transform_1(%arg0: i32) -> (i32, i32, i32) {
    %c0_i32 = arith.constant 0 : i32
    %c0_i32_0 = arith.constant 0 : i32
    %c0_i32_1 = arith.constant 0 : i32
    return %arg0, %c0_i32, %c0_i32_0 : i32, i32, i32
  }
  func.func @transform_2(%arg0: i32) -> (i32, i32) {
    %c0_i32 = arith.constant 0 : i32
    %c0_i32_0 = arith.constant 0 : i32
    %c0_i32_1 = arith.constant 0 : i32
    return %c0_i32, %c0_i32_0 : i32, i32
  }
  func.func @transform_3(%arg0: i32) -> (i32, i32) {
    %c0_i32 = arith.constant 0 : i32
    %c0_i32_0 = arith.constant 0 : i32
    %c0_i32_1 = arith.constant 0 : i32
    return %c0_i32, %c0_i32_0 : i32, i32
  }
  func.func @transform_4(%arg0: i32) -> (i32, i32) {
    %c0_i32 = arith.constant 0 : i32
    %c0_i32_0 = arith.constant 0 : i32
    %c0_i32_1 = arith.constant 0 : i32
    return %c0_i32, %c0_i32_0 : i32, i32
  }
  func.func @transform_5(%arg0: i32) -> (i32, i32) {
    %c0_i32 = arith.constant 0 : i32
    %c0_i32_0 = arith.constant 0 : i32
    %c0_i32_1 = arith.constant 0 : i32
    return %c0_i32, %c0_i32_0 : i32, i32
  }
  func.func @transform_6(%arg0: i32) -> (i32, i32) {
    %c0_i32 = arith.constant 0 : i32
    %c0_i32_0 = arith.constant 0 : i32
    %c0_i32_1 = arith.constant 0 : i32
    return %c0_i32, %c0_i32_0 : i32, i32
  }
  func.func @transform_7(%arg0: i32) -> (i32, i32) {
    %c0_i32 = arith.constant 0 : i32
    %c0_i32_0 = arith.constant 0 : i32
    %c0_i32_1 = arith.constant 0 : i32
    return %c0_i32, %c0_i32_0 : i32, i32
  }
  func.func @transform_8(%arg0: i32) -> (i32, i32) {
    %c0_i32 = arith.constant 0 : i32
    %c0_i32_0 = arith.constant 0 : i32
    %c0_i32_1 = arith.constant 0 : i32
    return %c0_i32, %c0_i32_0 : i32, i32
  }
  func.func @transform_9(%arg0: i32) -> (i32, i32) {
    %c0_i32 = arith.constant 0 : i32
    %c0_i32_0 = arith.constant 0 : i32
    %c0_i32_1 = arith.constant 0 : i32
    return %c0_i32, %c0_i32_0 : i32, i32
  }
  func.func @transform_10(%arg0: i32) -> (i32, i32) {
    %c0_i32 = arith.constant 0 : i32
    %c0_i32_0 = arith.constant 0 : i32
    %c0_i32_1 = arith.constant 0 : i32
    return %c0_i32, %c0_i32_0 : i32, i32
  }
  func.func @transform_11(%arg0: i32) -> (i32, i32) {
    %c0_i32 = arith.constant 0 : i32
    %c0_i32_0 = arith.constant 0 : i32
    %c0_i32_1 = arith.constant 0 : i32
    return %c0_i32, %c0_i32_0 : i32, i32
  }
  func.func @transform_12(%arg0: i32) -> (i32, i32) {
    %c0_i32 = arith.constant 0 : i32
    %c0_i32_0 = arith.constant 0 : i32
    %c0_i32_1 = arith.constant 0 : i32
    return %c0_i32, %c0_i32_0 : i32, i32
  }
  func.func @transform_13(%arg0: i32) -> (i32, i32) {
    %c0_i32 = arith.constant 0 : i32
    %c0_i32_0 = arith.constant 0 : i32
    %c0_i32_1 = arith.constant 0 : i32
    return %c0_i32, %c0_i32_0 : i32, i32
  }
  func.func @transform_14(%arg0: i32) -> (i32, i32) {
    %c0_i32 = arith.constant 0 : i32
    %c0_i32_0 = arith.constant 0 : i32
    %c0_i32_1 = arith.constant 0 : i32
    return %c0_i32, %c0_i32_0 : i32, i32
  }
  func.func @transform_15(%arg0: i32) -> (i32, i32) {
    %c0_i32 = arith.constant 0 : i32
    %c0_i32_0 = arith.constant 0 : i32
    %c0_i32_1 = arith.constant 0 : i32
    return %c0_i32, %c0_i32_0 : i32, i32
  }
  func.func @transform_16(%arg0: i32) -> (i32, i32) {
    %c0_i32 = arith.constant 0 : i32
    %c0_i32_0 = arith.constant 0 : i32
    %c0_i32_1 = arith.constant 0 : i32
    return %c0_i32, %c0_i32_0 : i32, i32
  }
  func.func @transform_17(%arg0: i32) -> (i32, i32) {
    %c0_i32 = arith.constant 0 : i32
    %c0_i32_0 = arith.constant 0 : i32
    %c0_i32_1 = arith.constant 0 : i32
    return %c0_i32, %c0_i32_0 : i32, i32
  }
  func.func @transform_18(%arg0: i32) -> (i32, i32) {
    %c0_i32 = arith.constant 0 : i32
    %c0_i32_0 = arith.constant 0 : i32
    %c0_i32_1 = arith.constant 0 : i32
    return %c0_i32, %c0_i32_0 : i32, i32
  }
  func.func @transform_19(%arg0: i32) -> (i32, i32) {
    %c0_i32 = arith.constant 0 : i32
    %c0_i32_0 = arith.constant 0 : i32
    %c0_i32_1 = arith.constant 0 : i32
    return %c0_i32, %c0_i32_0 : i32, i32
  }
  func.func @transform_20(%arg0: i32) -> (i32, i32) {
    %c0_i32 = arith.constant 0 : i32
    %c0_i32_0 = arith.constant 0 : i32
    %c0_i32_1 = arith.constant 0 : i32
    return %c0_i32, %c0_i32_0 : i32, i32
  }
  func.func @transform_21(%arg0: i32) -> (i32, i32) {
    %c0_i32 = arith.constant 0 : i32
    %c0_i32_0 = arith.constant 0 : i32
    %c0_i32_1 = arith.constant 0 : i32
    return %c0_i32, %c0_i32_0 : i32, i32
  }
  func.func @transform_22(%arg0: i32) -> (i32, i32) {
    %c0_i32 = arith.constant 0 : i32
    %c0_i32_0 = arith.constant 0 : i32
    %c0_i32_1 = arith.constant 0 : i32
    return %c0_i32, %c0_i32_0 : i32, i32
  }
  func.func @transform_23(%arg0: i32) -> (i32, i32) {
    %c0_i32 = arith.constant 0 : i32
    %c0_i32_0 = arith.constant 0 : i32
    %c0_i32_1 = arith.constant 0 : i32
    return %c0_i32, %c0_i32_0 : i32, i32
  }
  func.func @transform_24(%arg0: i32) -> (i32, i32, i32) {
    %c0_i32 = arith.constant 0 : i32
    %c0_i32_0 = arith.constant 0 : i32
    %c0_i32_1 = arith.constant 0 : i32
    %c0_i32_2 = arith.constant 0 : i32
    return %c0_i32, %c0_i32_0, %c0_i32_1 : i32, i32, i32
  }
  func.func @transform_25(%arg0: i32) -> (i32, i32) {
    %c0_i32 = arith.constant 0 : i32
    %c0_i32_0 = arith.constant 0 : i32
    %c0_i32_1 = arith.constant 0 : i32
    return %c0_i32, %c0_i32_0 : i32, i32
  }
  func.func @transform_26(%arg0: i32) -> (i32, i32) {
    %c0_i32 = arith.constant 0 : i32
    %c0_i32_0 = arith.constant 0 : i32
    %c0_i32_1 = arith.constant 0 : i32
    return %c0_i32, %c0_i32_0 : i32, i32
  }
  func.func @transform_27(%arg0: i32) -> (i32, i32) {
    %c0_i32 = arith.constant 0 : i32
    %c0_i32_0 = arith.constant 0 : i32
    %c0_i32_1 = arith.constant 0 : i32
    return %c0_i32, %c0_i32_0 : i32, i32
  }
  func.func @transform_28(%arg0: i32) -> (i32, i32) {
    %c0_i32 = arith.constant 0 : i32
    %c0_i32_0 = arith.constant 0 : i32
    %c0_i32_1 = arith.constant 0 : i32
    return %c0_i32, %c0_i32_0 : i32, i32
  }
  func.func @transform_29(%arg0: i32) -> (i32, i32) {
    %c0_i32 = arith.constant 0 : i32
    %c0_i32_0 = arith.constant 0 : i32
    %c0_i32_1 = arith.constant 0 : i32
    return %c0_i32, %c0_i32_0 : i32, i32
  }
  func.func @transform_30(%arg0: i32) -> (i32, i32) {
    %c0_i32 = arith.constant 0 : i32
    %c0_i32_0 = arith.constant 0 : i32
    %c0_i32_1 = arith.constant 0 : i32
    return %c0_i32, %c0_i32_0 : i32, i32
  }
  func.func @transform_31(%arg0: i32) -> (i32, i32) {
    %c0_i32 = arith.constant 0 : i32
    %c0_i32_0 = arith.constant 0 : i32
    %c0_i32_1 = arith.constant 0 : i32
    return %c0_i32, %c0_i32_0 : i32, i32
  }
  func.func @transform_32(%arg0: i32) -> (i32, i32) {
    %c0_i32 = arith.constant 0 : i32
    %c0_i32_0 = arith.constant 0 : i32
    %c0_i32_1 = arith.constant 0 : i32
    return %c0_i32, %c0_i32_0 : i32, i32
  }
  func.func @transform_33(%arg0: i32) -> (i32, i32) {
    %c0_i32 = arith.constant 0 : i32
    %c0_i32_0 = arith.constant 0 : i32
    %c0_i32_1 = arith.constant 0 : i32
    return %c0_i32, %c0_i32_0 : i32, i32
  }
  func.func @transform_34(%arg0: i32) -> (i32, i32) {
    %c0_i32 = arith.constant 0 : i32
    %c0_i32_0 = arith.constant 0 : i32
    %c0_i32_1 = arith.constant 0 : i32
    return %c0_i32, %c0_i32_0 : i32, i32
  }
  func.func @transform_35(%arg0: i32) -> (i32, i32) {
    %c0_i32 = arith.constant 0 : i32
    %c0_i32_0 = arith.constant 0 : i32
    %c0_i32_1 = arith.constant 0 : i32
    return %c0_i32, %c0_i32_0 : i32, i32
  }
  func.func @transform_36(%arg0: i32) -> (i32, i32) {
    %c0_i32 = arith.constant 0 : i32
    %c0_i32_0 = arith.constant 0 : i32
    %c0_i32_1 = arith.constant 0 : i32
    return %c0_i32, %c0_i32_0 : i32, i32
  }
  func.func @transform_37(%arg0: i32) -> (i32, i32) {
    %c0_i32 = arith.constant 0 : i32
    %c0_i32_0 = arith.constant 0 : i32
    %c0_i32_1 = arith.constant 0 : i32
    return %c0_i32, %c0_i32_0 : i32, i32
  }
  func.func @transform_38(%arg0: i32) -> (i32, i32, i32) {
    %c0_i32 = arith.constant 0 : i32
    %c0_i32_0 = arith.constant 0 : i32
    %c0_i32_1 = arith.constant 0 : i32
    return %arg0, %c0_i32, %c0_i32_0 : i32, i32, i32
  }
}

</mosaic_0001>

<bundles_post_ra>
// kernel: tpu_custom_call.1
= control target key start
LH: loop header
LB: loop body
LE: loop exit
PB: predicated region body
PF: predicated region fallthrough
CT: control target
= control target key end

     0   :  { %s4825_s6 = smov 1   ;;  %s4826_s10 = smov 2   ;;  %s5678_s0 = inlined_call_operand.smem [shape: u32[39], index: -1, kind: input, shape index: {}] }
   0x1   :  { %s4901_s5 = sld [smem:[%s5678_s0]]   ;;  %s4827_s14 = smov 3  }
   0x2   :  { %s4906_s9 = sld [smem:[%s5678_s0 + %s4825_s6]]   ;;  %s4828_s18 = smov 4  }
   0x3   :  { %s4911_s13 = sld [smem:[%s5678_s0 + %s4826_s10]]   ;;  %s4829_s22 = smov 5  }
   0x4   :  { %s4916_s17 = sld [smem:[%s5678_s0 + %s4827_s14]]   ;;  %s4830_s26 = smov 6  }
   0x5   :  { %s4921_s21 = sld [smem:[%s5678_s0 + %s4828_s18]]   ;;  %s4831_s30 = smov 7  }
   0x6   :  { %s4926_s25 = sld [smem:[%s5678_s0 + %s4829_s22]]   ;;  %s4832_s4 = smov 8  }
   0x7   :  { %5701 = sst [smem:[#allocation46_spill]] %s4901_s5  ;;  %s4833_s10 = smov 9  }
   0x8   :  { %5702 = sst [smem:[#allocation47_spill]] %s4906_s9  ;;  %s4834_s15 = smov 10  }
   0x9   :  { %5703 = sst [smem:[#allocation48_spill]] %s4911_s13  ;;  %s4835_s20 = smov 11  }
   0xa   :  { %5704 = sst [smem:[#allocation49_spill]] %s4916_s17  ;;  %s4837_s1 = smov 13  }
   0xb   :  { %5705 = sst [smem:[#allocation50_spill]] %s4921_s21  ;;  %s4838_s7 = smov 14  }
   0xc   :  { %s4931_s29 = sld [smem:[%s5678_s0 + %s4830_s26]]   ;;  %s4836_s26 = smov 12  }
   0xd   :  { %s4936_s3 = sld [smem:[%s5678_s0 + %s4831_s30]]   ;;  %s4840_s22 = smov 16  }
   0xe   :  { %s4941_s8 = sld [smem:[%s5678_s0 + %s4832_s4]]   ;;  %s4841_s28 = smov 17  }
   0xf   :  { %s4946_s14 = sld [smem:[%s5678_s0 + %s4833_s10]]  }
  0x10   :  { %s4951_s19 = sld [smem:[%s5678_s0 + %s4834_s15]]   ;;  %s4839_s15 = smov 15  }
  0x11   :  { %s4956_s24 = sld [smem:[%s5678_s0 + %s4835_s20]]  }
  0x12   :  { %5706 = sst [smem:[#allocation51_spill]] %s4931_s29 }
  0x13   :  { %5707 = sst [smem:[#allocation52_spill]] %s4936_s3 }
  0x14   :  { %5708 = sst [smem:[#allocation53_spill]] %s4941_s8 }
  0x15   :  { %5709 = sst [smem:[#allocation54_spill]] %s4946_s14 }
  0x16   :  { %5710 = sst [smem:[#allocation55_spill]] %s4951_s19 }
  0x17   :  { %s4961_s30 = sld [smem:[%s5678_s0 + %s4836_s26]]  }
  0x18   :  { %s4966_s6 = sld [smem:[%s5678_s0 + %s4837_s1]]  }
  0x19   :  { %s4971_s12 = sld [smem:[%s5678_s0 + %s4838_s7]]   ;;  %s4842_s7 = smov 18  }
  0x1a   :  { %s4976_s20 = sld [smem:[%s5678_s0 + %s4839_s15]]   ;;  %s4843_s15 = smov 19  }
  0x1b   :  { %s4981_s27 = sld [smem:[%s5678_s0 + %s4840_s22]]   ;;  %s4844_s22 = smov 20  }
  0x1c   :  { %s4986_s4 = sld [smem:[%s5678_s0 + %s4841_s28]]   ;;  %s4845_s28 = smov 21  }
  0x1d   :  { %5711 = sst [smem:[#allocation56_spill]] %s4961_s30 }
  0x1e   :  { %5712 = sst [smem:[#allocation57_spill]] %s4966_s6 }
  0x1f   :  { %5713 = sst [smem:[#allocation58_spill]] %s4971_s12 }
  0x20   :  { %5714 = sst [smem:[#allocation59_spill]] %s4976_s20 }
  0x21   :  { %5715 = sst [smem:[#allocation60_spill]] %s4981_s27 }
  0x22   :  { %5716 = sst [smem:[#allocation61_spill]] %s4986_s4 }
  0x23   :  { %s4991_s30 = sld [smem:[%s5678_s0 + %s4842_s7]]   ;;  %s4846_s7 = smov 22  }
  0x24   :  { %s4996_s12 = sld [smem:[%s5678_s0 + %s4843_s15]]   ;;  %s4847_s15 = smov 23  }
  0x25   :  { %s5001_s27 = sld [smem:[%s5678_s0 + %s4844_s22]]   ;;  %s4848_s22 = smov 24  }
  0x26   :  { %s5006_s19 = sld [smem:[%s5678_s0 + %s4845_s28]]   ;;  %s4849_s28 = smov 25  }
  0x27   :  { %s5011_s29 = sld [smem:[%s5678_s0 + %s4846_s7]]   ;;  %s4850_s7 = smov 26  }
  0x28   :  { %s5016_s21 = sld [smem:[%s5678_s0 + %s4847_s15]]   ;;  %s4851_s15 = smov 27  }
  0x29   :  { %s5031_s9 = sld [smem:[%s5678_s0 + %s4850_s7]]   ;;  %s4854_s7 = smov 30  }
  0x2a   :  { %5717 = sst [smem:[#allocation62_spill]] %s4996_s12 }
  0x2b   :  { %5718 = sst [smem:[#allocation63_spill]] %s5001_s27 }
  0x2c   :  { %5719 = sst [smem:[#allocation64_spill]] %s5006_s19 }
  0x2d   :  { %s5021_s27 = sld [smem:[%s5678_s0 + %s4848_s22]]   ;;  %s4852_s22 = smov 28  }
  0x2e   :  { %s5026_s19 = sld [smem:[%s5678_s0 + %s4849_s28]]   ;;  %s4853_s28 = smov 29  }
  0x2f   :  { %5722 = sst [smem:[#allocation67_spill]] %s5031_s9 }
  0x30   :  { %s5036_s5 = sld [smem:[%s5678_s0 + %s4851_s15]]   ;;  %s4855_s15 = smov 31  }
  0x31   :  { %s5051_s9 = sld [smem:[%s5678_s0 + %s4854_s7]]   ;;  %s4858_s7 = smov 34  }
  0x33   :  { %5720 = sst [smem:[#allocation65_spill]] %s5021_s27 }
  0x34   :  { %5721 = sst [smem:[#allocation66_spill]] %s5026_s19 }
  0x35   :  { %s5041_s27 = sld [smem:[%s5678_s0 + %s4852_s22]]   ;;  %s4856_s22 = smov 32  }
  0x36   :  { %5723 = sst [smem:[#allocation68_spill]] %s5036_s5 }
  0x37   :  { %s5046_s19 = sld [smem:[%s5678_s0 + %s4853_s28]]   ;;  %s4857_s28 = smov 33  }
  0x38   :  { %5726 = sst [smem:[#allocation71_spill]] %s5051_s9 }
  0x39   :  { %s5056_s5 = sld [smem:[%s5678_s0 + %s4855_s15]]   ;;  %s4859_s15 = smov 35  }
  0x3a   :  { %s5071_s9 = sld [smem:[%s5678_s0 + %s4858_s7]]   ;;  %s4862_s7 = smov 38  }
  0x3b   :  { %5724 = sst [smem:[#allocation69_spill]] %s5041_s27 }
  0x3c   :  { %s5061_s27 = sld [smem:[%s5678_s0 + %s4856_s22]]   ;;  %s4860_s22 = smov 36  }
  0x3d   :  { %5725 = sst [smem:[#allocation70_spill]] %s5046_s19 }
  0x3e   :  { %s5066_s19 = sld [smem:[%s5678_s0 + %s4857_s28]]   ;;  %s4861_s28 = smov 37  }
  0x3f   :  { %5727 = sst [smem:[#allocation72_spill]] %s5056_s5 }
  0x40   :  { %5730 = sst [smem:[#allocation75_spill]] %s5071_s9 }
  0x41   :  { %s5076_s5 = sld [smem:[%s5678_s0 + %s4859_s15]]  }
  0x42   :  { %5728 = sst [smem:[#allocation73_spill]] %s5061_s27 }
  0x43   :  { %s5081_s27 = sld [smem:[%s5678_s0 + %s4860_s22]]  }
  0x44   :  { %5729 = sst [smem:[#allocation74_spill]] %s5066_s19 }
  0x45   :  { %s5086_s19 = sld [smem:[%s5678_s0 + %s4861_s28]]  }
  0x46   :  { %s5091_s9 = sld [smem:[%s5678_s0 + %s4862_s7]]  }
  0x47   :  { %5731 = sst [smem:[#allocation76_spill]] %s5076_s5 }
  0x49   :  { %5732 = sst [smem:[#allocation77_spill]] %s5081_s27 }
  0x4b   :  { %5733 = sst [smem:[#allocation78_spill]] %s5086_s19 }
  0x4c   :  { %5734 = sst [smem:[#allocation79_spill]] %s5091_s9 }
  0x4d   :  { %82 = vsyncpa [#allocation5], 0 }
  0x4e   :  { %84 = vsyncpa [#allocation5 + $0x1], 0 }
  0x4f   :  { %85 = vsyncpa [#allocation8], 0 }
  0x50   :  { %87 = vsyncpa [#allocation8 + $0x1], 0 }
  0x51   :  { %88 = vsyncpa [#allocation11], 0 }
  0x52   :  { %89 = vsyncpa [#allocation14], 0 }
  0x53   :  { %90 = vsyncpa [#allocation17], 0 }
  0x54   :  { %91 = vsyncpa [#allocation20], 0 }
  0x55   :  { %92 = vsyncpa [#allocation23], 0 }
  0x56   :  { %93 = vsyncpa [#allocation26], 0 }
  0x57   :  { %94 = vsyncpa [#allocation29], 0 }
  0x58   :  { %95 = vsyncpa [#allocation32], 0 }
  0x59   :  { %96 = vsyncpa [#allocation6], 0 }
  0x5a   :  { %98 = vsyncpa [#allocation6 + $0x1], 0  ;;  %s5093_s15 = smov 0   ;;  %s5095_s16 = smov 0  }
  0x5b   :  { %s5097_s0 = smov 0   ;;  %s5099_s18 = smov 0  }
  0x5c LB: > { %s4863_s22 = smov [#allocation9]   ;;  %s5114_s26 = sadd.s32 4294967295, %s4823_s18   ;;  %s4823_s18 = sphi %s5099_s18, %s5805_s18   ;;  %s4819_s0 = sphi %s5097_s0, %s5804_s0   ;;  %s4815_s16 = sphi %s5095_s16, %s5803_s16   ;;  %s4811_s15 = sphi %s5093_s15, %s5802_s15  }
  0x5d   : > { %s956_s23 = sshll.u32 %s4863_s22, 4  ;;  %p3596_p0 = scmp.ge.s32.totalorder %s4823_s18, 1  ;;  %s957_s23 = int_to_ptr.vmem [resolvable:$true] %s956_s23 }
  0x5e   : > { %p5691_p1 = scmp.eq.s32.totalorder %s5114_s26, 0  ;;  %p943_p2 = scmp.lt.s32.totalorder %s4823_s18, 3 }
  0x5f   : > { %s4864_s1 = smov [#allocation10]   ;;  %s4865_s7 = smov [#allocation13]  }
  0x60   : > { %p5119_p3 = pnand %p3596_p0, %p943_p2  ;;  %s967_s2 = sshll.u32 %s4864_s1, 4  ;;  %s5126_s2 = int_to_ptr.vmem [resolvable:$true] %s967_s2 }
  0x61   : > { %s995_s10 = sshll.u32 %s4865_s7, 4  ;;  %s4866_s22 = smov [#allocation16]   ;;  %s5134_s10 = int_to_ptr.vmem [resolvable:$true] %s995_s10 }
  0x62   : > { %s5735_s28 = scalar_select %p5119_p3, 1, 0 }
  0x63   : > { %p4022_p5 = pneg %p5119_p3  ;;  %s5136_s9 = sshll.u32 %s4866_s22, 4  ;;  %s1018_s9 = int_to_ptr.vmem [resolvable:$true] %s5136_s9 }
  0x64   : > { %s4258_s1 = scalar_lea.vmem %s957_s23, 16  ;;  %s4265_s7 = scalar_lea.vmem %s957_s23, 32 }
  0x65   : > { %p5130_p6 = pnand %p4022_p5, %p5691_p1  ;;  %p4259_p8 = scmp.ne.s32.totalorder %s957_s23, %s4258_s1 }
  0x66   : > { %p4266_p11 = scmp.lt.s32.totalorder %s957_s23, %s957_s23  ;;  %p4267_p12 = scmp.lt.s32.totalorder %s4265_s7, %s4258_s1 }
  0x67   : > { %p5140_p7 = pneg %p5130_p6 }
  0x68   : > { %p4268_p13 = por %p4267_p12, %p4266_p11 }
  0x69   : > { %p4261_p9 = pnand %p4259_p8, %p5140_p7 }
  0x6b   : > { %p4262_p10 = pneg %p4261_p9 }
  0x6d   : > { %p4269_p0 = pnand %p4268_p13, %p4262_p10 }
  0x6f   : > { %4272 = shalt.err (!%p4269_p0)
}
  0x70   : > { %s5738_s13 = sld [smem:[#allocation48_spill]]  ;;  %s4284_s22 = scalar_lea.vmem %s5126_s2, 16 }
  0x71   : > { %p4285_p2 = scmp.ne.s32.totalorder %s5126_s2, %s4284_s22  ;;  %s4291_s27 = scalar_lea.vmem %s5126_s2, 32 }
  0x72   : > { %p4292_p9 = scmp.lt.s32.totalorder %s5126_s2, %s5126_s2  ;;  %p4293_p11 = scmp.lt.s32.totalorder %s4291_s27, %s4284_s22 }
  0x73   : > { %p4287_p5 = pnand %p4285_p2, %p5140_p7 }
  0x74   : > { %p4294_p10 = por %p4293_p11, %p4292_p9 }
  0x75   : > { %p4288_p8 = pneg %p4287_p5 }
  0x76   : > { %4025 = dma.hbm_to_vmem [thread:$0]  (!%p5130_p6), %s5738_s13, 16, %s957_s23, [#allocation8]  }
  0x77   : > { %p4295_p12 = pnand %p4294_p10, %p4288_p8 }
  0x79   : > { %4298 = shalt.err (!%p4295_p12)
}
  0x7a   : > { %s5739_s17 = sld [smem:[#allocation49_spill]]  ;;  %s4310_s23 = scalar_lea.vmem %s5134_s10, 16 }
  0x7b   : > { %p4311_p13 = scmp.ne.s32.totalorder %s5134_s10, %s4310_s23  ;;  %s4317_s1 = scalar_lea.vmem %s5134_s10, 32 }
  0x7c   : > { %p4318_p5 = scmp.lt.s32.totalorder %s5134_s10, %s5134_s10  ;;  %p4319_p8 = scmp.lt.s32.totalorder %s4317_s1, %s4310_s23 }
  0x7d   : > { %p4313_p0 = pnand %p4311_p13, %p5140_p7 }
  0x7e   : > { %p4320_p9 = por %p4319_p8, %p4318_p5 }
  0x7f   : > { %p4314_p2 = pneg %p4313_p0 }
  0x80   : > { %4028 = dma.hbm_to_vmem [thread:$0]  (!%p5130_p6), %s5739_s17, 16, %s5126_s2, [#allocation11]  }
  0x81   : > { %p4321_p11 = pnand %p4320_p9, %p4314_p2 }
  0x83   : > { %4324 = shalt.err (!%p4321_p11)
}
  0x84   : > { %s5740_s3 = sld [smem:[#allocation52_spill]]  ;;  %s4867_s27 = smov [#allocation19]  }
  0x85   : > { %s1045_s2 = sshll.u32 %s4867_s27, 4  ;;  %s4336_s7 = scalar_lea.vmem %s1018_s9, 16  ;;  %s1046_s2 = int_to_ptr.vmem [resolvable:$true] %s1045_s2 }
  0x86   : > { %p4337_p10 = scmp.ne.s32.totalorder %s1018_s9, %s4336_s7  ;;  %s4343_s22 = scalar_lea.vmem %s1018_s9, 32 }
  0x87   : > { %p4344_p0 = scmp.lt.s32.totalorder %s1018_s9, %s1018_s9  ;;  %p4345_p5 = scmp.lt.s32.totalorder %s4343_s22, %s4336_s7 }
  0x88   : > { %p4339_p12 = pnand %p4337_p10, %p5140_p7 }
  0x89   : > { %p4346_p2 = por %p4345_p5, %p4344_p0 }
  0x8a   : > { %4034 = dma.hbm_to_vmem [thread:$0]  (!%p5130_p6), %s5740_s3, 16, %s5134_s10, [#allocation14]  }
  0x8b   : > { %p4340_p13 = pneg %p4339_p12 }
  0x8d   : > { %p4347_p8 = pnand %p4346_p2, %p4340_p13 }
  0x8f   : > { %4350 = shalt.err (!%p4347_p8)
}
  0x90   : > { %s5741_s14 = sld [smem:[#allocation54_spill]]  ;;  %s4362_s10 = scalar_lea.vmem %s1046_s2, 16 }
  0x91   : > { %p4363_p9 = scmp.ne.s32.totalorder %s1046_s2, %s4362_s10  ;;  %s4369_s23 = scalar_lea.vmem %s1046_s2, 32 }
  0x92   : > { %p4370_p10 = scmp.lt.s32.totalorder %s1046_s2, %s1046_s2  ;;  %p4371_p12 = scmp.lt.s32.totalorder %s4369_s23, %s4362_s10 }
  0x93   : > { %p4365_p11 = pnand %p4363_p9, %p5140_p7 }
  0x94   : > { %p4372_p1 = por %p4371_p12, %p4370_p10 }
  0x95   : > { %p4366_p4 = pneg %p4365_p11 }
  0x96   : > { %4040 = dma.hbm_to_vmem [thread:$0]  (!%p5130_p6), %s5741_s14, 16, %s1018_s9, [#allocation17]  }
  0x97   : > { %p4373_p3 = pnand %p4372_p1, %p4366_p4 }
  0x99   : > { %4376 = shalt.err (!%p4373_p3)
}
  0x9a   : > { %s5742_s6 = sld [smem:[#allocation57_spill]]  ;;  %s4868_s1 = smov [#allocation22]  }
  0x9b   : > { %s1073_s27 = sshll.u32 %s4868_s1, 4  ;;  %s4869_s9 = smov [#allocation25]   ;;  %s1074_s27 = int_to_ptr.vmem [resolvable:$true] %s1073_s27 }
  0x9c   : > { %s1095_s7 = sshll.u32 %s4869_s9, 4  ;;  %s4388_s22 = scalar_lea.vmem %s1074_s27, 16  ;;  %s1096_s7 = int_to_ptr.vmem [resolvable:$true] %s1095_s7 }
  0x9d   : > { %p4389_p13 = scmp.ne.s32.totalorder %s1074_s27, %s4388_s22  ;;  %s4395_s3 = scalar_lea.vmem %s1074_s27, 32 }
  0x9e   : > { %p4396_p2 = scmp.lt.s32.totalorder %s1074_s27, %s1074_s27  ;;  %p4397_p8 = scmp.lt.s32.totalorder %s4395_s3, %s4388_s22 }
  0x9f   : > { %p4391_p0 = pnand %p4389_p13, %p5140_p7 }
  0xa0   : > { %4046 = dma.hbm_to_vmem [thread:$0]  (!%p5130_p6), %s5742_s6, 16, %s1046_s2, [#allocation20]  }
  0xa1   : > { %p4392_p5 = pneg %p4391_p0  ;;  %p4398_p1 = por %p4397_p8, %p4396_p2 }
  0xa3   : > { %p4399_p3 = pnand %p4398_p1, %p4392_p5 }
  0xa5   : > { %4402 = shalt.err (!%p4399_p3)
}
  0xa6   : > { %s5743_s4 = sld [smem:[#allocation61_spill]]  ;;  %s4414_s2 = scalar_lea.vmem %s1096_s7, 16 }
  0xa7   : > { %p4415_p4 = scmp.ne.s32.totalorder %s1096_s7, %s4414_s2  ;;  %s4421_s10 = scalar_lea.vmem %s1096_s7, 32 }
  0xa8   : > { %p4422_p10 = scmp.lt.s32.totalorder %s1096_s7, %s1096_s7  ;;  %p4423_p12 = scmp.lt.s32.totalorder %s4421_s10, %s4414_s2 }
  0xa9   : > { %p4417_p9 = pnand %p4415_p4, %p5140_p7 }
  0xaa   : > { %p4424_p13 = por %p4423_p12, %p4422_p10 }
  0xab   : > { %p4418_p11 = pneg %p4417_p9 }
  0xac   : > { %4052 = dma.hbm_to_vmem [thread:$0]  (!%p5130_p6), %s5743_s4, 16, %s1074_s27, [#allocation23]  }
  0xad   : > { %p4425_p0 = pnand %p4424_p13, %p4418_p11 }
  0xaf   : > { %4428 = shalt.err (!%p4425_p0)
}
  0xb0   : > { %s5744_s12 = sld [smem:[#allocation62_spill]]  ;;  %s4870_s3 = smov [#allocation28]  }
  0xb1   : > { %s1125_s23 = sshll.u32 %s4870_s3, 4  ;;  %s4871_s1 = smov [#allocation12]   ;;  %s1126_s23 = int_to_ptr.vmem [resolvable:$true] %s1125_s23 }
  0xb2   : > { %s981_s27 = sshll.u32 %s4871_s1, 4  ;;  %s4440_s9 = scalar_lea.vmem %s1126_s23, 16  ;;  %s982_s27 = int_to_ptr.vmem [resolvable:$true] %s981_s27 }
  0xb3   : > { %p4441_p5 = scmp.ne.s32.totalorder %s1126_s23, %s4440_s9  ;;  %s4447_s22 = scalar_lea.vmem %s1126_s23, 32 }
  0xb4   : > { %p4448_p1 = scmp.lt.s32.totalorder %s1126_s23, %s1126_s23  ;;  %p4449_p3 = scmp.lt.s32.totalorder %s4447_s22, %s4440_s9 }
  0xb5   : > { %p4443_p2 = pnand %p4441_p5, %p5140_p7 }
  0xb6   : > { %4058 = dma.hbm_to_vmem [thread:$0]  (!%p5130_p6), %s5744_s12, 16, %s1096_s7, [#allocation26]  }
  0xb7   : > { %p4444_p8 = pneg %p4443_p2  ;;  %p4450_p4 = por %p4449_p3, %p4448_p1 }
  0xb9   : > { %p4451_p9 = pnand %p4450_p4, %p4444_p8 }
  0xbb   : > { %4454 = shalt.err (!%p4451_p9)
}
  0xbc   : > { %4064 = dma.hbm_to_vmem [thread:$0]  (!%p5130_p6), %s5016_s21, 16, %s1126_s23, [#allocation29]  }
  0xbd   : > { %s4466_s7 = scalar_lea.vmem %s982_s27, 16  ;;  %s4473_s2 = scalar_lea.vmem %s982_s27, 32 }
  0xbe   : > { %p4467_p11 = scmp.ne.s32.totalorder %s982_s27, %s4466_s7  ;;  %p4474_p13 = scmp.lt.s32.totalorder %s982_s27, %s982_s27 }
  0xbf   : > { %p4475_p0 = scmp.lt.s32.totalorder %s4473_s2, %s4466_s7 }
  0xc0   : > { %p4469_p10 = pnand %p4467_p11, %p5140_p7 }
  0xc1   : > { %p4476_p5 = por %p4475_p0, %p4474_p13 }
  0xc2   : > { %p4470_p12 = pneg %p4469_p10 }
  0xc4   : > { %p4477_p2 = pnand %p4476_p5, %p4470_p12 }
  0xc6   : > { %4480 = shalt.err (!%p4477_p2)
}
  0xc7   : > { %4031 = dma.hbm_to_vmem [thread:$0]  (!%p5130_p6), %s4926_s25, 16, %s982_s27, [#allocation11]  }
  0xc8   : > { %s4872_s10 = smov [#allocation15]   ;;  %s4873_s23 = smov [#allocation18]  }
  0xc9   : > { %s1006_s3 = sshll.u32 %s4872_s10, 4  ;;  %s1031_s1 = sshll.u32 %s4873_s23, 4  ;;  %s1007_s3 = int_to_ptr.vmem [resolvable:$true] %s1006_s3  ;;  %s1032_s1 = int_to_ptr.vmem [resolvable:$true] %s1031_s1 }
  0xca   : > { %s4492_s9 = scalar_lea.vmem %s1007_s3, 16  ;;  %s4499_s22 = scalar_lea.vmem %s1007_s3, 32 }
  0xcb   : > { %p4493_p8 = scmp.ne.s32.totalorder %s1007_s3, %s4492_s9  ;;  %p4500_p4 = scmp.lt.s32.totalorder %s1007_s3, %s1007_s3 }
  0xcc   : > { %p4501_p9 = scmp.lt.s32.totalorder %s4499_s22, %s4492_s9 }
  0xcd   : > { %p4495_p1 = pnand %p4493_p8, %p5140_p7 }
  0xce   : > { %p4502_p11 = por %p4501_p9, %p4500_p4 }
  0xcf   : > { %p4496_p3 = pneg %p4495_p1 }
  0xd1   : > { %p4503_p10 = pnand %p4502_p11, %p4496_p3 }
  0xd3   : > { %4506 = shalt.err (!%p4503_p10)
}
  0xd4   : > { %s5745_s8 = sld [smem:[#allocation53_spill]]  ;;  %s4518_s27 = scalar_lea.vmem %s1032_s1, 16 }
  0xd5   : > { %p4519_p12 = scmp.ne.s32.totalorder %s1032_s1, %s4518_s27  ;;  %s4525_s7 = scalar_lea.vmem %s1032_s1, 32 }
  0xd6   : > { %p4526_p5 = scmp.lt.s32.totalorder %s1032_s1, %s1032_s1  ;;  %p4527_p2 = scmp.lt.s32.totalorder %s4525_s7, %s4518_s27 }
  0xd7   : > { %p4521_p13 = pnand %p4519_p12, %p5140_p7 }
  0xd8   : > { %p4528_p8 = por %p4527_p2, %p4526_p5 }
  0xd9   : > { %p4522_p0 = pneg %p4521_p13 }
  0xda   : > { %4037 = dma.hbm_to_vmem [thread:$0]  (!%p5130_p6), %s5745_s8, 16, %s1007_s3, [#allocation14]  }
  0xdb   : > { %p4529_p1 = pnand %p4528_p8, %p4522_p0 }
  0xdd   : > { %4532 = shalt.err (!%p4529_p1)
}
  0xde   : > { %4043 = dma.hbm_to_vmem [thread:$0]  (!%p5130_p6), %s4956_s24, 16, %s1032_s1, [#allocation17]  }
  0xdf   : > { %s4874_s2 = smov [#allocation21]   ;;  %s4875_s3 = smov [#allocation24]  }
  0xe0   : > { %s1059_s10 = sshll.u32 %s4874_s2, 4  ;;  %s1084_s23 = sshll.u32 %s4875_s3, 4  ;;  %s1060_s10 = int_to_ptr.vmem [resolvable:$true] %s1059_s10  ;;  %s1085_s23 = int_to_ptr.vmem [resolvable:$true] %s1084_s23 }
  0xe1   : > { %s4544_s9 = scalar_lea.vmem %s1060_s10, 16  ;;  %s4551_s22 = scalar_lea.vmem %s1060_s10, 32 }
  0xe2   : > { %p4545_p3 = scmp.ne.s32.totalorder %s1060_s10, %s4544_s9  ;;  %p4552_p11 = scmp.lt.s32.totalorder %s1060_s10, %s1060_s10 }
  0xe3   : > { %p4553_p10 = scmp.lt.s32.totalorder %s4551_s22, %s4544_s9 }
  0xe4   : > { %p4547_p4 = pnand %p4545_p3, %p5140_p7 }
  0xe5   : > { %p4554_p12 = por %p4553_p10, %p4552_p11 }
  0xe6   : > { %p4548_p9 = pneg %p4547_p4 }
  0xe8   : > { %p4555_p13 = pnand %p4554_p12, %p4548_p9 }
  0xea   : > { %4558 = shalt.err (!%p4555_p13)
}
  0xeb   : > { %s5746_s20 = sld [smem:[#allocation59_spill]]  ;;  %s4570_s1 = scalar_lea.vmem %s1085_s23, 16 }
  0xec   : > { %p4571_p0 = scmp.ne.s32.totalorder %s1085_s23, %s4570_s1  ;;  %s4577_s27 = scalar_lea.vmem %s1085_s23, 32 }
  0xed   : > { %p4578_p8 = scmp.lt.s32.totalorder %s1085_s23, %s1085_s23  ;;  %p4579_p1 = scmp.lt.s32.totalorder %s4577_s27, %s4570_s1 }
  0xee   : > { %p4573_p5 = pnand %p4571_p0, %p5140_p7 }
  0xef   : > { %p4580_p3 = por %p4579_p1, %p4578_p8 }
  0xf0   : > { %p4574_p2 = pneg %p4573_p5 }
  0xf1   : > { %4049 = dma.hbm_to_vmem [thread:$0]  (!%p5130_p6), %s5746_s20, 16, %s1060_s10, [#allocation20]  }
  0xf2   : > { %p4581_p4 = pnand %p4580_p3, %p4574_p2 }
  0xf4   : > { %4584 = shalt.err (!%p4581_p4)
}
  0xf5   : > { %4055 = dma.hbm_to_vmem [thread:$0]  (!%p5130_p6), %s4991_s30, 16, %s1085_s23, [#allocation23]  }
  0xf6   : > { %s4876_s7 = smov [#allocation27]  }
  0xf7   : > { %s1111_s2 = sshll.u32 %s4876_s7, 4  ;;  %s1112_s2 = int_to_ptr.vmem [resolvable:$true] %s1111_s2 }
  0xf8   : > { %s4596_s10 = scalar_lea.vmem %s1112_s2, 512  ;;  %p4604_p12 = scmp.lt.s32.totalorder %s1112_s2, %s1112_s2 }
  0xf9   : > { %p4597_p9 = scmp.ne.s32.totalorder %s1112_s2, %s4596_s10  ;;  %p4605_p13 = scmp.lt.s32.totalorder %s4596_s10, %s4596_s10 }
  0xfb   : > { %p4599_p11 = pnand %p4597_p9, %p5140_p7  ;;  %p4606_p0 = por %p4605_p13, %p4604_p12 }
  0xfd   : > { %p4600_p10 = pneg %p4599_p11 }
  0xff   : > { %p4607_p5 = pnand %p4606_p0, %p4600_p10 }
 0x101   : > { %4610 = shalt.err (!%p4607_p5)
}
 0x102   : > { %s4877_s3 = smov 128   ;;  %s4878_s9 = smov 8  }
 0x103   : > { %4061 = dma.hbm_to_vmem [thread:$0]  (!%p5130_p6), %s5011_s29, 512, %s1112_s2, [#allocation26], %s4877_s3, %s4877_s3, %s4878_s9  }
 0x104   : > { %s4879_s23 = smov [#allocation30]   ;;  %s4880_s1 = smov [#allocation31]  }
 0x105   : > { %s1147_s22 = sshll.u32 %s4879_s23, 4  ;;  %s1169_s27 = sshll.u32 %s4880_s1, 4  ;;  %s1148_s22 = int_to_ptr.vmem [resolvable:$true] %s1147_s22  ;;  %s1170_s27 = int_to_ptr.vmem [resolvable:$true] %s1169_s27 }
 0x106   : > { %s4622_s7 = scalar_lea.vmem %s1148_s22, 512  ;;  %p4630_p3 = scmp.lt.s32.totalorder %s1148_s22, %s1148_s22 }
 0x107   : > { %p4623_p2 = scmp.ne.s32.totalorder %s1148_s22, %s4622_s7  ;;  %p4631_p4 = scmp.lt.s32.totalorder %s4622_s7, %s4622_s7 }
 0x109   : > { %p4625_p8 = pnand %p4623_p2, %p5140_p7  ;;  %p4632_p9 = por %p4631_p4, %p4630_p3 }
 0x10b   : > { %p4626_p1 = pneg %p4625_p8 }
 0x10d   : > { %p4633_p11 = pnand %p4632_p9, %p4626_p1 }
 0x10f   : > { %4636 = shalt.err (!%p4633_p11)
}
 0x110   : > { %s5747_s2 = sld [smem:[#allocation69_spill]]  ;;  %s4648_s10 = scalar_lea.vmem %s1170_s27, 512 }
 0x111   : > { %p4649_p10 = scmp.ne.s32.totalorder %s1170_s27, %s4648_s10  ;;  %p4656_p0 = scmp.lt.s32.totalorder %s1170_s27, %s1170_s27 }
 0x112   : > { %p4657_p5 = scmp.lt.s32.totalorder %s4648_s10, %s4648_s10 }
 0x113   : > { %p4651_p12 = pnand %p4649_p10, %p5140_p7 }
 0x114   : > { %p4658_p2 = por %p4657_p5, %p4656_p0 }
 0x115   : > { %p4652_p13 = pneg %p4651_p12 }
 0x116   : > { %4067 = dma.hbm_to_vmem [thread:$0]  (!%p5130_p6), %s5747_s2, 512, %s1148_s22, [#allocation29], %s4877_s3, %s4877_s3, %s4878_s9  }
 0x117   : > { %p4659_p8 = pnand %p4658_p2, %p4652_p13 }
 0x119   : > { %4662 = shalt.err (!%p4659_p8)
}
 0x11a   : > { %s5748_s23 = sld [smem:[#allocation73_spill]]  ;;  %s3595_s19 = sadd.s32 4294967294, %s4823_s18  }
 0x11b   : > { %s5248_s11 = sadd.s32 1, %s4823_s18   ;;  %s111_s1 = sadd.s32 1, %s4819_s0 }
 0x11c   : > { %s108_s22 = ssub.s32 %s4823_s18, %s5248_s11  ;;  %s5749_s7 = sld [smem:[#allocation46_spill]] }
 0x11d   : > { %p109_p7 = scmp.eq.s32.totalorder %s108_s22, 0  ;;  %p118_p1 = scmp.ne.s32.totalorder %s4819_s0, %s4815_s16 }
 0x11e   : > { %p119_p3 = scmp.eq.s32.totalorder %s4823_s18, 0  ;;  %p124_p4 = scmp.ne.s32.totalorder %s4815_s16, %s4811_s15 }
 0x11f   : > { %s5259_s2 = scalar_select %p109_p7, %s4819_s0, %s111_s1  }
 0x120   : > { %4070 = dma.hbm_to_vmem [thread:$0]  (!%p5130_p6), %s5748_s23, 512, %s1170_s27, [#allocation32], %s4877_s3, %s4877_s3, %s4878_s9  }
 0x121   : > { %p5261_p9 = por %p119_p3, %p118_p1  ;;  %p5751_p6 = scmp.eq.s32.totalorder %s5114_s26, 0 }
 0x122   : > { %p930_p10 = scmp.eq.s32.totalorder %s5114_s26, 1  ;;  %p936_p12 = scmp.eq.s32.totalorder %s3595_s19, 1 }
 0x123   : > { %p5267_p11 = por %p5751_p6, %p124_p4  ;;  %p4098_p13 = scmp.lt.s32.totalorder %s4823_s18, 2 }
 0x124   : > { %s5274_s9 = sand.u32 1, %s4819_s0   ;;  %p5276_p0 = por %p930_p10, %p118_p1 }
 0x125   : > { %s5752_s3 = scalar_select %p5267_p11, 1, 0 }
 0x126   : > { %s5753_s27 = scalar_select %p5276_p0, 1, 0 }
 0x127   : > { %p5280_p5 = por %p936_p12, %p124_p4  ;;  %s3614_s22 = sshll.u32 %s5274_s9, 3 }
 0x128   : > { %s3615_s1 = sshll.u32 %s4823_s18, 7  ;;  %s1202_s19 = scalar_lea.vmem [#allocation4], %s3614_s22 }
 0x129   : > { %s5754_s23 = scalar_select %p5280_p5, 1, 0 }
 0x12a   : > { %s5287_s4 = scalar_lea.hbm %s5749_s7, %s3615_s1  ;;  %s1209_s6 = sshll.u32 %s1202_s19, 4  ;;  %s5289_s6 = int_to_ptr.vmem [resolvable:$true] %s1209_s6 }
 0x12b   : > { %p5293_p2 = pnand %p4098_p13, %p5261_p9  ;;  %s1199_s13 = scalar_lea.sflag [#allocation5], %s5274_s9 }
 0x12c   : > { %s4663_s14 = scalar_lea.hbm %s5287_s4, 128  ;;  %s4668_s22 = scalar_lea.hbm %s5749_s7, 256 }
 0x12d   : > { %p4664_p8 = scmp.ne.s32.totalorder %s5287_s4, %s4663_s14  ;;  %p4665_p7 = pneg %p5293_p2 }
 0x12e   : > { %p4669_p4 = scmp.lt.s32.totalorder %s5287_s4, %s5749_s7  ;;  %p4670_p6 = scmp.lt.s32.totalorder %s4668_s22, %s4663_s14 }
 0x12f   : > { %p4666_p1 = pnand %p4665_p7, %p4664_p8 }
 0x130   : > { %p4671_p10 = por %p4670_p6, %p4669_p4 }
 0x131   : > { %p4667_p3 = pneg %p4666_p1 }
 0x133   : > { %p4672_p9 = pnand %p4671_p10, %p4667_p3 }
 0x135   : > { %4675 = shalt.err (!%p4672_p9)
}
 0x136   : > { %s4676_s10 = scalar_lea.vmem %s5289_s6, 128  ;;  %s4881_s1 = smov [#allocation4]  }
 0x137   : > { %p4677_p12 = scmp.ne.s32.totalorder %s5289_s6, %s4676_s10  ;;  %s4681_s19 = sshll.u32 %s4881_s1, 4  ;;  %s4682_s19 = int_to_ptr.vmem [resolvable:$false] %s4681_s19 }
 0x138   : > { %s4683_s12 = scalar_lea.vmem %s4682_s19, 256  ;;  %p4684_p8 = scmp.lt.s32.totalorder %s5289_s6, %s4682_s19 }
 0x139   : > { %p4679_p13 = pnand %p4677_p12, %p4665_p7  ;;  %p4685_p1 = scmp.lt.s32.totalorder %s4683_s12, %s4676_s10 }
 0x13b   : > { %p4680_p5 = pneg %p4679_p13  ;;  %p4686_p0 = por %p4685_p1, %p4684_p8 }
 0x13d   : > { %p4687_p4 = pnand %p4686_p0, %p4680_p5 }
 0x13f   : > { %4690 = shalt.err (!%p4687_p4)
}
 0x140   : > { %s5756_s14 = sld [smem:[#allocation47_spill]]  ;;  %s3616_s22 = sshll.u32 %s4823_s18, 4 }
 0x141   : > { %4074 = dma.hbm_to_vmem [thread:$0]  (!%p5293_p2), %s5287_s4, 128, %s5289_s6, %s1199_s13  }
 0x142   : > { %s1219_s1 = scalar_lea.vmem [#allocation7], %s5274_s9  ;;  %s5757_s12 = sand.u32 1, %s4823_s18  }
 0x143   : > { %s1226_s7 = sshll.u32 %s1219_s1, 4  ;;  %s1217_s10 = scalar_lea.sflag [#allocation8], %s5757_s12  ;;  %s1227_s7 = int_to_ptr.vmem [resolvable:$true] %s1226_s7 }
 0x146   : > { %s1224_s19 = scalar_lea.hbm %s5756_s14, %s3616_s22  ;;  %s4696_s20 = scalar_lea.hbm %s5756_s14, 32 }
 0x147   : > { %s4691_s17 = scalar_lea.hbm %s1224_s19, 16  ;;  %p4697_p6 = scmp.lt.s32.totalorder %s1224_s19, %s5756_s14 }
 0x148   : > { %p4692_p0 = scmp.ne.s32.totalorder %s1224_s19, %s4691_s17  ;;  %p4698_p10 = scmp.lt.s32.totalorder %s4696_s20, %s4691_s17 }
 0x14a   : > { %p4694_p5 = pnand %p4692_p0, %p4665_p7  ;;  %p4699_p9 = por %p4698_p10, %p4697_p6 }
 0x14c   : > { %p4695_p3 = pneg %p4694_p5 }
 0x14e   : > { %p4700_p12 = pnand %p4699_p9, %p4695_p3 }
 0x150   : > { %4703 = shalt.err (!%p4700_p12)
}
 0x151   : > { %s4704_s13 = scalar_lea.vmem %s1227_s7, 16  ;;  %s4882_s6 = smov [#allocation7]  }
 0x152   : > { %p4705_p13 = scmp.ne.s32.totalorder %s1227_s7, %s4704_s13  ;;  %s4709_s4 = sshll.u32 %s4882_s6, 4  ;;  %s4710_s4 = int_to_ptr.vmem [resolvable:$false] %s4709_s4 }
 0x153   : > { %s4711_s9 = scalar_lea.vmem %s4710_s4, 32  ;;  %p4712_p4 = scmp.lt.s32.totalorder %s1227_s7, %s4710_s4 }
 0x154   : > { %p4707_p8 = pnand %p4705_p13, %p4665_p7  ;;  %p4713_p0 = scmp.lt.s32.totalorder %s4711_s9, %s4704_s13 }
 0x156   : > { %p4708_p1 = pneg %p4707_p8  ;;  %p4714_p5 = por %p4713_p0, %p4712_p4 }
 0x158   : > { %p4715_p11 = pnand %p4714_p5, %p4708_p1 }
 0x15a   : > { %4718 = shalt.err (!%p4715_p11)
}
 0x15b   : > { %4077 = dma.hbm_to_vmem [thread:$0]  (!%p5293_p2), %s1224_s19, 16, %s1227_s7, %s1217_s10  }
 0x15c   : > { %p5758_p3 = scmp.ne.s32.totalorder %s5735_s28, 0 }
 0x15d   : > { %s5337_s17 = sand.u32 (!%p5758_p3), 1, %s4815_s16   ;;  %p5759_p7 = scmp.ne.s32.totalorder (!%p5758_p3), %s5752_s3, 0 }
 0x15e   : > { %1235 = sbr.rel (%p5758_p3) target bundleno = 4970 (0x136a), region = 172  ;;  %s3618_s20 = sshll.u32 (!%p5758_p3), %s5337_s17, 3 }
 0x15f   : > { %s1238_s22 = scalar_lea.sflag (!%p5758_p3), [#allocation5], %s5337_s17  ;;  %s1241_s1 = scalar_lea.vmem (!%p5758_p3), [#allocation4], %s3618_s20 }
 0x163   : > { %4762 = dma.done.wait (%p5759_p7), %s1238_s22, 128  }
 0x164   : > { %4764 = vsyncadd (%p5759_p7), %s1238_s22, 4294967168  ;;  %s1246_s8 = sand.u32 1, %s5114_s26   ;;  %s1249_s7 = scalar_lea.vmem [#allocation7], %s5337_s17 }
 0x165   : > { %s1247_s28 = scalar_lea.sflag [#allocation8], %s1246_s8 }
 0x166   : > { %4766 = dma.done.wait (%p5759_p7), %s1247_s28, 16  }
 0x167   : > { %4768 = vsyncadd (%p5759_p7), %s1247_s28, 4294967280  ;;  %p5760_p11 = scmp.eq.s32.totalorder %s5114_s26, 0 }
 0x169   : > { %4770 = dma.done.wait (%p5760_p11), [#allocation8], 16   ;;  %p5761_p2 = pmov %p5760_p11 }
 0x16b   : > { %4772 = vsyncadd (%p5761_p2), [#allocation8], 4294967280  ;;  %p5762_p6 = pmov %p5761_p2 }
 0x16c   : > { %p5763_p10 = pmov %p5761_p2 }
 0x16d   : > { %4774 = dma.done.wait (%p5762_p6), [#allocation11], 32  }
 0x16e   : > { %4776 = vsyncadd (%p5763_p10), [#allocation11], 4294967264  ;;  %p5764_p9 = pmov %p5761_p2 }
 0x16f   : > { %p5765_p12 = pmov %p5761_p2 }
 0x170   : > { %4778 = dma.done.wait (%p5764_p9), [#allocation14], 32  }
 0x171   : > { %4780 = vsyncadd (%p5765_p12), [#allocation14], 4294967264  ;;  %p5766_p13 = pmov %p5761_p2 }
 0x172   : > { %p5767_p8 = pmov %p5761_p2 }
 0x173   : > { %4782 = dma.done.wait (%p5766_p13), [#allocation17], 32  }
 0x174   : > { %4784 = vsyncadd (%p5767_p8), [#allocation17], 4294967264  ;;  %p5768_p1 = pmov %p5761_p2 }
 0x176   : > { %4786 = dma.done.wait (%p5768_p1), [#allocation20], 32   ;;  %p5769_p4 = pmov %p5768_p1 }
 0x177   : > { %p5770_p0 = pmov %p5768_p1 }
 0x178   : > { %4788 = vsyncadd (%p5769_p4), [#allocation20], 4294967264 }
 0x179   : > { %4790 = dma.done.wait (%p5770_p0), [#allocation23], 32   ;;  %p5771_p5 = pmov %p5770_p0 }
 0x17a   : > { %p5772_p3 = pmov %p5770_p0 }
 0x17b   : > { %4792 = vsyncadd (%p5771_p5), [#allocation23], 4294967264 }
 0x17c   : > { %4794 = dma.done.wait (%p5772_p3), [#allocation26], 528   ;;  %p5773_p7 = pmov %p5770_p0 }
 0x17d   : > { %p5774_p11 = pmov %p5770_p0 }
 0x17e   : > { %4796 = vsyncadd (%p5773_p7), [#allocation26], 4294966768 }
 0x17f   : > { %4798 = dma.done.wait (%p5774_p11), [#allocation29], 528   ;;  %p5775_p2 = pmov %p5770_p0 }
 0x180   : > { %p5776_p6 = pmov %p5770_p0 }
 0x181   : > { %4800 = vsyncadd (%p5775_p2), [#allocation29], 4294966768 }
 0x182   : > { %4802 = dma.done.wait (%p5776_p6), [#allocation32], 512   ;;  %p5777_p10 = pmov %p5770_p0 }
 0x183   : > { %s5778_s3 = sld [smem:[#allocation50_spill]]  ;;  %vm1413_vm0 = vcmask 261120   ;;  %v5389_v0 = vld [vmem:[%s1241_s1] sm:$0xff]  ;;  %v4883_v8 = vmov 0.0   ;;  %vm4884_vm1 = vmmov 0   ;;  %vm1542_vm2 = vcmask 523264  }
 0x184   : > { %4804 = vsyncadd (%p5777_p10), [#allocation32], 4294966784  ;;  %v1414_v1 = vsel %vm1413_vm0, %v5389_v0, 0.0  ;;  %3775 = vmatprep.subr.mxu0 %v4883_v8  ;;  %s5779_s19 = sld [smem:[#allocation51_spill]]  ;;  %3783 = vmatprep.mubr.msk.f32.mxu0 %vm4884_vm1, %v4883_v8  ;;  %v3636_v21 = vld [vmem:[#allocation9] ss:$0 sm:$0xff] }
 0x185   : > { %1415 = vadd.xlane.f32.xlu0 %v1414_v1  ;;  %3786 = vmatprep.subr.mxu1 %v4883_v8  ;;  %v3637_v23 = vld [vmem:[#allocation10] ss:$0 sm:$0xff]  ;;  %v3638_v29 = vld [vmem:[#allocation12] ss:$0 sm:$0xff]  ;;  %s5780_s12 = sld [smem:[#allocation55_spill]]  ;;  %s4885_s6 = smov 120  }
 0x186   : > { %3802 = vmatprep.mubr.msk.f32.mxu1 %vm4884_vm1, %v4883_v8  ;;  %v3640_v34 = vld [vmem:[#allocation13] ss:$0 sm:$0xff]  ;;  %s5781_s10 = sld [smem:[#allocation58_spill]]  ;;  %v3642_v58 = vld [vmem:[#allocation15] ss:$0 sm:$0xff]  ;;  %vm1895_vm3 = vcmask 64512  }
 0x187   : > { %s5782_s13 = sld [smem:[#allocation56_spill]]  ;;  %v3643_v60 = vld [vmem:[#allocation16] ss:$0 sm:$0xff]  ;;  %s4887_s4 = smov 104   ;;  %vm2239_vm6 = vcmask 130112   ;;  %vm2413_vm7 = vcmask 195712  }
 0x188   : > { %s4888_s9 = smov 112   ;;  %s5783_s22 = sld [smem:[#allocation60_spill]]  ;;  %vm2587_vm8 = vcmask 261312   ;;  %vm2884_vm9 = vcmask 256000  }
 0x189   : > { %v1445_v7 = vld [vmem:[%s5778_s3 + $0x18] sm:$0xff]  ;;  %v1444_v9 = vld [vmem:[%s5778_s3 + $0x10] sm:$0xff]  ;;  %v1443_v10 = vld [vmem:[%s5778_s3 + $0x8] sm:$0xff]  ;;  %s4889_s1 = smov 8   ;;  %s4890_s8 = smov 16  }
 0x18a   : > { %3776 = vmatpush3.msra.mxu0 %v1445_v7  ;;  %v1442_v11 = vld [vmem:[%s5778_s3] sm:$0xff]  ;;  %v1534_v12 = vld [vmem:[%s5779_s19 + $0x38] sm:$0xff]  ;;  %v1533_v13 = vld [vmem:[%s5779_s19 + $0x30] sm:$0xff]  ;;  %s4891_s28 = smov 24   ;;  %2885 = vst.msk [vmem:[#allocation3] sm:$0x7] %vm2884_vm9, %v4883_v8 }
 0x18b   : > { %3777 = vmatprep.subr.mxu0 %v4883_v8  ;;  %3787 = vmatpush3.msra.mxu1 %v1534_v12  ;;  %v1532_v14 = vld [vmem:[%s5779_s19 + $0x28] sm:$0xff]  ;;  %v1531_v15 = vld [vmem:[%s5779_s19 + $0x20] sm:$0xff]  ;;  %v1530_v16 = vld [vmem:[%s5779_s19 + $0x18] sm:$0xff]  ;;  %2886 = vst.msk [vmem:[#allocation3 + $0xb] sm:$0x7] %vm2884_vm9, %v4883_v8  ;;  %s5795_s5 = sld [smem:[#allocation76_spill]] }
 0x18c   : > { %3778 = vmatpush3.msra.mxu0 %v1444_v9  ;;  %3788 = vmatprep.subr.mxu1 %v4883_v8  ;;  %v1529_v26 = vld [vmem:[%s5779_s19 + $0x10] sm:$0xff]  ;;  %v1528_v27 = vld [vmem:[%s5779_s19 + $0x8] sm:$0xff]  ;;  %v1527_v28 = vld [vmem:[%s5779_s19] sm:$0xff]  ;;  %s1409_s3 = scalar_lea.vmem [#allocation33], %s3618_s20  ;;  %p5799_p12 = scmp.ne.s32.totalorder %s5753_s27, 0 }
 0x18d   : > { %3779 = vmatprep.subr.mxu0 %v4883_v8  ;;  %3789 = vmatpush3.msra.mxu1 %v1533_v13  ;;  %v1650_v46 = vld [vmem:[%s5780_s12 + $0x18] sm:$0xff]  ;;  %v1649_v48 = vld [vmem:[%s5780_s12 + $0x10] sm:$0xff]  ;;  %v1648_v50 = vld [vmem:[%s5780_s12 + $0x8] sm:$0xff] }
 0x18e   : > { %3780 = vmatpush3.msra.mxu0 %v1443_v10  ;;  %3790 = vmatprep.subr.mxu1 %v4883_v8  ;;  %v1815_v47 = vld [vmem:[%s5781_s10 + $0x18] sm:$0xff]  ;;  %v1814_v49 = vld [vmem:[%s5781_s10 + $0x10] sm:$0xff]  ;;  %v1813_v51 = vld [vmem:[%s5781_s10 + $0x8] sm:$0xff] }
 0x18f   : > { %3781 = vmatprep.subr.mxu0 %v4883_v8  ;;  %3791 = vmatpush3.msra.mxu1 %v1532_v14  ;;  %v1647_v52 = vld [vmem:[%s5780_s12] sm:$0xff]  ;;  %v1734_v63 = vld [vmem:[%s5782_s13 + $0x18] sm:$0xff]  ;;  %v1732_v1 = vld [vmem:[%s5782_s13 + $0x8] sm:$0xff] }
 0x190   : > { %3782 = vmatpush3.msra.mxu0 %v1442_v11  ;;  %3792 = vmatprep.subr.mxu1 %v4883_v8  ;;  %v1812_v53 = vld [vmem:[%s5781_s10] sm:$0xff]  ;;  %v3646_v10 = vld [vmem:[#allocation19] ss:$0 sm:$0xff]  ;;  %v3648_v13 = vld [vmem:[#allocation21] ss:$0 sm:$0xff]  ;;  %s4892_s10 = smov [#allocation33]  }
 0x191   : > { %3805 = vmatprep.subr.mxu0 %v4883_v8  ;;  %3793 = vmatpush3.msra.mxu1 %v1531_v15 }
 0x192   : > { %3794 = vmatprep.subr.mxu1 %v4883_v8 }
 0x193   : > { %3795 = vmatpush3.msra.mxu1 %v1530_v16  ;;  %v1974_v16 = vlaneseq }
 0x194   : > { %3796 = vmatprep.subr.mxu1 %v4883_v8 }
 0x195   : > { %3797 = vmatpush3.msra.mxu1 %v1529_v26 }
 0x196   : > { %3798 = vmatprep.subr.mxu1 %v4883_v8 }
 0x197   : > { %3799 = vmatpush3.msra.mxu1 %v1528_v27 }
 0x198   : > { %3800 = vmatprep.subr.mxu1 %v4883_v8 }
 0x199   : > { %3801 = vmatpush3.msra.mxu1 %v1527_v28 }
 0x19a   : > { %3827 = vmatprep.subr.mxu1 %v4883_v8 }
 0x20e   : > { %v1416_v2 = vpop.xlane.xlu0 %1415 }
 0x20f   : > { %v1418_v3 = vmul.f32 0.03125, %v1416_v2  ;;  %v1731_v2 = vld [vmem:[%s5782_s13] sm:$0xff] }
 0x211   : > { %v1419_v4 = vsub.f32 %v5389_v0, %v1418_v3  ;;  %v3644_v3 = vld [vmem:[#allocation18] ss:$0 sm:$0xff] }
 0x213   : > { %v1420_v5 = vmul.f32 %v1419_v4, %v1419_v4 }
 0x215   : > { %v1421_v6 = vsel %vm1413_vm0, %v1420_v5, 0.0 }
 0x216   : > { %1422 = vadd.xlane.f32.xlu0 %v1421_v6 }
 0x29f   : > { %v1423_v17 = vpop.xlane.xlu0 %1422 }
 0x2a0   : > { %v1424_v18 = vmul.f32 0.03125, %v1423_v17  ;;  %v1893_v17 = vld [vmem:[%s1249_s7] sm:$0x1]  ;;  %s5784_s7 = sld [smem:[#allocation63_spill]] }
 0x2a1   : > { %vm1894_vm4 = vcmp.gt.f32.partialorder %v1893_v17, 0.5 }
 0x2a2   : > { %v1425_v19 = vadd.f32 1e-12, %v1424_v18  ;;  %v1975_v18 = vshrl.u32 %v1974_v16, 7 }
 0x2a4   : > { %4213 = vrsqrt.f32 %v1425_v19  ;;  %v1976_v19 = vsub.s32 0, %v1975_v18 }
 0x2b1   : > { %v4214_v20 = vpop.eup %4213 }
 0x2b2   : > { %v1427_v22 = vmul.f32 %v4214_v20, %v1419_v4  ;;  %v4886_v20 = vmov 0  }
 0x2b4   : > { %v1434_v24 = vmul.f32 %v3636_v21, %v1427_v22  ;;  %v1973_v21 = vsel %vm1894_vm4, 1, %v4886_v20 }
 0x2b5   : > { %v5483_v22 = vrot.slane %v1973_v21, %v1976_v19 }
 0x2b6   : > { %v1441_v25 = vadd.f32 %v3637_v23, %v1434_v24 }
 0x2b7   : > { %vm1978_vm5 = vcmp.eq.s32.totalorder %v5483_v22, 1 }
 0x2b8   : > { %3784 = vmatmul.mubr.msk.f32.vlgmr.msra.gmra.mxu0 %vm1413_vm0, %v1441_v25 }
 0x2b9   : > { %3813 = vmatprep.mubr.msk.f32.mxu0 %vm4884_vm1, %v4883_v8  ;;  %3806 = vmatpush3.msra.mxu0 %v1650_v46 }
 0x2ba   : > { %3807 = vmatprep.subr.mxu0 %v4883_v8 }
 0x2bb   : > { %3808 = vmatpush3.msra.mxu0 %v1649_v48 }
 0x2bc   : > { %3809 = vmatprep.subr.mxu0 %v4883_v8 }
 0x2bd   : > { %3810 = vmatpush3.msra.mxu0 %v1648_v50 }
 0x2be   : > { %3811 = vmatprep.subr.mxu0 %v4883_v8 }
 0x2bf   : > { %3812 = vmatpush3.msra.mxu0 %v1647_v52 }
 0x2c0   : > { %3816 = vmatprep.subr.mxu0 %v4883_v8 }
 0x378   : > { %v1522_v30 = vpop.f32.mrf.mxu0 }
 0x379   : > { %v1523_v31 = vadd.f32 %v3638_v29, %v1522_v30 }
 0x37a   : > { %v3785_v32 = vpop.f32.mrf.mxu0 }
 0x37b   : > { %v1526_v33 = vmax.f32 %v1523_v31, 0.0 }
 0x37d   : > { %3803 = vmatmul.mubr.msk.f32.vlgmr.msra.gmra.mxu1 %vm1542_vm2, %v1526_v33 }
 0x37e   : > { %3835 = vmatprep.mubr.msk.f32.mxu1 %vm4884_vm1, %v4883_v8  ;;  %3828 = vmatpush3.msra.mxu1 %v1815_v47 }
 0x37f   : > { %3829 = vmatprep.subr.mxu1 %v4883_v8 }
 0x380   : > { %3830 = vmatpush3.msra.mxu1 %v1814_v49 }
 0x381   : > { %3831 = vmatprep.subr.mxu1 %v4883_v8 }
 0x382   : > { %3832 = vmatpush3.msra.mxu1 %v1813_v51 }
 0x383   : > { %3833 = vmatprep.subr.mxu1 %v4883_v8 }
 0x384   : > { %3834 = vmatpush3.msra.mxu1 %v1812_v53 }
 0x385   : > { %3853 = vmatprep.subr.mxu1 %v4883_v8 }
 0x43d   : > { %v1612_v35 = vpop.f32.mrf.mxu1 }
 0x43e   : > { %v1613_v36 = vadd.f32 %v3640_v34, %v1612_v35 }
 0x43f   : > { %v3804_v37 = vpop.f32.mrf.mxu1 }
 0x440   : > { %v1616_v38 = vmul.f32 0.5, %v1613_v36 }
 0x442   : > { %v5432_v39 = vadd.f32 %v1616_v38, %v5389_v0  ;;  %v1733_v0 = vld [vmem:[%s5782_s13 + $0x10] sm:$0xff] }
 0x444   : > { %v1620_v40 = vsel %vm1413_vm0, %v5432_v39, 0.0 }
 0x445   : > { %1621 = vadd.xlane.f32.xlu1 %v1620_v40 }
 0x4ce   : > { %v1622_v41 = vpop.xlane.xlu1 %1621 }
 0x4cf   : > { %v1623_v42 = vmul.f32 0.03125, %v1622_v41 }
 0x4d1   : > { %v1624_v43 = vsub.f32 %v5432_v39, %v1623_v42 }
 0x4d3   : > { %v1625_v44 = vmul.f32 %v1624_v43, %v1624_v43 }
 0x4d5   : > { %v1626_v45 = vsel %vm1413_vm0, %v1625_v44, 0.0 }
 0x4d6   : > { %1627 = vadd.xlane.f32.xlu1 %v1626_v45 }
 0x55f   : > { %v1628_v54 = vpop.xlane.xlu1 %1627 }
 0x560   : > { %v1629_v55 = vmul.f32 0.03125, %v1628_v54 }
 0x562   : > { %v1630_v56 = vadd.f32 1e-12, %v1629_v55 }
 0x564   : > { %4215 = vrsqrt.f32 %v1630_v56 }
 0x571   : > { %v4216_v57 = vpop.eup %4215 }
 0x572   : > { %v1632_v59 = vmul.f32 %v4216_v57, %v1624_v43 }
 0x574   : > { %v1639_v61 = vmul.f32 %v3642_v58, %v1632_v59 }
 0x576   : > { %v1646_v62 = vadd.f32 %v3643_v60, %v1639_v61 }
 0x578   : > { %3814 = vmatmul.mubr.msk.f32.vlgmr.msra.gmra.mxu0 %vm1413_vm0, %v1646_v62  ;;  %3836 = vmatmul.mubr.msk.f32.vlgmr.msra.gmra.mxu1 %vm1413_vm0, %v1646_v62 }
 0x579   : > { %3817 = vmatpush3.msra.mxu0 %v1734_v63  ;;  %3824 = vmatprep.mubr.msk.f32.mxu0 %vm4884_vm1, %v4883_v8 }
 0x57a   : > { %3818 = vmatprep.subr.mxu0 %v4883_v8  ;;  %3855 = vmatprep.mubr.msk.f32.mxu1 %vm4884_vm1, %v4883_v8 }
 0x57b   : > { %3819 = vmatpush3.msra.mxu0 %v1733_v0 }
 0x57c   : > { %3820 = vmatprep.subr.mxu0 %v4883_v8 }
 0x57d   : > { %3821 = vmatpush3.msra.mxu0 %v1732_v1 }
 0x57e   : > { %3822 = vmatprep.subr.mxu0 %v4883_v8 }
 0x57f   : > { %3823 = vmatpush3.msra.mxu0 %v1731_v2 }
 0x580   : > { %3825 = vmatmul.mubr.msk.f32.vlgmr.msra.gmra.mxu0 %vm1413_vm0, %v1646_v62  ;;  %3838 = vmatprep.subr.mxu0 %v4883_v8 }
 0x581   : > { %3840 = vmatprep.mubr.msk.f32.mxu0 %vm4884_vm1, %v4883_v8 }
 0x638   : > { %v1727_v4 = vpop.f32.mrf.mxu0  ;;  %v1889_v5 = vpop.f32.mrf.mxu1 }
 0x639   : > { %v1728_v6 = vadd.f32 %v3644_v3, %v1727_v4  ;;  %v5474_v15 = vadd.f32 %v3648_v13, %v1889_v5 }
 0x63a   : > { %v3815_v7 = vpop.f32.mrf.mxu0  ;;  %v3837_v9 = vpop.f32.mrf.mxu1 }
 0x63b   : > { %2066 = vrot.lane.b32.xlu1 %v1728_v6, %s4885_s6 }
 0x640   : > { %v1808_v11 = vpop.f32.mrf.mxu0 }
 0x641   : > { %v1809_v12 = vadd.f32 %v3646_v10, %v1808_v11 }
 0x642   : > { %v3826_v14 = vpop.f32.mrf.mxu0 }
 0x643   : > { %3839 = vmatpush3.xpose.msk.msra.mxu0 %vm1895_vm3, %v1809_v12 }
 0x644   : > { %3843 = vmatprep.subr.mxu0 %v4883_v8 }
 0x646   : > { %3841 = vmatmul.mubr.msk.f32.vlgmr.msra.gmra.mxu0 %vm1895_vm3, %v1728_v6 }
 0x647   : > { %3844 = vmatpush3.msra.mxu0 %v5474_v15  ;;  %3845 = vmatprep.mubr.msk.f32.mxu0 %vm4884_vm1, %v4883_v8 }
 0x648   : > { %3848 = vmatprep.subr.mxu0 %v4883_v8 }
 0x6ad   : > { %v2067_v33 = vpop.permute.xlu1 %2066 }
 0x706   : > { %v1968_v23 = vpop.f32.mrf.mxu0 }
 0x707   : > { %v1972_v24 = vmul.f32 0.35355338, %v1968_v23 }
 0x708   : > { %v3842_v25 = vpop.f32.mrf.mxu0 }
 0x709   : > { %v1979_v26 = vsel %vm1978_vm5, %v1972_v24, -3.4028235e+38 }
 0x70a   : > { %v1980_v27 = vsel %vm1895_vm3, %v1979_v26, -inf }
 0x70b   : > { %1981 = vmax.xlane.f32.xlu0 %v1980_v27 }
 0x721   : > { %2068 = vrot.lane.b32.xlu0 %v1809_v12, %s4885_s6 }
 0x725   : > { %2417 = vrot.lane.b32.xlu0 %v1809_v12, %s4887_s4 }
 0x794   : > { %v1982_v28 = vpop.xlane.xlu0 %1981 }
 0x795   : > { %v1983_v29 = vsub.f32 %v1979_v26, %v1982_v28 }
 0x797   : > { %v1984_v30 = vmul.f32 1.442695, %v1983_v29  ;;  %v2593_v29 = vld [vmem:[%s5783_s22 + $0x18] sm:$0xff] }
 0x798   : > { %v2069_v40 = vpop.permute.xlu0 %2068 }
 0x799   : > { %4217 = vpow2.f32 %v1984_v30  ;;  %v2592_v30 = vld [vmem:[%s5783_s22 + $0x10] sm:$0xff] }
 0x79c   : > { %v2418_v42 = vpop.permute.xlu0 %2417 }
 0x7a6   : > { %v4218_v31 = vpop.eup %4217 }
 0x7a7   : > { %v1986_v32 = vsel %vm1895_vm3, %v4218_v31, 0.0 }
 0x7a8   : > { %1987 = vadd.xlane.f32.xlu1 %v1986_v32 }
 0x7b9   : > { %2243 = vrot.lane.b32.xlu1 %v1809_v12, %s4888_s9 }
 0x7bd   : > { %2241 = vrot.lane.b32.xlu1 %v1728_v6, %s4888_s9 }
 0x7c1   : > { %2415 = vrot.lane.b32.xlu1 %v1728_v6, %s4887_s4 }
 0x831   : > { %v1988_v34 = vpop.xlane.xlu1 %1987 }
 0x832   : > { %4219 = vrcp.f32 %v1988_v34 }
 0x835   : > { %v2244_v37 = vpop.permute.xlu1 %2243 }
 0x839   : > { %v2242_v41 = vpop.permute.xlu1 %2241 }
 0x83d   : > { %v2416_v43 = vpop.permute.xlu1 %2415 }
 0x83f   : > { %v4220_v35 = vpop.eup %4219 }
 0x840   : > { %v1990_v36 = vmul.f32 %v4220_v35, %v4218_v31  ;;  %v2591_v31 = vld [vmem:[%s5783_s22 + $0x8] sm:$0xff] }
 0x842   : > { %v1991_v38 = vsel %vm1978_vm5, %v1990_v36, 0.0 }
 0x843   : > { %3846 = vmatmul.mubr.msk.f32.vlgmr.msra.gmra.mxu0 %vm1895_vm3, %v1991_v38 }
 0x844   : > { %3849 = vmatpush3.xpose.msk.msra.mxu0 %vm1895_vm3, %v2069_v40  ;;  %3850 = vmatprep.mubr.msk.f32.mxu0 %vm4884_vm1, %v4883_v8 }
 0x845   : > { %3858 = vmatprep.subr.mxu0 %v4883_v8 }
 0x847   : > { %3851 = vmatmul.mubr.msk.f32.vlgmr.msra.gmra.mxu0 %vm1895_vm3, %v2067_v33  ;;  %v2590_v33 = vld [vmem:[%s5783_s22] sm:$0xff] }
 0x848   : > { %3859 = vmatpush3.xpose.msk.msra.mxu0 %vm1895_vm3, %v2244_v37  ;;  %3860 = vmatprep.mubr.msk.f32.mxu0 %vm4884_vm1, %v4883_v8 }
 0x849   : > { %3868 = vmatprep.subr.mxu0 %v4883_v8 }
 0x84b   : > { %3861 = vmatmul.mubr.msk.f32.vlgmr.msra.gmra.mxu0 %vm1895_vm3, %v2242_v41 }
 0x84c   : > { %3869 = vmatpush3.xpose.msk.msra.mxu0 %vm1895_vm3, %v2418_v42  ;;  %3870 = vmatprep.mubr.msk.f32.mxu0 %vm4884_vm1, %v4883_v8 }
 0x84d   : > { %3878 = vmatprep.subr.mxu0 %v4883_v8 }
 0x84f   : > { %3871 = vmatmul.mubr.msk.f32.vlgmr.msra.gmra.mxu0 %vm1895_vm3, %v2416_v43 }
 0x850   : > { %3886 = vmatprep.mubr.msk.f32.mxu0 %vm4884_vm1, %v4883_v8  ;;  %3879 = vmatpush3.msra.mxu0 %v2593_v29 }
 0x851   : > { %3880 = vmatprep.subr.mxu0 %v4883_v8 }
 0x852   : > { %3881 = vmatpush3.msra.mxu0 %v2592_v30 }
 0x853   : > { %3882 = vmatprep.subr.mxu0 %v4883_v8 }
 0x854   : > { %3883 = vmatpush3.msra.mxu0 %v2591_v31 }
 0x855   : > { %3884 = vmatprep.subr.mxu0 %v4883_v8 }
 0x856   : > { %3885 = vmatpush3.msra.mxu0 %v2590_v33 }
 0x857   : > { %3900 = vmatprep.subr.mxu0 %v4883_v8 }
 0x903   : > { %v2061_v44 = vpop.f32.mrf.mxu0 }
 0x904   : > { %2065 = vst.msk [vmem:[#allocation2] sm:$0xff] %vm1895_vm3, %v2061_v44  ;;  %v3663_v44 = vld [vmem:[#allocation22] ss:$0 sm:$0xff] }
 0x905   : > { %v3847_v45 = vpop.f32.mrf.mxu0 }
 0x907   : > { %v2140_v46 = vpop.f32.mrf.mxu0 }
 0x908   : > { %v2144_v47 = vmul.f32 0.35355338, %v2140_v46 }
 0x909   : > { %v3852_v48 = vpop.f32.mrf.mxu0 }
 0x90a   : > { %v2145_v49 = vsel %vm1978_vm5, %v2144_v47, -3.4028235e+38 }
 0x90b   : > { %v2315_v50 = vpop.f32.mrf.mxu0  ;;  %v2146_v51 = vsel %vm1895_vm3, %v2145_v49, -inf }
 0x90c   : > { %v2319_v52 = vmul.f32 0.35355338, %v2315_v50  ;;  %2147 = vmax.xlane.f32.xlu0 %v2146_v51 }
 0x90d   : > { %v3862_v53 = vpop.f32.mrf.mxu0 }
 0x90e   : > { %v2320_v54 = vsel %vm1978_vm5, %v2319_v52, -3.4028235e+38 }
 0x90f   : > { %v2489_v55 = vpop.f32.mrf.mxu0  ;;  %v2321_v56 = vsel %vm1895_vm3, %v2320_v54, -inf }
 0x910   : > { %v2493_v57 = vmul.f32 0.35355338, %v2489_v55  ;;  %2322 = vmax.xlane.f32.xlu1 %v2321_v56  ;;  %v2792_v55 = vld [vmem:[#allocation27 + $0x18] sm:$0xff]  ;;  %v2791_v56 = vld [vmem:[#allocation27 + $0x10] sm:$0xff] }
 0x911   : > { %v3872_v58 = vpop.f32.mrf.mxu0 }
 0x912   : > { %v2494_v59 = vsel %vm1978_vm5, %v2493_v57, -3.4028235e+38  ;;  %v2706_v57 = vld [vmem:[%s5784_s7 + $0x8] sm:$0xff] }
 0x913   : > { %v2495_v60 = vsel %vm1895_vm3, %v2494_v59, -inf  ;;  %v2790_v58 = vld [vmem:[#allocation27 + $0x8] sm:$0xff] }
 0x914   : > { %2496 = vmax.xlane.f32.xlu0 %v2495_v60  ;;  %v2789_v60 = vld [vmem:[#allocation27] sm:$0xff] }
 0x921   : > { %2333 = vrot.lane.b32.xlu1 %v5474_v15, %s4888_s9  ;;  %s5787_s9 = sld [smem:[#allocation66_spill]] }
 0x995   : > { %v2148_v61 = vpop.xlane.xlu0 %2147 }
 0x996   : > { %v2149_v62 = vsub.f32 %v2145_v49, %v2148_v61 }
 0x998   : > { %v2150_v63 = vmul.f32 1.442695, %v2149_v62 }
 0x999   : > { %v2323_v0 = vpop.xlane.xlu1 %2322 }
 0x99a   : > { %4221 = vpow2.f32 %v2150_v63  ;;  %v2324_v1 = vsub.f32 %v2320_v54, %v2323_v0  ;;  %v2708_v54 = vld [vmem:[%s5784_s7 + $0x18] sm:$0xff] }
 0x99c   : > { %v2325_v2 = vmul.f32 1.442695, %v2324_v1  ;;  %v3664_v1 = vld [vmem:[#allocation24] ss:$0 sm:$0xff] }
 0x99d   : > { %v2497_v3 = vpop.xlane.xlu0 %2496  ;;  %v2334_v14 = vpop.permute.xlu1 %2333 }
 0x99e   : > { %4223 = vpow2.f32 %v2325_v2  ;;  %v2498_v4 = vsub.f32 %v2494_v59, %v2497_v3  ;;  %v2705_v59 = vld [vmem:[%s5784_s7] sm:$0xff] }
 0x99f   : > { %v3665_v3 = vld [vmem:[#allocation25] ss:$0 sm:$0xff] }
 0x9a0   : > { %v2499_v5 = vmul.f32 1.442695, %v2498_v4 }
 0x9a2   : > { %4225 = vpow2.f32 %v2499_v5 }
 0x9a7   : > { %v4222_v6 = vpop.eup %4221 }
 0x9a8   : > { %v2152_v7 = vsel %vm1895_vm3, %v4222_v6, 0.0 }
 0x9a9   : > { %2153 = vadd.xlane.f32.xlu0 %v2152_v7  ;;  %v2983_v7 = vld [vmem:[#allocation30 + $0x10] sm:$0xff] }
 0x9ab   : > { %v4224_v9 = vpop.eup %4223 }
 0x9ac   : > { %v2327_v10 = vsel %vm1895_vm3, %v4224_v9, 0.0 }
 0x9ad   : > { %2328 = vadd.xlane.f32.xlu0 %v2327_v10  ;;  %v2981_v10 = vld [vmem:[#allocation30] sm:$0xff] }
 0x9af   : > { %v4226_v11 = vpop.eup %4225 }
 0x9b0   : > { %v2501_v12 = vsel %vm1895_vm3, %v4226_v11, 0.0 }
 0x9b1   : > { %2502 = vadd.xlane.f32.xlu1 %v2501_v12 }
 0x9c2   : > { %2507 = vrot.lane.b32.xlu1 %v5474_v15, %s4887_s4  ;;  %s5786_s4 = sld [smem:[#allocation65_spill]] }
 0x9c3   : > { %2159 = vrot.lane.b32.xlu0 %v5474_v15, %s4885_s6  ;;  %s5785_s6 = sld [smem:[#allocation64_spill]] }
 0x9c8   : > { %v3674_v31 = vld [vmem:[%s5786_s4 + $0x2] ss:$0 sm:$0xff] }
 0xa32   : > { %v2154_v13 = vpop.xlane.xlu0 %2153 }
 0xa33   : > { %4227 = vrcp.f32 %v2154_v13 }
 0xa36   : > { %v2329_v16 = vpop.xlane.xlu0 %2328 }
 0xa37   : > { %4229 = vrcp.f32 %v2329_v16 }
 0xa3a   : > { %v2503_v17 = vpop.xlane.xlu1 %2502  ;;  %v2160_v18 = vpop.permute.xlu0 %2159 }
 0xa3b   : > { %4231 = vrcp.f32 %v2503_v17  ;;  %3854 = vmatpush3.msra.mxu1 %v2160_v18 }
 0xa3c   : > { %3863 = vmatprep.subr.mxu1 %v4883_v8 }
 0xa3e   : > { %v2508_v26 = vpop.permute.xlu1 %2507 }
 0xa40   : > { %v4228_v19 = vpop.eup %4227 }
 0xa41   : > { %v2156_v20 = vmul.f32 %v4228_v19, %v4222_v6  ;;  %v2984_v6 = vld [vmem:[#allocation30 + $0x18] sm:$0xff] }
 0xa43   : > { %v2157_v21 = vsel %vm1978_vm5, %v2156_v20, 0.0 }
 0xa44   : > { %v4230_v23 = vpop.eup %4229  ;;  %3856 = vmatmul.mubr.msk.f32.vlgmr.msra.gmra.mxu1 %vm1895_vm3, %v2157_v21  ;;  %v3666_v21 = vld [vmem:[%s5785_s6] ss:$0 sm:$0xff]  ;;  %s5791_s6 = sld [smem:[#allocation75_spill]] }
 0xa45   : > { %3864 = vmatpush3.msra.mxu1 %v2334_v14  ;;  %3865 = vmatprep.mubr.msk.f32.mxu1 %vm4884_vm1, %v4883_v8  ;;  %v2331_v15 = vmul.f32 %v4230_v23, %v4224_v9  ;;  %v2982_v9 = vld [vmem:[#allocation30 + $0x8] sm:$0xff] }
 0xa46   : > { %3873 = vmatprep.subr.mxu1 %v4883_v8 }
 0xa47   : > { %v2332_v24 = vsel %vm1978_vm5, %v2331_v15, 0.0 }
 0xa48   : > { %v4232_v25 = vpop.eup %4231  ;;  %3866 = vmatmul.mubr.msk.f32.vlgmr.msra.gmra.mxu1 %vm1895_vm3, %v2332_v24 }
 0xa49   : > { %3874 = vmatpush3.msra.mxu1 %v2508_v26  ;;  %3875 = vmatprep.mubr.msk.f32.mxu1 %vm4884_vm1, %v4883_v8  ;;  %v2505_v27 = vmul.f32 %v4232_v25, %v4226_v11  ;;  %v3668_v11 = vld [vmem:[#allocation28] ss:$0 sm:$0xff]  ;;  %v3671_v25 = vld [vmem:[%s5786_s4] ss:$0 sm:$0xff]  ;;  %v3673_v26 = vld [vmem:[%s5786_s4 + $0x1] ss:$0 sm:$0xff] }
 0xa4a   : > { %3889 = vmatprep.subr.mxu1 %v4883_v8 }
 0xa4b   : > { %v2506_v28 = vsel %vm1978_vm5, %v2505_v27, 0.0  ;;  %v3672_v27 = vld [vmem:[%s5787_s9] ss:$0 sm:$0xff]  ;;  %s5792_s9 = sld [smem:[#allocation71_spill]] }
 0xa4c   : > { %3876 = vmatmul.mubr.msk.f32.vlgmr.msra.gmra.mxu1 %vm1895_vm3, %v2506_v28 }
 0xa4d   : > { %3897 = vmatprep.mubr.msk.f32.mxu1 %vm4884_vm1, %v4883_v8  ;;  %3890 = vmatpush3.msra.mxu1 %v2708_v54 }
 0xa4e   : > { %3891 = vmatprep.subr.mxu1 %v4883_v8 }
 0xb04   : > { %v2231_v32 = vpop.f32.mrf.mxu1 }
 0xb05   : > { %2236 = vrot.lane.b32.xlu1 %v2231_v32, %s4889_s1  ;;  %s5788_s1 = sld [smem:[#allocation67_spill]] }
 0xb06   : > { %v3857_v22 = vpop.f32.mrf.mxu1 }
 0xb08   : > { %v2405_v34 = vpop.f32.mrf.mxu1 }
 0xb09   : > { %2410 = vrot.lane.b32.xlu0 %v2405_v34, %s4890_s8  ;;  %v3675_v34 = vld [vmem:[%s5786_s4 + $0x3] ss:$0 sm:$0xff]  ;;  %s5789_s8 = sld [smem:[#allocation68_spill]] }
 0xb0a   : > { %v3867_v35 = vpop.f32.mrf.mxu1 }
 0xb0b   : > { %v3679_v54 = vld [vmem:[%s5788_s1] ss:$0 sm:$0xff]  ;;  %s5793_s1 = sld [smem:[#allocation72_spill]] }
 0xb0c   : > { %v2579_v36 = vpop.f32.mrf.mxu1 }
 0xb0d   : > { %2584 = vrot.lane.b32.xlu1 %v2579_v36, %s4891_s28  ;;  %s5790_s28 = sld [smem:[#allocation70_spill]] }
 0xb0e   : > { %v3877_v37 = vpop.f32.mrf.mxu1 }
 0xb77   : > { %v2237_v38 = vpop.permute.xlu1 %2236 }
 0xb78   : > { %2240 = vst.msk [vmem:[#allocation2] sm:$0xff] %vm2239_vm6, %v2237_v38  ;;  %v3676_v38 = vld [vmem:[%s5786_s4 + $0x4] ss:$0 sm:$0xff] }
 0xb7b   : > { %v2411_v40 = vpop.permute.xlu0 %2410 }
 0xb7c   : > { %2414 = vst.msk [vmem:[#allocation2] sm:$0xff] %vm2413_vm7, %v2411_v40 }
 0xb7f   : > { %v2585_v41 = vpop.permute.xlu1 %2584 }
 0xb80   : > { %2588 = vst.msk [vmem:[#allocation2] sm:$0xff] %vm2587_vm8, %v2585_v41 }
 0xb87   : > { %v2589_v42 = vld [vmem:[#allocation2] sm:$0xff] }
 0xb88   : > { %3887 = vmatmul.mubr.msk.f32.vlgmr.msra.gmra.mxu0 %vm1413_vm0, %v2589_v42 }
 0xb89   : > { %3908 = vmatprep.mubr.msk.f32.mxu0 %vm4884_vm1, %v4883_v8  ;;  %3901 = vmatpush3.msra.mxu0 %v2792_v55 }
 0xb8a   : > { %3902 = vmatprep.subr.mxu0 %v4883_v8 }
 0xb8b   : > { %3903 = vmatpush3.msra.mxu0 %v2791_v56 }
 0xb8c   : > { %3904 = vmatprep.subr.mxu0 %v4883_v8 }
 0xb8d   : > { %3905 = vmatpush3.msra.mxu0 %v2790_v58 }
 0xb8e   : > { %3906 = vmatprep.subr.mxu0 %v4883_v8 }
 0xb8f   : > { %3907 = vmatpush3.msra.mxu0 %v2789_v60 }
 0xb90   : > { %3922 = vmatprep.subr.mxu0 %v4883_v8 }
 0xc48   : > { %v2663_v43 = vpop.f32.mrf.mxu0 }
 0xc49   : > { %v2667_v45 = vadd.f32 %v2663_v43, %v5432_v39  ;;  %v2707_v39 = vld [vmem:[%s5784_s7 + $0x10] sm:$0xff]  ;;  %v3677_v43 = vld [vmem:[%s5786_s4 + $0x5] ss:$0 sm:$0xff] }
 0xc4a   : > { %v3888_v46 = vpop.f32.mrf.mxu0  ;;  %3892 = vmatpush3.msra.mxu1 %v2707_v39  ;;  %v3680_v39 = vld [vmem:[%s5789_s8] ss:$0 sm:$0xff]  ;;  %s5794_s8 = sld [smem:[#allocation74_spill]] }
 0xc4b   : > { %v5564_v47 = vadd.f32 %v3663_v44, %v2667_v45  ;;  %3893 = vmatprep.subr.mxu1 %v4883_v8 }
 0xc4c   : > { %3894 = vmatpush3.msra.mxu1 %v2706_v57 }
 0xc4d   : > { %v2678_v48 = vsel %vm1413_vm0, %v5564_v47, 0.0  ;;  %3895 = vmatprep.subr.mxu1 %v4883_v8 }
 0xc4e   : > { %2679 = vadd.xlane.f32.xlu0 %v2678_v48  ;;  %3896 = vmatpush3.msra.mxu1 %v2705_v59  ;;  %v3678_v48 = vld [vmem:[%s5786_s4 + $0x6] ss:$0 sm:$0xff]  ;;  %s3315_s4 = sshll.u32 %s1409_s3, 4  ;;  %s3316_s4 = int_to_ptr.vmem [resolvable:$true] %s3315_s4 }
 0xc4f   : > { %3911 = vmatprep.subr.mxu1 %v4883_v8  ;;  %s4719_s7 = scalar_lea.vmem %s3316_s4, 128 }
 0xc50   : > { %p4720_p9 = scmp.ne.s32.totalorder %s3316_s4, %s4719_s7 }
 0xc52   : > { %p4721_p13 = pnand %p4720_p9, %p5799_p12 }
 0xc54   : > { %p4722_p8 = pneg %p4721_p13 }
 0xcd7   : > { %v2680_v49 = vpop.xlane.xlu0 %2679 }
 0xcd8   : > { %v2681_v50 = vmul.f32 0.03125, %v2680_v49 }
 0xcda   : > { %v2682_v51 = vsub.f32 %v5564_v47, %v2681_v50 }
 0xcdc   : > { %v2683_v52 = vmul.f32 %v2682_v51, %v2682_v51 }
 0xcde   : > { %v2684_v53 = vsel %vm1413_vm0, %v2683_v52, 0.0 }
 0xcdf   : > { %2685 = vadd.xlane.f32.xlu1 %v2684_v53 }
 0xd68   : > { %v2686_v61 = vpop.xlane.xlu1 %2685 }
 0xd69   : > { %v2687_v62 = vmul.f32 0.03125, %v2686_v61 }
 0xd6b   : > { %v2688_v63 = vadd.f32 1e-12, %v2687_v62 }
 0xd6d   : > { %4233 = vrsqrt.f32 %v2688_v63 }
 0xd7a   : > { %v4234_v0 = vpop.eup %4233 }
 0xd7b   : > { %v2690_v2 = vmul.f32 %v4234_v0, %v2682_v51  ;;  %v3683_v0 = vld [vmem:[%s5790_s28] ss:$0 sm:$0xff]  ;;  %s5796_s28 = sld [smem:[#allocation77_spill]] }
 0xd7d   : > { %v2697_v4 = vmul.f32 %v3664_v1, %v2690_v2 }
 0xd7f   : > { %v2704_v5 = vadd.f32 %v3665_v3, %v2697_v4 }
 0xd81   : > { %3898 = vmatmul.mubr.msk.f32.vlgmr.msra.gmra.mxu1 %vm1413_vm0, %v2704_v5  ;;  %3909 = vmatmul.mubr.msk.f32.vlgmr.msra.gmra.mxu0 %vm1413_vm0, %v2704_v5 }
 0xd82   : > { %3919 = vmatprep.mubr.msk.f32.mxu1 %vm4884_vm1, %v4883_v8  ;;  %3930 = vmatprep.mubr.msk.f32.mxu0 %vm4884_vm1, %v4883_v8 }
 0xd83   : > { %3912 = vmatpush3.msra.mxu1 %v2984_v6 }
 0xd84   : > { %3913 = vmatprep.subr.mxu1 %v4883_v8 }
 0xd85   : > { %3914 = vmatpush3.msra.mxu1 %v2983_v7 }
 0xd86   : > { %3915 = vmatprep.subr.mxu1 %v4883_v8 }
 0xd87   : > { %3916 = vmatpush3.msra.mxu1 %v2982_v9 }
 0xd88   : > { %3917 = vmatprep.subr.mxu1 %v4883_v8 }
 0xd89   : > { %3918 = vmatpush3.msra.mxu1 %v2981_v10 }
 0xd8a   : > { %3933 = vmatprep.subr.mxu1 %v4883_v8 }
 0xe41   : > { %v2785_v12 = vpop.f32.mrf.mxu1  ;;  %v2866_v13 = vpop.f32.mrf.mxu0 }
 0xe42   : > { %v2867_v14 = vadd.f32 %v3668_v11, %v2866_v13  ;;  %v2786_v23 = vadd.f32 %v3666_v21, %v2785_v12  ;;  %v3099_v11 = vld [vmem:[#allocation31 + $0x18] sm:$0xff]  ;;  %v3097_v12 = vld [vmem:[#allocation31 + $0x8] sm:$0xff]  ;;  %v3096_v13 = vld [vmem:[#allocation31] sm:$0xff] }
 0xe43   : > { %v3899_v16 = vpop.f32.mrf.mxu1  ;;  %v3910_v17 = vpop.f32.mrf.mxu0  ;;  %3923 = vmatpush3.msra.mxu0 %v3099_v11 }
 0xe44   : > { %v3670_v18 = vmul.f32 -1.442695, %v2867_v14  ;;  %3924 = vmatprep.subr.mxu0 %v4883_v8  ;;  %v3188_v14 = vld [vmem:[%s5791_s6 + $0x38] sm:$0xff]  ;;  %v3187_v16 = vld [vmem:[%s5791_s6 + $0x30] sm:$0xff]  ;;  %v3186_v17 = vld [vmem:[%s5791_s6 + $0x28] sm:$0xff] }
 0xe46   : > { %4235 = vpow2.f32 %v3670_v18  ;;  %v3185_v18 = vld [vmem:[%s5791_s6 + $0x20] sm:$0xff] }
 0xe53   : > { %v4236_v19 = vpop.eup %4235 }
 0xe54   : > { %v2873_v20 = vadd.f32 1.0, %v4236_v19  ;;  %v3184_v19 = vld [vmem:[%s5791_s6 + $0x18] sm:$0xff] }
 0xe56   : > { %4237 = vrcp.f32 %v2873_v20 }
 0xe63   : > { %v4238_v15 = vpop.eup %4237 }
 0xe64   : > { %v2876_v24 = vmul.f32 %v4238_v15, %v2786_v23 }
 0xe66   : > { %2887 = vst.msk [vmem:[#allocation3 + $0x3] sm:$0xff] %vm1413_vm0, %v2876_v24  ;;  %v3684_v24 = vld [vmem:[%s5792_s9] ss:$0 sm:$0xff]  ;;  %s5797_s9 = sld [smem:[#allocation78_spill]] }
 0xe6d   : > { %v2889_v28 = vld [vmem:[#allocation3] sm:$0xff] }
 0xe6e   : > { %v2904_v29 = vld [vmem:[#allocation3 + $0x1] sm:$0xff]  ;;  %v2896_v30 = vmul.f32 %v3671_v25, %v2889_v28 }
 0xe6f   : > { %v2913_v32 = vld [vmem:[#allocation3 + $0x2] sm:$0xff]  ;;  %v2911_v22 = vmul.f32 %v3673_v26, %v2904_v29  ;;  %v3685_v26 = vld [vmem:[%s5793_s1] ss:$0 sm:$0xff]  ;;  %s5798_s1 = sld [smem:[#allocation79_spill]] }
 0xe70   : > { %v2903_v33 = vadd.f32 %v3672_v27, %v2896_v30  ;;  %v2922_v35 = vld [vmem:[#allocation3 + $0x3] sm:$0xff]  ;;  %v2920_v37 = vmul.f32 %v3674_v31, %v2913_v32  ;;  %v3181_v31 = vld [vmem:[%s5791_s6] sm:$0xff] }
 0xe71   : > { %v2931_v40 = vld [vmem:[#allocation3 + $0x4] sm:$0xff]  ;;  %v2929_v42 = vmul.f32 %v3675_v34, %v2922_v35  ;;  %v3686_v32 = vld [vmem:[%s5794_s8] ss:$0 sm:$0xff]  ;;  %s3693_s8 = sshll.u32 %s5114_s26, 7 }
 0xe72   : > { %v2912_v36 = vadd.f32 %v2911_v22, %v2903_v33  ;;  %v2940_v44 = vld [vmem:[#allocation3 + $0x5] sm:$0xff]  ;;  %v2938_v46 = vmul.f32 %v3676_v38, %v2931_v40 }
 0xe73   : > { %v2949_v49 = vld [vmem:[#allocation3 + $0x6] sm:$0xff]  ;;  %v2947_v51 = vmul.f32 %v3677_v43, %v2940_v44 }
 0xe74   : > { %v2921_v41 = vadd.f32 %v2920_v37, %v2912_v36  ;;  %v2956_v53 = vmul.f32 %v3678_v48, %v2949_v49  ;;  %v3183_v29 = vld [vmem:[%s5791_s6 + $0x10] sm:$0xff]  ;;  %v3182_v30 = vld [vmem:[%s5791_s6 + $0x8] sm:$0xff]  ;;  %v3688_v36 = vld [vmem:[%s5795_s5] ss:$0 sm:$0xff]  ;;  %s3302_s6 = scalar_lea.sflag [#allocation6], %s5337_s17 }
 0xe75   : > { %s3313_s5 = scalar_lea.hbm %s5798_s1, %s3693_s8 }
 0xe76   : > { %v2930_v45 = vadd.f32 %v2929_v42, %v2921_v41 }
 0xe78   : > { %v2939_v50 = vadd.f32 %v2938_v46, %v2930_v45 }
 0xe7a   : > { %v2948_v52 = vadd.f32 %v2947_v51, %v2939_v50 }
 0xe7c   : > { %v2957_v55 = vadd.f32 %v2956_v53, %v2948_v52  ;;  %v3690_v53 = vld [vmem:[%s5796_s28] ss:$0 sm:$0xff]  ;;  %s4723_s28 = sshll.u32 %s4892_s10, 4  ;;  %s4724_s28 = int_to_ptr.vmem [resolvable:$false] %s4723_s28 }
 0xe7d   : > { %p4726_p1 = scmp.lt.s32.totalorder %s3316_s4, %s4724_s28 }
 0xe7e   : > { %v2965_v56 = vmul.f32 %v3679_v54, %v2957_v55  ;;  %v3691_v55 = vld [vmem:[%s5797_s9] ss:$0 sm:$0xff]  ;;  %s4725_s9 = scalar_lea.vmem %s4724_s28, 256 }
 0xe7f   : > { %p4727_p4 = scmp.lt.s32.totalorder %s4725_s9, %s4719_s7 }
 0xe80   : > { %v2973_v57 = vadd.f32 %v3680_v39, %v2965_v56 }
 0xe81   : > { %p4728_p0 = por %p4727_p4, %p4726_p1 }
 0xe82   : > { %v3681_v58 = vmul.f32 -1.442695, %v2973_v57 }
 0xe83   : > { %p4729_p5 = pnand %p4728_p0, %p4722_p8 }
 0xe84   : > { %4239 = vpow2.f32 %v3681_v58 }
 0xe91   : > { %v4240_v59 = vpop.eup %4239 }
 0xe92   : > { %v2977_v60 = vadd.f32 1.0, %v4240_v59 }
 0xe94   : > { %4241 = vrcp.f32 %v2977_v60 }
 0xea1   : > { %v4242_v61 = vpop.eup %4241 }
 0xea2   : > { %v2980_v62 = vmul.f32 %v4242_v61, %v2973_v57 }
 0xea4   : > { %3920 = vmatmul.mubr.msk.f32.vlgmr.msra.gmra.mxu1 %vm1413_vm0, %v2980_v62 }
 0xea5   : > { %3949 = vmatprep.mubr.msk.f32.mxu1 %vm4884_vm1, %v4883_v8  ;;  %3934 = vmatpush3.msra.mxu1 %v3188_v14 }
 0xea6   : > { %3935 = vmatprep.subr.mxu1 %v4883_v8 }
 0xea7   : > { %3936 = vmatpush3.msra.mxu1 %v3187_v16 }
 0xea8   : > { %3937 = vmatprep.subr.mxu1 %v4883_v8 }
 0xea9   : > { %3938 = vmatpush3.msra.mxu1 %v3186_v17 }
 0xeaa   : > { %3939 = vmatprep.subr.mxu1 %v4883_v8 }
 0xeab   : > { %3940 = vmatpush3.msra.mxu1 %v3185_v18 }
 0xeac   : > { %3941 = vmatprep.subr.mxu1 %v4883_v8 }
 0xead   : > { %3942 = vmatpush3.msra.mxu1 %v3184_v19 }
 0xeae   : > { %3943 = vmatprep.subr.mxu1 %v4883_v8 }
 0xeaf   : > { %3944 = vmatpush3.msra.mxu1 %v3183_v29 }
 0xeb0   : > { %3945 = vmatprep.subr.mxu1 %v4883_v8 }
 0xeb1   : > { %3946 = vmatpush3.msra.mxu1 %v3182_v30 }
 0xeb2   : > { %3947 = vmatprep.subr.mxu1 %v4883_v8 }
 0xeb3   : > { %3948 = vmatpush3.msra.mxu1 %v3181_v31 }
 0xf64   : > { %v3054_v63 = vpop.f32.mrf.mxu1 }
 0xf65   : > { %v3058_v1 = vadd.f32 %v3054_v63, %v5564_v47  ;;  %v3098_v47 = vld [vmem:[#allocation31 + $0x10] sm:$0xff] }
 0xf66   : > { %v3921_v2 = vpop.f32.mrf.mxu1  ;;  %3925 = vmatpush3.msra.mxu0 %v3098_v47 }
 0xf67   : > { %v5611_v3 = vadd.f32 %v3683_v0, %v3058_v1  ;;  %3926 = vmatprep.subr.mxu0 %v4883_v8 }
 0xf68   : > { %3927 = vmatpush3.msra.mxu0 %v3097_v12 }
 0xf69   : > { %v3069_v4 = vsel %vm1413_vm0, %v5611_v3, 0.0  ;;  %3928 = vmatprep.subr.mxu0 %v4883_v8 }
 0xf6a   : > { %3070 = vadd.xlane.f32.xlu0 %v3069_v4  ;;  %3929 = vmatpush3.msra.mxu0 %v3096_v13 }
 0xff3   : > { %v3071_v5 = vpop.xlane.xlu0 %3070 }
 0xff4   : > { %v3072_v6 = vmul.f32 0.03125, %v3071_v5 }
 0xff6   : > { %v3073_v7 = vsub.f32 %v5611_v3, %v3072_v6 }
 0xff8   : > { %v3074_v9 = vmul.f32 %v3073_v7, %v3073_v7 }
 0xffa   : > { %v3075_v10 = vsel %vm1413_vm0, %v3074_v9, 0.0 }
 0xffb   : > { %3076 = vadd.xlane.f32.xlu0 %v3075_v10 }
0x1084   : > { %v3077_v20 = vpop.xlane.xlu0 %3076 }
0x1085   : > { %v3078_v21 = vmul.f32 0.03125, %v3077_v20 }
0x1087   : > { %v3079_v23 = vadd.f32 1e-12, %v3078_v21 }
0x1089   : > { %4243 = vrsqrt.f32 %v3079_v23 }
0x1096   : > { %v4244_v15 = vpop.eup %4243 }
0x1097   : > { %v3081_v25 = vmul.f32 %v4244_v15, %v3073_v7 }
0x1099   : > { %v3088_v27 = vmul.f32 %v3684_v24, %v3081_v25 }
0x109b   : > { %v3095_v28 = vadd.f32 %v3685_v26, %v3088_v27 }
0x109d   : > { %3931 = vmatmul.mubr.msk.f32.vlgmr.msra.gmra.mxu0 %vm1413_vm0, %v3095_v28 }
0x115d   : > { %v3176_v33 = vpop.f32.mrf.mxu0 }
0x115e   : > { %v3177_v22 = vadd.f32 %v3686_v32, %v3176_v33 }
0x115f   : > { %v3932_v34 = vpop.f32.mrf.mxu0 }
0x1160   : > { %v3180_v35 = vmax.f32 %v3177_v22, 0.0 }
0x1162   : > { %3950 = vmatmul.mubr.msk.f32.vlgmr.msra.gmra.mxu1 %vm1542_vm2, %v3180_v35 }
0x1222   : > { %v3265_v37 = vpop.f32.mrf.mxu1 }
0x1223   : > { %v3266_v38 = vadd.f32 %v3688_v36, %v3265_v37 }
0x1224   : > { %v3951_v40 = vpop.f32.mrf.mxu1 }
0x1225   : > { %v3269_v41 = vmul.f32 0.5, %v3266_v38 }
0x1227   : > { %v3270_v42 = vadd.f32 %v3269_v41, %v5611_v3 }
0x1229   : > { %v3273_v43 = vsel %vm1413_vm0, %v3270_v42, 0.0 }
0x122a   : > { %3274 = vadd.xlane.f32.xlu0 %v3273_v43 }
0x12b3   : > { %v3275_v8 = vpop.xlane.xlu0 %3274 }
0x12b4   : > { %v3276_v44 = vmul.f32 0.03125, %v3275_v8 }
0x12b6   : > { %v3277_v45 = vsub.f32 %v3270_v42, %v3276_v44 }
0x12b8   : > { %v3278_v46 = vmul.f32 %v3277_v45, %v3277_v45 }
0x12ba   : > { %v3279_v48 = vsel %vm1413_vm0, %v3278_v46, 0.0 }
0x12bb   : > { %3280 = vadd.xlane.f32.xlu1 %v3279_v48 }
0x1344   : > { %v3281_v49 = vpop.xlane.xlu1 %3280 }
0x1345   : > { %v3282_v50 = vmul.f32 0.03125, %v3281_v49 }
0x1347   : > { %v3283_v51 = vadd.f32 1e-12, %v3282_v50 }
0x1349   : > { %4245 = vrsqrt.f32 %v3283_v51 }
0x1356   : > { %v4246_v52 = vpop.eup %4245 }
0x1357   : > { %v3285_v54 = vmul.f32 %v4246_v52, %v3277_v45 }
0x1359   : > { %v3292_v39 = vmul.f32 %v3690_v53, %v3285_v54 }
0x135b   : > { %v3299_v56 = vadd.f32 %v3691_v55, %v3292_v39 }
0x135d   : > { %3300 = vst.msk [vmem:[%s1409_s3] sm:$0xff] %vm1413_vm0, %v3299_v56 }
0x135e   : > { %4732 = shalt.err (!%p4729_p5)
}
0x135f   : > { %s4733_s26 = scalar_lea.hbm %s3313_s5, 128  ;;  %s4737_s17 = scalar_lea.hbm %s5798_s1, 256 }
0x1360   : > { %p4734_p3 = scmp.ne.s32.totalorder %s3313_s5, %s4733_s26  ;;  %p4738_p2 = scmp.lt.s32.totalorder %s3313_s5, %s5798_s1 }
0x1361   : > { %p4739_p6 = scmp.lt.s32.totalorder %s4737_s17, %s4733_s26 }
0x1362   : > { %p4735_p7 = pnand %p4734_p3, %p5799_p12 }
0x1363   : > { %p4740_p10 = por %p4739_p6, %p4738_p2 }
0x1364   : > { %p4736_p11 = pneg %p4735_p7 }
0x1366   : > { %p4741_p9 = pnand %p4740_p10, %p4736_p11 }
0x1368   : > { %4744 = shalt.err (!%p4741_p9)
}
0x1369   : > { %4020 = dma.vmem_to_hbm [thread:$0]  (%p5799_p12), %s3316_s4, 128, %s3313_s5, %s3302_s6  }
0x136a PF: > { %s3327_s20 = sand.u32 1, %s4811_s15   ;;  %p5800_p13 = scmp.ne.s32.totalorder %s5754_s23, 0 }
0x136b   : > { %p5801_p8 = scmp.ge.s32.totalorder %s4823_s18, 2  ;;  %s3328_s3 = scalar_lea.sflag [#allocation6], %s3327_s20 }
0x136d   : > { %p4079_p1 = pnand %p5801_p8, %p5800_p13 }
0x136f   : > { %p4080_p4 = pneg %p4079_p1 }
0x1371   : > { %4806 = dma.done.wait (%p4080_p4), %s3328_s3, 128  }
0x1372   : > { %4808 = vsyncadd (%p4080_p4), %s3328_s3, 4294967168  ;;  %p101_p0 = scmp.ge.s32.totalorder %s5248_s11, 4   ;;  %s5802_s15 = smov %s4815_s16 }
0x1373   : > { %s5803_s16 = smov %s4819_s0  ;;  %s5804_s0 = smov %s5259_s2 }
0x1374   : > { %s5805_s18 = smov %s5248_s11  ;;  %103 = sbr.rel (!%p101_p0) target bundleno = 92 (0x5c), region = 332 }
0x1379   :  { %3333 = vsyncpa [#allocation5], 1 }
0x137a   :  { %3335 = vsyncpa [#allocation5 + $0x1], 1 }
0x137b   :  { %3336 = vsyncpa [#allocation8], 1 }
0x137c   :  { %3338 = vsyncpa [#allocation8 + $0x1], 1 }
0x137d   :  { %3339 = vsyncpa [#allocation11], 1 }
0x137e   :  { %3340 = vsyncpa [#allocation14], 1 }
0x137f   :  { %3341 = vsyncpa [#allocation17], 1 }
0x1380   :  { %3342 = vsyncpa [#allocation20], 1 }
0x1381   :  { %3343 = vsyncpa [#allocation23], 1 }
0x1382   :  { %3344 = vsyncpa [#allocation26], 1 }
0x1383   :  { %3345 = vsyncpa [#allocation29], 1 }
0x1384   :  { %3346 = vsyncpa [#allocation32], 1 }
0x1385   :  { %3347 = vsyncpa [#allocation6], 1 }
0x1386   :  { %3349 = vsyncpa [#allocation6 + $0x1], 1 }

// kernel: tpu_custom_call.1
= control target key start
LH: loop header
LB: loop body
LE: loop exit
PB: predicated region body
PF: predicated region fallthrough
CT: control target
= control target key end

     0   :  { %s4825_s6 = smov 1   ;;  %s4826_s10 = smov 2   ;;  %s5678_s0 = inlined_call_operand.smem [shape: u32[39], index: -1, kind: input, shape index: {}] }
   0x1   :  { %s4901_s5 = sld [smem:[%s5678_s0]]   ;;  %s4827_s14 = smov 3  }
   0x2   :  { %s4906_s9 = sld [smem:[%s5678_s0 + %s4825_s6]]   ;;  %s4828_s18 = smov 4  }
   0x3   :  { %s4911_s13 = sld [smem:[%s5678_s0 + %s4826_s10]]   ;;  %s4829_s22 = smov 5  }
   0x4   :  { %s4916_s17 = sld [smem:[%s5678_s0 + %s4827_s14]]   ;;  %s4830_s26 = smov 6  }
   0x5   :  { %s4921_s21 = sld [smem:[%s5678_s0 + %s4828_s18]]   ;;  %s4831_s30 = smov 7  }
   0x6   :  { %s4926_s25 = sld [smem:[%s5678_s0 + %s4829_s22]]   ;;  %s4832_s4 = smov 8  }
   0x7   :  { %5701 = sst [smem:[#allocation46_spill]] %s4901_s5  ;;  %s4833_s10 = smov 9  }
   0x8   :  { %5702 = sst [smem:[#allocation47_spill]] %s4906_s9  ;;  %s4834_s15 = smov 10  }
   0x9   :  { %5703 = sst [smem:[#allocation48_spill]] %s4911_s13  ;;  %s4835_s20 = smov 11  }
   0xa   :  { %5704 = sst [smem:[#allocation49_spill]] %s4916_s17  ;;  %s4837_s1 = smov 13  }
   0xb   :  { %5705 = sst [smem:[#allocation50_spill]] %s4921_s21  ;;  %s4838_s7 = smov 14  }
   0xc   :  { %s4931_s29 = sld [smem:[%s5678_s0 + %s4830_s26]]   ;;  %s4836_s26 = smov 12  }
   0xd   :  { %s4936_s3 = sld [smem:[%s5678_s0 + %s4831_s30]]   ;;  %s4840_s22 = smov 16  }
   0xe   :  { %s4941_s8 = sld [smem:[%s5678_s0 + %s4832_s4]]   ;;  %s4841_s28 = smov 17  }
   0xf   :  { %s4946_s14 = sld [smem:[%s5678_s0 + %s4833_s10]]  }
  0x10   :  { %s4951_s19 = sld [smem:[%s5678_s0 + %s4834_s15]]   ;;  %s4839_s15 = smov 15  }
  0x11   :  { %s4956_s24 = sld [smem:[%s5678_s0 + %s4835_s20]]  }
  0x12   :  { %5706 = sst [smem:[#allocation51_spill]] %s4931_s29 }
  0x13   :  { %5707 = sst [smem:[#allocation52_spill]] %s4936_s3 }
  0x14   :  { %5708 = sst [smem:[#allocation53_spill]] %s4941_s8 }
  0x15   :  { %5709 = sst [smem:[#allocation54_spill]] %s4946_s14 }
  0x16   :  { %5710 = sst [smem:[#allocation55_spill]] %s4951_s19 }
  0x17   :  { %s4961_s30 = sld [smem:[%s5678_s0 + %s4836_s26]]  }
  0x18   :  { %s4966_s6 = sld [smem:[%s5678_s0 + %s4837_s1]]  }
  0x19   :  { %s4971_s12 = sld [smem:[%s5678_s0 + %s4838_s7]]   ;;  %s4842_s7 = smov 18  }
  0x1a   :  { %s4976_s20 = sld [smem:[%s5678_s0 + %s4839_s15]]   ;;  %s4843_s15 = smov 19  }
  0x1b   :  { %s4981_s27 = sld [smem:[%s5678_s0 + %s4840_s22]]   ;;  %s4844_s22 = smov 20  }
  0x1c   :  { %s4986_s4 = sld [smem:[%s5678_s0 + %s4841_s28]]   ;;  %s4845_s28 = smov 21  }
  0x1d   :  { %5711 = sst [smem:[#allocation56_spill]] %s4961_s30 }
  0x1e   :  { %5712 = sst [smem:[#allocation57_spill]] %s4966_s6 }
  0x1f   :  { %5713 = sst [smem:[#allocation58_spill]] %s4971_s12 }
  0x20   :  { %5714 = sst [smem:[#allocation59_spill]] %s4976_s20 }
  0x21   :  { %5715 = sst [smem:[#allocation60_spill]] %s4981_s27 }
  0x22   :  { %5716 = sst [smem:[#allocation61_spill]] %s4986_s4 }
  0x23   :  { %s4991_s30 = sld [smem:[%s5678_s0 + %s4842_s7]]   ;;  %s4846_s7 = smov 22  }
  0x24   :  { %s4996_s12 = sld [smem:[%s5678_s0 + %s4843_s15]]   ;;  %s4847_s15 = smov 23  }
  0x25   :  { %s5001_s27 = sld [smem:[%s5678_s0 + %s4844_s22]]   ;;  %s4848_s22 = smov 24  }
  0x26   :  { %s5006_s19 = sld [smem:[%s5678_s0 + %s4845_s28]]   ;;  %s4849_s28 = smov 25  }
  0x27   :  { %s5011_s29 = sld [smem:[%s5678_s0 + %s4846_s7]]   ;;  %s4850_s7 = smov 26  }
  0x28   :  { %s5016_s21 = sld [smem:[%s5678_s0 + %s4847_s15]]   ;;  %s4851_s15 = smov 27  }
  0x29   :  { %s5031_s9 = sld [smem:[%s5678_s0 + %s4850_s7]]   ;;  %s4854_s7 = smov 30  }
  0x2a   :  { %5717 = sst [smem:[#allocation62_spill]] %s4996_s12 }
  0x2b   :  { %5718 = sst [smem:[#allocation63_spill]] %s5001_s27 }
  0x2c   :  { %5719 = sst [smem:[#allocation64_spill]] %s5006_s19 }
  0x2d   :  { %s5021_s27 = sld [smem:[%s5678_s0 + %s4848_s22]]   ;;  %s4852_s22 = smov 28  }
  0x2e   :  { %s5026_s19 = sld [smem:[%s5678_s0 + %s4849_s28]]   ;;  %s4853_s28 = smov 29  }
  0x2f   :  { %5722 = sst [smem:[#allocation67_spill]] %s5031_s9 }
  0x30   :  { %s5036_s5 = sld [smem:[%s5678_s0 + %s4851_s15]]   ;;  %s4855_s15 = smov 31  }
  0x31   :  { %s5051_s9 = sld [smem:[%s5678_s0 + %s4854_s7]]   ;;  %s4858_s7 = smov 34  }
  0x33   :  { %5720 = sst [smem:[#allocation65_spill]] %s5021_s27 }
  0x34   :  { %5721 = sst [smem:[#allocation66_spill]] %s5026_s19 }
  0x35   :  { %s5041_s27 = sld [smem:[%s5678_s0 + %s4852_s22]]   ;;  %s4856_s22 = smov 32  }
  0x36   :  { %5723 = sst [smem:[#allocation68_spill]] %s5036_s5 }
  0x37   :  { %s5046_s19 = sld [smem:[%s5678_s0 + %s4853_s28]]   ;;  %s4857_s28 = smov 33  }
  0x38   :  { %5726 = sst [smem:[#allocation71_spill]] %s5051_s9 }
  0x39   :  { %s5056_s5 = sld [smem:[%s5678_s0 + %s4855_s15]]   ;;  %s4859_s15 = smov 35  }
  0x3a   :  { %s5071_s9 = sld [smem:[%s5678_s0 + %s4858_s7]]   ;;  %s4862_s7 = smov 38  }
  0x3b   :  { %5724 = sst [smem:[#allocation69_spill]] %s5041_s27 }
  0x3c   :  { %s5061_s27 = sld [smem:[%s5678_s0 + %s4856_s22]]   ;;  %s4860_s22 = smov 36  }
  0x3d   :  { %5725 = sst [smem:[#allocation70_spill]] %s5046_s19 }
  0x3e   :  { %s5066_s19 = sld [smem:[%s5678_s0 + %s4857_s28]]   ;;  %s4861_s28 = smov 37  }
  0x3f   :  { %5727 = sst [smem:[#allocation72_spill]] %s5056_s5 }
  0x40   :  { %5730 = sst [smem:[#allocation75_spill]] %s5071_s9 }
  0x41   :  { %s5076_s5 = sld [smem:[%s5678_s0 + %s4859_s15]]  }
  0x42   :  { %5728 = sst [smem:[#allocation73_spill]] %s5061_s27 }
  0x43   :  { %s5081_s27 = sld [smem:[%s5678_s0 + %s4860_s22]]  }
  0x44   :  { %5729 = sst [smem:[#allocation74_spill]] %s5066_s19 }
  0x45   :  { %s5086_s19 = sld [smem:[%s5678_s0 + %s4861_s28]]  }
  0x46   :  { %s5091_s9 = sld [smem:[%s5678_s0 + %s4862_s7]]  }
  0x47   :  { %5731 = sst [smem:[#allocation76_spill]] %s5076_s5 }
  0x49   :  { %5732 = sst [smem:[#allocation77_spill]] %s5081_s27 }
  0x4b   :  { %5733 = sst [smem:[#allocation78_spill]] %s5086_s19 }
  0x4c   :  { %5734 = sst [smem:[#allocation79_spill]] %s5091_s9 }
  0x4d   :  { %82 = vsyncpa [#allocation5], 0 }
  0x4e   :  { %84 = vsyncpa [#allocation5 + $0x1], 0 }
  0x4f   :  { %85 = vsyncpa [#allocation8], 0 }
  0x50   :  { %87 = vsyncpa [#allocation8 + $0x1], 0 }
  0x51   :  { %88 = vsyncpa [#allocation11], 0 }
  0x52   :  { %89 = vsyncpa [#allocation14], 0 }
  0x53   :  { %90 = vsyncpa [#allocation17], 0 }
  0x54   :  { %91 = vsyncpa [#allocation20], 0 }
  0x55   :  { %92 = vsyncpa [#allocation23], 0 }
  0x56   :  { %93 = vsyncpa [#allocation26], 0 }
  0x57   :  { %94 = vsyncpa [#allocation29], 0 }
  0x58   :  { %95 = vsyncpa [#allocation32], 0 }
  0x59   :  { %96 = vsyncpa [#allocation6], 0 }
  0x5a   :  { %98 = vsyncpa [#allocation6 + $0x1], 0  ;;  %s5093_s15 = smov 0   ;;  %s5095_s16 = smov 0  }
  0x5b   :  { %s5097_s0 = smov 0   ;;  %s5099_s18 = smov 0  }
  0x5c LB: > { %s4863_s22 = smov [#allocation9]   ;;  %s5114_s26 = sadd.s32 4294967295, %s4823_s18   ;;  %s4823_s18 = sphi %s5099_s18, %s5805_s18   ;;  %s4819_s0 = sphi %s5097_s0, %s5804_s0   ;;  %s4815_s16 = sphi %s5095_s16, %s5803_s16   ;;  %s4811_s15 = sphi %s5093_s15, %s5802_s15  }
  0x5d   : > { %s956_s23 = sshll.u32 %s4863_s22, 4  ;;  %p3596_p0 = scmp.ge.s32.totalorder %s4823_s18, 1  ;;  %s957_s23 = int_to_ptr.vmem [resolvable:$true] %s956_s23 }
  0x5e   : > { %p5691_p1 = scmp.eq.s32.totalorder %s5114_s26, 0  ;;  %p943_p2 = scmp.lt.s32.totalorder %s4823_s18, 3 }
  0x5f   : > { %s4864_s1 = smov [#allocation10]   ;;  %s4865_s7 = smov [#allocation13]  }
  0x60   : > { %p5119_p3 = pnand %p3596_p0, %p943_p2  ;;  %s967_s2 = sshll.u32 %s4864_s1, 4  ;;  %s5126_s2 = int_to_ptr.vmem [resolvable:$true] %s967_s2 }
  0x61   : > { %s995_s10 = sshll.u32 %s4865_s7, 4  ;;  %s4866_s22 = smov [#allocation16]   ;;  %s5134_s10 = int_to_ptr.vmem [resolvable:$true] %s995_s10 }
  0x62   : > { %s5735_s28 = scalar_select %p5119_p3, 1, 0 }
  0x63   : > { %p4022_p5 = pneg %p5119_p3  ;;  %s5136_s9 = sshll.u32 %s4866_s22, 4  ;;  %s1018_s9 = int_to_ptr.vmem [resolvable:$true] %s5136_s9 }
  0x64   : > { %s4258_s1 = scalar_lea.vmem %s957_s23, 16  ;;  %s4265_s7 = scalar_lea.vmem %s957_s23, 32 }
  0x65   : > { %p5130_p6 = pnand %p4022_p5, %p5691_p1  ;;  %p4259_p8 = scmp.ne.s32.totalorder %s957_s23, %s4258_s1 }
  0x66   : > { %p4266_p11 = scmp.lt.s32.totalorder %s957_s23, %s957_s23  ;;  %p4267_p12 = scmp.lt.s32.totalorder %s4265_s7, %s4258_s1 }
  0x67   : > { %p5140_p7 = pneg %p5130_p6 }
  0x68   : > { %p4268_p13 = por %p4267_p12, %p4266_p11 }
  0x69   : > { %p4261_p9 = pnand %p4259_p8, %p5140_p7 }
  0x6b   : > { %p4262_p10 = pneg %p4261_p9 }
  0x6d   : > { %p4269_p0 = pnand %p4268_p13, %p4262_p10 }
  0x6f   : > { %4272 = shalt.err (!%p4269_p0)
}
  0x70   : > { %s5738_s13 = sld [smem:[#allocation48_spill]]  ;;  %s4284_s22 = scalar_lea.vmem %s5126_s2, 16 }
  0x71   : > { %p4285_p2 = scmp.ne.s32.totalorder %s5126_s2, %s4284_s22  ;;  %s4291_s27 = scalar_lea.vmem %s5126_s2, 32 }
  0x72   : > { %p4292_p9 = scmp.lt.s32.totalorder %s5126_s2, %s5126_s2  ;;  %p4293_p11 = scmp.lt.s32.totalorder %s4291_s27, %s4284_s22 }
  0x73   : > { %p4287_p5 = pnand %p4285_p2, %p5140_p7 }
  0x74   : > { %p4294_p10 = por %p4293_p11, %p4292_p9 }
  0x75   : > { %p4288_p8 = pneg %p4287_p5 }
  0x76   : > { %4025 = dma.hbm_to_vmem [thread:$0]  (!%p5130_p6), %s5738_s13, 16, %s957_s23, [#allocation8]  }
  0x77   : > { %p4295_p12 = pnand %p4294_p10, %p4288_p8 }
  0x79   : > { %4298 = shalt.err (!%p4295_p12)
}
  0x7a   : > { %s5739_s17 = sld [smem:[#allocation49_spill]]  ;;  %s4310_s23 = scalar_lea.vmem %s5134_s10, 16 }
  0x7b   : > { %p4311_p13 = scmp.ne.s32.totalorder %s5134_s10, %s4310_s23  ;;  %s4317_s1 = scalar_lea.vmem %s5134_s10, 32 }
  0x7c   : > { %p4318_p5 = scmp.lt.s32.totalorder %s5134_s10, %s5134_s10  ;;  %p4319_p8 = scmp.lt.s32.totalorder %s4317_s1, %s4310_s23 }
  0x7d   : > { %p4313_p0 = pnand %p4311_p13, %p5140_p7 }
  0x7e   : > { %p4320_p9 = por %p4319_p8, %p4318_p5 }
  0x7f   : > { %p4314_p2 = pneg %p4313_p0 }
  0x80   : > { %4028 = dma.hbm_to_vmem [thread:$0]  (!%p5130_p6), %s5739_s17, 16, %s5126_s2, [#allocation11]  }
  0x81   : > { %p4321_p11 = pnand %p4320_p9, %p4314_p2 }
  0x83   : > { %4324 = shalt.err (!%p4321_p11)
}
  0x84   : > { %s5740_s3 = sld [smem:[#allocation52_spill]]  ;;  %s4867_s27 = smov [#allocation19]  }
  0x85   : > { %s1045_s2 = sshll.u32 %s4867_s27, 4  ;;  %s4336_s7 = scalar_lea.vmem %s1018_s9, 16  ;;  %s1046_s2 = int_to_ptr.vmem [resolvable:$true] %s1045_s2 }
  0x86   : > { %p4337_p10 = scmp.ne.s32.totalorder %s1018_s9, %s4336_s7  ;;  %s4343_s22 = scalar_lea.vmem %s1018_s9, 32 }
  0x87   : > { %p4344_p0 = scmp.lt.s32.totalorder %s1018_s9, %s1018_s9  ;;  %p4345_p5 = scmp.lt.s32.totalorder %s4343_s22, %s4336_s7 }
  0x88   : > { %p4339_p12 = pnand %p4337_p10, %p5140_p7 }
  0x89   : > { %p4346_p2 = por %p4345_p5, %p4344_p0 }
  0x8a   : > { %4034 = dma.hbm_to_vmem [thread:$0]  (!%p5130_p6), %s5740_s3, 16, %s5134_s10, [#allocation14]  }
  0x8b   : > { %p4340_p13 = pneg %p4339_p12 }
  0x8d   : > { %p4347_p8 = pnand %p4346_p2, %p4340_p13 }
  0x8f   : > { %4350 = shalt.err (!%p4347_p8)
}
  0x90   : > { %s5741_s14 = sld [smem:[#allocation54_spill]]  ;;  %s4362_s10 = scalar_lea.vmem %s1046_s2, 16 }
  0x91   : > { %p4363_p9 = scmp.ne.s32.totalorder %s1046_s2, %s4362_s10  ;;  %s4369_s23 = scalar_lea.vmem %s1046_s2, 32 }
  0x92   : > { %p4370_p10 = scmp.lt.s32.totalorder %s1046_s2, %s1046_s2  ;;  %p4371_p12 = scmp.lt.s32.totalorder %s4369_s23, %s4362_s10 }
  0x93   : > { %p4365_p11 = pnand %p4363_p9, %p5140_p7 }
  0x94   : > { %p4372_p1 = por %p4371_p12, %p4370_p10 }
  0x95   : > { %p4366_p4 = pneg %p4365_p11 }
  0x96   : > { %4040 = dma.hbm_to_vmem [thread:$0]  (!%p5130_p6), %s5741_s14, 16, %s1018_s9, [#allocation17]  }
  0x97   : > { %p4373_p3 = pnand %p4372_p1, %p4366_p4 }
  0x99   : > { %4376 = shalt.err (!%p4373_p3)
}
  0x9a   : > { %s5742_s6 = sld [smem:[#allocation57_spill]]  ;;  %s4868_s1 = smov [#allocation22]  }
  0x9b   : > { %s1073_s27 = sshll.u32 %s4868_s1, 4  ;;  %s4869_s9 = smov [#allocation25]   ;;  %s1074_s27 = int_to_ptr.vmem [resolvable:$true] %s1073_s27 }
  0x9c   : > { %s1095_s7 = sshll.u32 %s4869_s9, 4  ;;  %s4388_s22 = scalar_lea.vmem %s1074_s27, 16  ;;  %s1096_s7 = int_to_ptr.vmem [resolvable:$true] %s1095_s7 }
  0x9d   : > { %p4389_p13 = scmp.ne.s32.totalorder %s1074_s27, %s4388_s22  ;;  %s4395_s3 = scalar_lea.vmem %s1074_s27, 32 }
  0x9e   : > { %p4396_p2 = scmp.lt.s32.totalorder %s1074_s27, %s1074_s27  ;;  %p4397_p8 = scmp.lt.s32.totalorder %s4395_s3, %s4388_s22 }
  0x9f   : > { %p4391_p0 = pnand %p4389_p13, %p5140_p7 }
  0xa0   : > { %4046 = dma.hbm_to_vmem [thread:$0]  (!%p5130_p6), %s5742_s6, 16, %s1046_s2, [#allocation20]  }
  0xa1   : > { %p4392_p5 = pneg %p4391_p0  ;;  %p4398_p1 = por %p4397_p8, %p4396_p2 }
  0xa3   : > { %p4399_p3 = pnand %p4398_p1, %p4392_p5 }
  0xa5   : > { %4402 = shalt.err (!%p4399_p3)
}
  0xa6   : > { %s5743_s4 = sld [smem:[#allocation61_spill]]  ;;  %s4414_s2 = scalar_lea.vmem %s1096_s7, 16 }
  0xa7   : > { %p4415_p4 = scmp.ne.s32.totalorder %s1096_s7, %s4414_s2  ;;  %s4421_s10 = scalar_lea.vmem %s1096_s7, 32 }
  0xa8   : > { %p4422_p10 = scmp.lt.s32.totalorder %s1096_s7, %s1096_s7  ;;  %p4423_p12 = scmp.lt.s32.totalorder %s4421_s10, %s4414_s2 }
  0xa9   : > { %p4417_p9 = pnand %p4415_p4, %p5140_p7 }
  0xaa   : > { %p4424_p13 = por %p4423_p12, %p4422_p10 }
  0xab   : > { %p4418_p11 = pneg %p4417_p9 }
  0xac   : > { %4052 = dma.hbm_to_vmem [thread:$0]  (!%p5130_p6), %s5743_s4, 16, %s1074_s27, [#allocation23]  }
  0xad   : > { %p4425_p0 = pnand %p4424_p13, %p4418_p11 }
  0xaf   : > { %4428 = shalt.err (!%p4425_p0)
}
  0xb0   : > { %s5744_s12 = sld [smem:[#allocation62_spill]]  ;;  %s4870_s3 = smov [#allocation28]  }
  0xb1   : > { %s1125_s23 = sshll.u32 %s4870_s3, 4  ;;  %s4871_s1 = smov [#allocation12]   ;;  %s1126_s23 = int_to_ptr.vmem [resolvable:$true] %s1125_s23 }
  0xb2   : > { %s981_s27 = sshll.u32 %s4871_s1, 4  ;;  %s4440_s9 = scalar_lea.vmem %s1126_s23, 16  ;;  %s982_s27 = int_to_ptr.vmem [resolvable:$true] %s981_s27 }
  0xb3   : > { %p4441_p5 = scmp.ne.s32.totalorder %s1126_s23, %s4440_s9  ;;  %s4447_s22 = scalar_lea.vmem %s1126_s23, 32 }
  0xb4   : > { %p4448_p1 = scmp.lt.s32.totalorder %s1126_s23, %s1126_s23  ;;  %p4449_p3 = scmp.lt.s32.totalorder %s4447_s22, %s4440_s9 }
  0xb5   : > { %p4443_p2 = pnand %p4441_p5, %p5140_p7 }
  0xb6   : > { %4058 = dma.hbm_to_vmem [thread:$0]  (!%p5130_p6), %s5744_s12, 16, %s1096_s7, [#allocation26]  }
  0xb7   : > { %p4444_p8 = pneg %p4443_p2  ;;  %p4450_p4 = por %p4449_p3, %p4448_p1 }
  0xb9   : > { %p4451_p9 = pnand %p4450_p4, %p4444_p8 }
  0xbb   : > { %4454 = shalt.err (!%p4451_p9)
}
  0xbc   : > { %4064 = dma.hbm_to_vmem [thread:$0]  (!%p5130_p6), %s5016_s21, 16, %s1126_s23, [#allocation29]  }
  0xbd   : > { %s4466_s7 = scalar_lea.vmem %s982_s27, 16  ;;  %s4473_s2 = scalar_lea.vmem %s982_s27, 32 }
  0xbe   : > { %p4467_p11 = scmp.ne.s32.totalorder %s982_s27, %s4466_s7  ;;  %p4474_p13 = scmp.lt.s32.totalorder %s982_s27, %s982_s27 }
  0xbf   : > { %p4475_p0 = scmp.lt.s32.totalorder %s4473_s2, %s4466_s7 }
  0xc0   : > { %p4469_p10 = pnand %p4467_p11, %p5140_p7 }
  0xc1   : > { %p4476_p5 = por %p4475_p0, %p4474_p13 }
  0xc2   : > { %p4470_p12 = pneg %p4469_p10 }
  0xc4   : > { %p4477_p2 = pnand %p4476_p5, %p4470_p12 }
  0xc6   : > { %4480 = shalt.err (!%p4477_p2)
}
  0xc7   : > { %4031 = dma.hbm_to_vmem [thread:$0]  (!%p5130_p6), %s4926_s25, 16, %s982_s27, [#allocation11]  }
  0xc8   : > { %s4872_s10 = smov [#allocation15]   ;;  %s4873_s23 = smov [#allocation18]  }
  0xc9   : > { %s1006_s3 = sshll.u32 %s4872_s10, 4  ;;  %s1031_s1 = sshll.u32 %s4873_s23, 4  ;;  %s1007_s3 = int_to_ptr.vmem [resolvable:$true] %s1006_s3  ;;  %s1032_s1 = int_to_ptr.vmem [resolvable:$true] %s1031_s1 }
  0xca   : > { %s4492_s9 = scalar_lea.vmem %s1007_s3, 16  ;;  %s4499_s22 = scalar_lea.vmem %s1007_s3, 32 }
  0xcb   : > { %p4493_p8 = scmp.ne.s32.totalorder %s1007_s3, %s4492_s9  ;;  %p4500_p4 = scmp.lt.s32.totalorder %s1007_s3, %s1007_s3 }
  0xcc   : > { %p4501_p9 = scmp.lt.s32.totalorder %s4499_s22, %s4492_s9 }
  0xcd   : > { %p4495_p1 = pnand %p4493_p8, %p5140_p7 }
  0xce   : > { %p4502_p11 = por %p4501_p9, %p4500_p4 }
  0xcf   : > { %p4496_p3 = pneg %p4495_p1 }
  0xd1   : > { %p4503_p10 = pnand %p4502_p11, %p4496_p3 }
  0xd3   : > { %4506 = shalt.err (!%p4503_p10)
}
  0xd4   : > { %s5745_s8 = sld [smem:[#allocation53_spill]]  ;;  %s4518_s27 = scalar_lea.vmem %s1032_s1, 16 }
  0xd5   : > { %p4519_p12 = scmp.ne.s32.totalorder %s1032_s1, %s4518_s27  ;;  %s4525_s7 = scalar_lea.vmem %s1032_s1, 32 }
  0xd6   : > { %p4526_p5 = scmp.lt.s32.totalorder %s1032_s1, %s1032_s1  ;;  %p4527_p2 = scmp.lt.s32.totalorder %s4525_s7, %s4518_s27 }
  0xd7   : > { %p4521_p13 = pnand %p4519_p12, %p5140_p7 }
  0xd8   : > { %p4528_p8 = por %p4527_p2, %p4526_p5 }
  0xd9   : > { %p4522_p0 = pneg %p4521_p13 }
  0xda   : > { %4037 = dma.hbm_to_vmem [thread:$0]  (!%p5130_p6), %s5745_s8, 16, %s1007_s3, [#allocation14]  }
  0xdb   : > { %p4529_p1 = pnand %p4528_p8, %p4522_p0 }
  0xdd   : > { %4532 = shalt.err (!%p4529_p1)
}
  0xde   : > { %4043 = dma.hbm_to_vmem [thread:$0]  (!%p5130_p6), %s4956_s24, 16, %s1032_s1, [#allocation17]  }
  0xdf   : > { %s4874_s2 = smov [#allocation21]   ;;  %s4875_s3 = smov [#allocation24]  }
  0xe0   : > { %s1059_s10 = sshll.u32 %s4874_s2, 4  ;;  %s1084_s23 = sshll.u32 %s4875_s3, 4  ;;  %s1060_s10 = int_to_ptr.vmem [resolvable:$true] %s1059_s10  ;;  %s1085_s23 = int_to_ptr.vmem [resolvable:$true] %s1084_s23 }
  0xe1   : > { %s4544_s9 = scalar_lea.vmem %s1060_s10, 16  ;;  %s4551_s22 = scalar_lea.vmem %s1060_s10, 32 }
  0xe2   : > { %p4545_p3 = scmp.ne.s32.totalorder %s1060_s10, %s4544_s9  ;;  %p4552_p11 = scmp.lt.s32.totalorder %s1060_s10, %s1060_s10 }
  0xe3   : > { %p4553_p10 = scmp.lt.s32.totalorder %s4551_s22, %s4544_s9 }
  0xe4   : > { %p4547_p4 = pnand %p4545_p3, %p5140_p7 }
  0xe5   : > { %p4554_p12 = por %p4553_p10, %p4552_p11 }
  0xe6   : > { %p4548_p9 = pneg %p4547_p4 }
  0xe8   : > { %p4555_p13 = pnand %p4554_p12, %p4548_p9 }
  0xea   : > { %4558 = shalt.err (!%p4555_p13)
}
  0xeb   : > { %s5746_s20 = sld [smem:[#allocation59_spill]]  ;;  %s4570_s1 = scalar_lea.vmem %s1085_s23, 16 }
  0xec   : > { %p4571_p0 = scmp.ne.s32.totalorder %s1085_s23, %s4570_s1  ;;  %s4577_s27 = scalar_lea.vmem %s1085_s23, 32 }
  0xed   : > { %p4578_p8 = scmp.lt.s32.totalorder %s1085_s23, %s1085_s23  ;;  %p4579_p1 = scmp.lt.s32.totalorder %s4577_s27, %s4570_s1 }
  0xee   : > { %p4573_p5 = pnand %p4571_p0, %p5140_p7 }
  0xef   : > { %p4580_p3 = por %p4579_p1, %p4578_p8 }
  0xf0   : > { %p4574_p2 = pneg %p4573_p5 }
  0xf1   : > { %4049 = dma.hbm_to_vmem [thread:$0]  (!%p5130_p6), %s5746_s20, 16, %s1060_s10, [#allocation20]  }
  0xf2   : > { %p4581_p4 = pnand %p4580_p3, %p4574_p2 }
  0xf4   : > { %4584 = shalt.err (!%p4581_p4)
}
  0xf5   : > { %4055 = dma.hbm_to_vmem [thread:$0]  (!%p5130_p6), %s4991_s30, 16, %s1085_s23, [#allocation23]  }
  0xf6   : > { %s4876_s7 = smov [#allocation27]  }
  0xf7   : > { %s1111_s2 = sshll.u32 %s4876_s7, 4  ;;  %s1112_s2 = int_to_ptr.vmem [resolvable:$true] %s1111_s2 }
  0xf8   : > { %s4596_s10 = scalar_lea.vmem %s1112_s2, 512  ;;  %p4604_p12 = scmp.lt.s32.totalorder %s1112_s2, %s1112_s2 }
  0xf9   : > { %p4597_p9 = scmp.ne.s32.totalorder %s1112_s2, %s4596_s10  ;;  %p4605_p13 = scmp.lt.s32.totalorder %s4596_s10, %s4596_s10 }
  0xfb   : > { %p4599_p11 = pnand %p4597_p9, %p5140_p7  ;;  %p4606_p0 = por %p4605_p13, %p4604_p12 }
  0xfd   : > { %p4600_p10 = pneg %p4599_p11 }
  0xff   : > { %p4607_p5 = pnand %p4606_p0, %p4600_p10 }
 0x101   : > { %4610 = shalt.err (!%p4607_p5)
}
 0x102   : > { %s4877_s3 = smov 128   ;;  %s4878_s9 = smov 8  }
 0x103   : > { %4061 = dma.hbm_to_vmem [thread:$0]  (!%p5130_p6), %s5011_s29, 512, %s1112_s2, [#allocation26], %s4877_s3, %s4877_s3, %s4878_s9  }
 0x104   : > { %s4879_s23 = smov [#allocation30]   ;;  %s4880_s1 = smov [#allocation31]  }
 0x105   : > { %s1147_s22 = sshll.u32 %s4879_s23, 4  ;;  %s1169_s27 = sshll.u32 %s4880_s1, 4  ;;  %s1148_s22 = int_to_ptr.vmem [resolvable:$true] %s1147_s22  ;;  %s1170_s27 = int_to_ptr.vmem [resolvable:$true] %s1169_s27 }
 0x106   : > { %s4622_s7 = scalar_lea.vmem %s1148_s22, 512  ;;  %p4630_p3 = scmp.lt.s32.totalorder %s1148_s22, %s1148_s22 }
 0x107   : > { %p4623_p2 = scmp.ne.s32.totalorder %s1148_s22, %s4622_s7  ;;  %p4631_p4 = scmp.lt.s32.totalorder %s4622_s7, %s4622_s7 }
 0x109   : > { %p4625_p8 = pnand %p4623_p2, %p5140_p7  ;;  %p4632_p9 = por %p4631_p4, %p4630_p3 }
 0x10b   : > { %p4626_p1 = pneg %p4625_p8 }
 0x10d   : > { %p4633_p11 = pnand %p4632_p9, %p4626_p1 }
 0x10f   : > { %4636 = shalt.err (!%p4633_p11)
}
 0x110   : > { %s5747_s2 = sld [smem:[#allocation69_spill]]  ;;  %s4648_s10 = scalar_lea.vmem %s1170_s27, 512 }
 0x111   : > { %p4649_p10 = scmp.ne.s32.totalorder %s1170_s27, %s4648_s10  ;;  %p4656_p0 = scmp.lt.s32.totalorder %s1170_s27, %s1170_s27 }
 0x112   : > { %p4657_p5 = scmp.lt.s32.totalorder %s4648_s10, %s4648_s10 }
 0x113   : > { %p4651_p12 = pnand %p4649_p10, %p5140_p7 }
 0x114   : > { %p4658_p2 = por %p4657_p5, %p4656_p0 }
 0x115   : > { %p4652_p13 = pneg %p4651_p12 }
 0x116   : > { %4067 = dma.hbm_to_vmem [thread:$0]  (!%p5130_p6), %s5747_s2, 512, %s1148_s22, [#allocation29], %s4877_s3, %s4877_s3, %s4878_s9  }
 0x117   : > { %p4659_p8 = pnand %p4658_p2, %p4652_p13 }
 0x119   : > { %4662 = shalt.err (!%p4659_p8)
}
 0x11a   : > { %s5748_s23 = sld [smem:[#allocation73_spill]]  ;;  %s3595_s19 = sadd.s32 4294967294, %s4823_s18  }
 0x11b   : > { %s5248_s11 = sadd.s32 1, %s4823_s18   ;;  %s111_s1 = sadd.s32 1, %s4819_s0 }
 0x11c   : > { %s108_s22 = ssub.s32 %s4823_s18, %s5248_s11  ;;  %s5749_s7 = sld [smem:[#allocation46_spill]] }
 0x11d   : > { %p109_p7 = scmp.eq.s32.totalorder %s108_s22, 0  ;;  %p118_p1 = scmp.ne.s32.totalorder %s4819_s0, %s4815_s16 }
 0x11e   : > { %p119_p3 = scmp.eq.s32.totalorder %s4823_s18, 0  ;;  %p124_p4 = scmp.ne.s32.totalorder %s4815_s16, %s4811_s15 }
 0x11f   : > { %s5259_s2 = scalar_select %p109_p7, %s4819_s0, %s111_s1  }
 0x120   : > { %4070 = dma.hbm_to_vmem [thread:$0]  (!%p5130_p6), %s5748_s23, 512, %s1170_s27, [#allocation32], %s4877_s3, %s4877_s3, %s4878_s9  }
 0x121   : > { %p5261_p9 = por %p119_p3, %p118_p1  ;;  %p5751_p6 = scmp.eq.s32.totalorder %s5114_s26, 0 }
 0x122   : > { %p930_p10 = scmp.eq.s32.totalorder %s5114_s26, 1  ;;  %p936_p12 = scmp.eq.s32.totalorder %s3595_s19, 1 }
 0x123   : > { %p5267_p11 = por %p5751_p6, %p124_p4  ;;  %p4098_p13 = scmp.lt.s32.totalorder %s4823_s18, 2 }
 0x124   : > { %s5274_s9 = sand.u32 1, %s4819_s0   ;;  %p5276_p0 = por %p930_p10, %p118_p1 }
 0x125   : > { %s5752_s3 = scalar_select %p5267_p11, 1, 0 }
 0x126   : > { %s5753_s27 = scalar_select %p5276_p0, 1, 0 }
 0x127   : > { %p5280_p5 = por %p936_p12, %p124_p4  ;;  %s3614_s22 = sshll.u32 %s5274_s9, 3 }
 0x128   : > { %s3615_s1 = sshll.u32 %s4823_s18, 7  ;;  %s1202_s19 = scalar_lea.vmem [#allocation4], %s3614_s22 }
 0x129   : > { %s5754_s23 = scalar_select %p5280_p5, 1, 0 }
 0x12a   : > { %s5287_s4 = scalar_lea.hbm %s5749_s7, %s3615_s1  ;;  %s1209_s6 = sshll.u32 %s1202_s19, 4  ;;  %s5289_s6 = int_to_ptr.vmem [resolvable:$true] %s1209_s6 }
 0x12b   : > { %p5293_p2 = pnand %p4098_p13, %p5261_p9  ;;  %s1199_s13 = scalar_lea.sflag [#allocation5], %s5274_s9 }
 0x12c   : > { %s4663_s14 = scalar_lea.hbm %s5287_s4, 128  ;;  %s4668_s22 = scalar_lea.hbm %s5749_s7, 256 }
 0x12d   : > { %p4664_p8 = scmp.ne.s32.totalorder %s5287_s4, %s4663_s14  ;;  %p4665_p7 = pneg %p5293_p2 }
 0x12e   : > { %p4669_p4 = scmp.lt.s32.totalorder %s5287_s4, %s5749_s7  ;;  %p4670_p6 = scmp.lt.s32.totalorder %s4668_s22, %s4663_s14 }
 0x12f   : > { %p4666_p1 = pnand %p4665_p7, %p4664_p8 }
 0x130   : > { %p4671_p10 = por %p4670_p6, %p4669_p4 }
 0x131   : > { %p4667_p3 = pneg %p4666_p1 }
 0x133   : > { %p4672_p9 = pnand %p4671_p10, %p4667_p3 }
 0x135   : > { %4675 = shalt.err (!%p4672_p9)
}
 0x136   : > { %s4676_s10 = scalar_lea.vmem %s5289_s6, 128  ;;  %s4881_s1 = smov [#allocation4]  }
 0x137   : > { %p4677_p12 = scmp.ne.s32.totalorder %s5289_s6, %s4676_s10  ;;  %s4681_s19 = sshll.u32 %s4881_s1, 4  ;;  %s4682_s19 = int_to_ptr.vmem [resolvable:$false] %s4681_s19 }
 0x138   : > { %s4683_s12 = scalar_lea.vmem %s4682_s19, 256  ;;  %p4684_p8 = scmp.lt.s32.totalorder %s5289_s6, %s4682_s19 }
 0x139   : > { %p4679_p13 = pnand %p4677_p12, %p4665_p7  ;;  %p4685_p1 = scmp.lt.s32.totalorder %s4683_s12, %s4676_s10 }
 0x13b   : > { %p4680_p5 = pneg %p4679_p13  ;;  %p4686_p0 = por %p4685_p1, %p4684_p8 }
 0x13d   : > { %p4687_p4 = pnand %p4686_p0, %p4680_p5 }
 0x13f   : > { %4690 = shalt.err (!%p4687_p4)
}
 0x140   : > { %s5756_s14 = sld [smem:[#allocation47_spill]]  ;;  %s3616_s22 = sshll.u32 %s4823_s18, 4 }
 0x141   : > { %4074 = dma.hbm_to_vmem [thread:$0]  (!%p5293_p2), %s5287_s4, 128, %s5289_s6, %s1199_s13  }
 0x142   : > { %s1219_s1 = scalar_lea.vmem [#allocation7], %s5274_s9  ;;  %s5757_s12 = sand.u32 1, %s4823_s18  }
 0x143   : > { %s1226_s7 = sshll.u32 %s1219_s1, 4  ;;  %s1217_s10 = scalar_lea.sflag [#allocation8], %s5757_s12  ;;  %s1227_s7 = int_to_ptr.vmem [resolvable:$true] %s1226_s7 }
 0x146   : > { %s1224_s19 = scalar_lea.hbm %s5756_s14, %s3616_s22  ;;  %s4696_s20 = scalar_lea.hbm %s5756_s14, 32 }
 0x147   : > { %s4691_s17 = scalar_lea.hbm %s1224_s19, 16  ;;  %p4697_p6 = scmp.lt.s32.totalorder %s1224_s19, %s5756_s14 }
 0x148   : > { %p4692_p0 = scmp.ne.s32.totalorder %s1224_s19, %s4691_s17  ;;  %p4698_p10 = scmp.lt.s32.totalorder %s4696_s20, %s4691_s17 }
 0x14a   : > { %p4694_p5 = pnand %p4692_p0, %p4665_p7  ;;  %p4699_p9 = por %p4698_p10, %p4697_p6 }
 0x14c   : > { %p4695_p3 = pneg %p4694_p5 }
 0x14e   : > { %p4700_p12 = pnand %p4699_p9, %p4695_p3 }
 0x150   : > { %4703 = shalt.err (!%p4700_p12)
}
 0x151   : > { %s4704_s13 = scalar_lea.vmem %s1227_s7, 16  ;;  %s4882_s6 = smov [#allocation7]  }
 0x152   : > { %p4705_p13 = scmp.ne.s32.totalorder %s1227_s7, %s4704_s13  ;;  %s4709_s4 = sshll.u32 %s4882_s6, 4  ;;  %s4710_s4 = int_to_ptr.vmem [resolvable:$false] %s4709_s4 }
 0x153   : > { %s4711_s9 = scalar_lea.vmem %s4710_s4, 32  ;;  %p4712_p4 = scmp.lt.s32.totalorder %s1227_s7, %s4710_s4 }
 0x154   : > { %p4707_p8 = pnand %p4705_p13, %p4665_p7  ;;  %p4713_p0 = scmp.lt.s32.totalorder %s4711_s9, %s4704_s13 }
 0x156   : > { %p4708_p1 = pneg %p4707_p8  ;;  %p4714_p5 = por %p4713_p0, %p4712_p4 }
 0x158   : > { %p4715_p11 = pnand %p4714_p5, %p4708_p1 }
 0x15a   : > { %4718 = shalt.err (!%p4715_p11)
}
 0x15b   : > { %4077 = dma.hbm_to_vmem [thread:$0]  (!%p5293_p2), %s1224_s19, 16, %s1227_s7, %s1217_s10  }
 0x15c   : > { %p5758_p3 = scmp.ne.s32.totalorder %s5735_s28, 0 }
 0x15d   : > { %s5337_s17 = sand.u32 (!%p5758_p3), 1, %s4815_s16   ;;  %p5759_p7 = scmp.ne.s32.totalorder (!%p5758_p3), %s5752_s3, 0 }
 0x15e   : > { %1235 = sbr.rel (%p5758_p3) target bundleno = 4970 (0x136a), region = 172  ;;  %s3618_s20 = sshll.u32 (!%p5758_p3), %s5337_s17, 3 }
 0x15f   : > { %s1238_s22 = scalar_lea.sflag (!%p5758_p3), [#allocation5], %s5337_s17  ;;  %s1241_s1 = scalar_lea.vmem (!%p5758_p3), [#allocation4], %s3618_s20 }
 0x163   : > { %4762 = dma.done.wait (%p5759_p7), %s1238_s22, 128  }
 0x164   : > { %4764 = vsyncadd (%p5759_p7), %s1238_s22, 4294967168  ;;  %s1246_s8 = sand.u32 1, %s5114_s26   ;;  %s1249_s7 = scalar_lea.vmem [#allocation7], %s5337_s17 }
 0x165   : > { %s1247_s28 = scalar_lea.sflag [#allocation8], %s1246_s8 }
 0x166   : > { %4766 = dma.done.wait (%p5759_p7), %s1247_s28, 16  }
 0x167   : > { %4768 = vsyncadd (%p5759_p7), %s1247_s28, 4294967280  ;;  %p5760_p11 = scmp.eq.s32.totalorder %s5114_s26, 0 }
 0x169   : > { %4770 = dma.done.wait (%p5760_p11), [#allocation8], 16   ;;  %p5761_p2 = pmov %p5760_p11 }
 0x16b   : > { %4772 = vsyncadd (%p5761_p2), [#allocation8], 4294967280  ;;  %p5762_p6 = pmov %p5761_p2 }
 0x16c   : > { %p5763_p10 = pmov %p5761_p2 }
 0x16d   : > { %4774 = dma.done.wait (%p5762_p6), [#allocation11], 32  }
 0x16e   : > { %4776 = vsyncadd (%p5763_p10), [#allocation11], 4294967264  ;;  %p5764_p9 = pmov %p5761_p2 }
 0x16f   : > { %p5765_p12 = pmov %p5761_p2 }
 0x170   : > { %4778 = dma.done.wait (%p5764_p9), [#allocation14], 32  }
 0x171   : > { %4780 = vsyncadd (%p5765_p12), [#allocation14], 4294967264  ;;  %p5766_p13 = pmov %p5761_p2 }
 0x172   : > { %p5767_p8 = pmov %p5761_p2 }
 0x173   : > { %4782 = dma.done.wait (%p5766_p13), [#allocation17], 32  }
 0x174   : > { %4784 = vsyncadd (%p5767_p8), [#allocation17], 4294967264  ;;  %p5768_p1 = pmov %p5761_p2 }
 0x176   : > { %4786 = dma.done.wait (%p5768_p1), [#allocation20], 32   ;;  %p5769_p4 = pmov %p5768_p1 }
 0x177   : > { %p5770_p0 = pmov %p5768_p1 }
 0x178   : > { %4788 = vsyncadd (%p5769_p4), [#allocation20], 4294967264 }
 0x179   : > { %4790 = dma.done.wait (%p5770_p0), [#allocation23], 32   ;;  %p5771_p5 = pmov %p5770_p0 }
 0x17a   : > { %p5772_p3 = pmov %p5770_p0 }
 0x17b   : > { %4792 = vsyncadd (%p5771_p5), [#allocation23], 4294967264 }
 0x17c   : > { %4794 = dma.done.wait (%p5772_p3), [#allocation26], 528   ;;  %p5773_p7 = pmov %p5770_p0 }
 0x17d   : > { %p5774_p11 = pmov %p5770_p0 }
 0x17e   : > { %4796 = vsyncadd (%p5773_p7), [#allocation26], 4294966768 }
 0x17f   : > { %4798 = dma.done.wait (%p5774_p11), [#allocation29], 528   ;;  %p5775_p2 = pmov %p5770_p0 }
 0x180   : > { %p5776_p6 = pmov %p5770_p0 }
 0x181   : > { %4800 = vsyncadd (%p5775_p2), [#allocation29], 4294966768 }
 0x182   : > { %4802 = dma.done.wait (%p5776_p6), [#allocation32], 512   ;;  %p5777_p10 = pmov %p5770_p0 }
 0x183   : > { %s5778_s3 = sld [smem:[#allocation50_spill]]  ;;  %vm1413_vm0 = vcmask 261120   ;;  %v5389_v0 = vld [vmem:[%s1241_s1] sm:$0xff]  ;;  %v4883_v8 = vmov 0.0   ;;  %vm4884_vm1 = vmmov 0   ;;  %vm1542_vm2 = vcmask 523264  }
 0x184   : > { %4804 = vsyncadd (%p5777_p10), [#allocation32], 4294966784  ;;  %v1414_v1 = vsel %vm1413_vm0, %v5389_v0, 0.0  ;;  %3775 = vmatprep.subr.mxu0 %v4883_v8  ;;  %s5779_s19 = sld [smem:[#allocation51_spill]]  ;;  %3783 = vmatprep.mubr.msk.f32.mxu0 %vm4884_vm1, %v4883_v8  ;;  %v3636_v21 = vld [vmem:[#allocation9] ss:$0 sm:$0xff] }
 0x185   : > { %1415 = vadd.xlane.f32.xlu0 %v1414_v1  ;;  %3786 = vmatprep.subr.mxu1 %v4883_v8  ;;  %v3637_v23 = vld [vmem:[#allocation10] ss:$0 sm:$0xff]  ;;  %v3638_v29 = vld [vmem:[#allocation12] ss:$0 sm:$0xff]  ;;  %s5780_s12 = sld [smem:[#allocation55_spill]]  ;;  %s4885_s6 = smov 120  }
 0x186   : > { %3802 = vmatprep.mubr.msk.f32.mxu1 %vm4884_vm1, %v4883_v8  ;;  %v3640_v34 = vld [vmem:[#allocation13] ss:$0 sm:$0xff]  ;;  %s5781_s10 = sld [smem:[#allocation58_spill]]  ;;  %v3642_v58 = vld [vmem:[#allocation15] ss:$0 sm:$0xff]  ;;  %vm1895_vm3 = vcmask 64512  }
 0x187   : > { %s5782_s13 = sld [smem:[#allocation56_spill]]  ;;  %v3643_v60 = vld [vmem:[#allocation16] ss:$0 sm:$0xff]  ;;  %s4887_s4 = smov 104   ;;  %vm2239_vm6 = vcmask 130112   ;;  %vm2413_vm7 = vcmask 195712  }
 0x188   : > { %s4888_s9 = smov 112   ;;  %s5783_s22 = sld [smem:[#allocation60_spill]]  ;;  %vm2587_vm8 = vcmask 261312   ;;  %vm2884_vm9 = vcmask 256000  }
 0x189   : > { %v1445_v7 = vld [vmem:[%s5778_s3 + $0x18] sm:$0xff]  ;;  %v1444_v9 = vld [vmem:[%s5778_s3 + $0x10] sm:$0xff]  ;;  %v1443_v10 = vld [vmem:[%s5778_s3 + $0x8] sm:$0xff]  ;;  %s4889_s1 = smov 8   ;;  %s4890_s8 = smov 16  }
 0x18a   : > { %3776 = vmatpush3.msra.mxu0 %v1445_v7  ;;  %v1442_v11 = vld [vmem:[%s5778_s3] sm:$0xff]  ;;  %v1534_v12 = vld [vmem:[%s5779_s19 + $0x38] sm:$0xff]  ;;  %v1533_v13 = vld [vmem:[%s5779_s19 + $0x30] sm:$0xff]  ;;  %s4891_s28 = smov 24   ;;  %2885 = vst.msk [vmem:[#allocation3] sm:$0x7] %vm2884_vm9, %v4883_v8 }
 0x18b   : > { %3777 = vmatprep.subr.mxu0 %v4883_v8  ;;  %3787 = vmatpush3.msra.mxu1 %v1534_v12  ;;  %v1532_v14 = vld [vmem:[%s5779_s19 + $0x28] sm:$0xff]  ;;  %v1531_v15 = vld [vmem:[%s5779_s19 + $0x20] sm:$0xff]  ;;  %v1530_v16 = vld [vmem:[%s5779_s19 + $0x18] sm:$0xff]  ;;  %2886 = vst.msk [vmem:[#allocation3 + $0xb] sm:$0x7] %vm2884_vm9, %v4883_v8  ;;  %s5795_s5 = sld [smem:[#allocation76_spill]] }
 0x18c   : > { %3778 = vmatpush3.msra.mxu0 %v1444_v9  ;;  %3788 = vmatprep.subr.mxu1 %v4883_v8  ;;  %v1529_v26 = vld [vmem:[%s5779_s19 + $0x10] sm:$0xff]  ;;  %v1528_v27 = vld [vmem:[%s5779_s19 + $0x8] sm:$0xff]  ;;  %v1527_v28 = vld [vmem:[%s5779_s19] sm:$0xff]  ;;  %s1409_s3 = scalar_lea.vmem [#allocation33], %s3618_s20  ;;  %p5799_p12 = scmp.ne.s32.totalorder %s5753_s27, 0 }
 0x18d   : > { %3779 = vmatprep.subr.mxu0 %v4883_v8  ;;  %3789 = vmatpush3.msra.mxu1 %v1533_v13  ;;  %v1650_v46 = vld [vmem:[%s5780_s12 + $0x18] sm:$0xff]  ;;  %v1649_v48 = vld [vmem:[%s5780_s12 + $0x10] sm:$0xff]  ;;  %v1648_v50 = vld [vmem:[%s5780_s12 + $0x8] sm:$0xff] }
 0x18e   : > { %3780 = vmatpush3.msra.mxu0 %v1443_v10  ;;  %3790 = vmatprep.subr.mxu1 %v4883_v8  ;;  %v1815_v47 = vld [vmem:[%s5781_s10 + $0x18] sm:$0xff]  ;;  %v1814_v49 = vld [vmem:[%s5781_s10 + $0x10] sm:$0xff]  ;;  %v1813_v51 = vld [vmem:[%s5781_s10 + $0x8] sm:$0xff] }
 0x18f   : > { %3781 = vmatprep.subr.mxu0 %v4883_v8  ;;  %3791 = vmatpush3.msra.mxu1 %v1532_v14  ;;  %v1647_v52 = vld [vmem:[%s5780_s12] sm:$0xff]  ;;  %v1734_v63 = vld [vmem:[%s5782_s13 + $0x18] sm:$0xff]  ;;  %v1732_v1 = vld [vmem:[%s5782_s13 + $0x8] sm:$0xff] }
 0x190   : > { %3782 = vmatpush3.msra.mxu0 %v1442_v11  ;;  %3792 = vmatprep.subr.mxu1 %v4883_v8  ;;  %v1812_v53 = vld [vmem:[%s5781_s10] sm:$0xff]  ;;  %v3646_v10 = vld [vmem:[#allocation19] ss:$0 sm:$0xff]  ;;  %v3648_v13 = vld [vmem:[#allocation21] ss:$0 sm:$0xff]  ;;  %s4892_s10 = smov [#allocation33]  }
 0x191   : > { %3805 = vmatprep.subr.mxu0 %v4883_v8  ;;  %3793 = vmatpush3.msra.mxu1 %v1531_v15 }
 0x192   : > { %3794 = vmatprep.subr.mxu1 %v4883_v8 }
 0x193   : > { %3795 = vmatpush3.msra.mxu1 %v1530_v16  ;;  %v1974_v16 = vlaneseq }
 0x194   : > { %3796 = vmatprep.subr.mxu1 %v4883_v8 }
 0x195   : > { %3797 = vmatpush3.msra.mxu1 %v1529_v26 }
 0x196   : > { %3798 = vmatprep.subr.mxu1 %v4883_v8 }
 0x197   : > { %3799 = vmatpush3.msra.mxu1 %v1528_v27 }
 0x198   : > { %3800 = vmatprep.subr.mxu1 %v4883_v8 }
 0x199   : > { %3801 = vmatpush3.msra.mxu1 %v1527_v28 }
 0x19a   : > { %3827 = vmatprep.subr.mxu1 %v4883_v8 }
 0x20e   : > { %v1416_v2 = vpop.xlane.xlu0 %1415 }
 0x20f   : > { %v1418_v3 = vmul.f32 0.03125, %v1416_v2  ;;  %v1731_v2 = vld [vmem:[%s5782_s13] sm:$0xff] }
 0x211   : > { %v1419_v4 = vsub.f32 %v5389_v0, %v1418_v3  ;;  %v3644_v3 = vld [vmem:[#allocation18] ss:$0 sm:$0xff] }
 0x213   : > { %v1420_v5 = vmul.f32 %v1419_v4, %v1419_v4 }
 0x215   : > { %v1421_v6 = vsel %vm1413_vm0, %v1420_v5, 0.0 }
 0x216   : > { %1422 = vadd.xlane.f32.xlu0 %v1421_v6 }
 0x29f   : > { %v1423_v17 = vpop.xlane.xlu0 %1422 }
 0x2a0   : > { %v1424_v18 = vmul.f32 0.03125, %v1423_v17  ;;  %v1893_v17 = vld [vmem:[%s1249_s7] sm:$0x1]  ;;  %s5784_s7 = sld [smem:[#allocation63_spill]] }
 0x2a1   : > { %vm1894_vm4 = vcmp.gt.f32.partialorder %v1893_v17, 0.5 }
 0x2a2   : > { %v1425_v19 = vadd.f32 1e-12, %v1424_v18  ;;  %v1975_v18 = vshrl.u32 %v1974_v16, 7 }
 0x2a4   : > { %4213 = vrsqrt.f32 %v1425_v19  ;;  %v1976_v19 = vsub.s32 0, %v1975_v18 }
 0x2b1   : > { %v4214_v20 = vpop.eup %4213 }
 0x2b2   : > { %v1427_v22 = vmul.f32 %v4214_v20, %v1419_v4  ;;  %v4886_v20 = vmov 0  }
 0x2b4   : > { %v1434_v24 = vmul.f32 %v3636_v21, %v1427_v22  ;;  %v1973_v21 = vsel %vm1894_vm4, 1, %v4886_v20 }
 0x2b5   : > { %v5483_v22 = vrot.slane %v1973_v21, %v1976_v19 }
 0x2b6   : > { %v1441_v25 = vadd.f32 %v3637_v23, %v1434_v24 }
 0x2b7   : > { %vm1978_vm5 = vcmp.eq.s32.totalorder %v5483_v22, 1 }
 0x2b8   : > { %3784 = vmatmul.mubr.msk.f32.vlgmr.msra.gmra.mxu0 %vm1413_vm0, %v1441_v25 }
 0x2b9   : > { %3813 = vmatprep.mubr.msk.f32.mxu0 %vm4884_vm1, %v4883_v8  ;;  %3806 = vmatpush3.msra.mxu0 %v1650_v46 }
 0x2ba   : > { %3807 = vmatprep.subr.mxu0 %v4883_v8 }
 0x2bb   : > { %3808 = vmatpush3.msra.mxu0 %v1649_v48 }
 0x2bc   : > { %3809 = vmatprep.subr.mxu0 %v4883_v8 }
 0x2bd   : > { %3810 = vmatpush3.msra.mxu0 %v1648_v50 }
 0x2be   : > { %3811 = vmatprep.subr.mxu0 %v4883_v8 }
 0x2bf   : > { %3812 = vmatpush3.msra.mxu0 %v1647_v52 }
 0x2c0   : > { %3816 = vmatprep.subr.mxu0 %v4883_v8 }
 0x378   : > { %v1522_v30 = vpop.f32.mrf.mxu0 }
 0x379   : > { %v1523_v31 = vadd.f32 %v3638_v29, %v1522_v30 }
 0x37a   : > { %v3785_v32 = vpop.f32.mrf.mxu0 }
 0x37b   : > { %v1526_v33 = vmax.f32 %v1523_v31, 0.0 }
 0x37d   : > { %3803 = vmatmul.mubr.msk.f32.vlgmr.msra.gmra.mxu1 %vm1542_vm2, %v1526_v33 }
 0x37e   : > { %3835 = vmatprep.mubr.msk.f32.mxu1 %vm4884_vm1, %v4883_v8  ;;  %3828 = vmatpush3.msra.mxu1 %v1815_v47 }
 0x37f   : > { %3829 = vmatprep.subr.mxu1 %v4883_v8 }
 0x380   : > { %3830 = vmatpush3.msra.mxu1 %v1814_v49 }
 0x381   : > { %3831 = vmatprep.subr.mxu1 %v4883_v8 }
 0x382   : > { %3832 = vmatpush3.msra.mxu1 %v1813_v51 }
 0x383   : > { %3833 = vmatprep.subr.mxu1 %v4883_v8 }
 0x384   : > { %3834 = vmatpush3.msra.mxu1 %v1812_v53 }
 0x385   : > { %3853 = vmatprep.subr.mxu1 %v4883_v8 }
 0x43d   : > { %v1612_v35 = vpop.f32.mrf.mxu1 }
 0x43e   : > { %v1613_v36 = vadd.f32 %v3640_v34, %v1612_v35 }
 0x43f   : > { %v3804_v37 = vpop.f32.mrf.mxu1 }
 0x440   : > { %v1616_v38 = vmul.f32 0.5, %v1613_v36 }
 0x442   : > { %v5432_v39 = vadd.f32 %v1616_v38, %v5389_v0  ;;  %v1733_v0 = vld [vmem:[%s5782_s13 + $0x10] sm:$0xff] }
 0x444   : > { %v1620_v40 = vsel %vm1413_vm0, %v5432_v39, 0.0 }
 0x445   : > { %1621 = vadd.xlane.f32.xlu1 %v1620_v40 }
 0x4ce   : > { %v1622_v41 = vpop.xlane.xlu1 %1621 }
 0x4cf   : > { %v1623_v42 = vmul.f32 0.03125, %v1622_v41 }
 0x4d1   : > { %v1624_v43 = vsub.f32 %v5432_v39, %v1623_v42 }
 0x4d3   : > { %v1625_v44 = vmul.f32 %v1624_v43, %v1624_v43 }
 0x4d5   : > { %v1626_v45 = vsel %vm1413_vm0, %v1625_v44, 0.0 }
 0x4d6   : > { %1627 = vadd.xlane.f32.xlu1 %v1626_v45 }
 0x55f   : > { %v1628_v54 = vpop.xlane.xlu1 %1627 }
 0x560   : > { %v1629_v55 = vmul.f32 0.03125, %v1628_v54 }
 0x562   : > { %v1630_v56 = vadd.f32 1e-12, %v1629_v55 }
 0x564   : > { %4215 = vrsqrt.f32 %v1630_v56 }
 0x571   : > { %v4216_v57 = vpop.eup %4215 }
 0x572   : > { %v1632_v59 = vmul.f32 %v4216_v57, %v1624_v43 }
 0x574   : > { %v1639_v61 = vmul.f32 %v3642_v58, %v1632_v59 }
 0x576   : > { %v1646_v62 = vadd.f32 %v3643_v60, %v1639_v61 }
 0x578   : > { %3814 = vmatmul.mubr.msk.f32.vlgmr.msra.gmra.mxu0 %vm1413_vm0, %v1646_v62  ;;  %3836 = vmatmul.mubr.msk.f32.vlgmr.msra.gmra.mxu1 %vm1413_vm0, %v1646_v62 }
 0x579   : > { %3817 = vmatpush3.msra.mxu0 %v1734_v63  ;;  %3824 = vmatprep.mubr.msk.f32.mxu0 %vm4884_vm1, %v4883_v8 }
 0x57a   : > { %3818 = vmatprep.subr.mxu0 %v4883_v8  ;;  %3855 = vmatprep.mubr.msk.f32.mxu1 %vm4884_vm1, %v4883_v8 }
 0x57b   : > { %3819 = vmatpush3.msra.mxu0 %v1733_v0 }
 0x57c   : > { %3820 = vmatprep.subr.mxu0 %v4883_v8 }
 0x57d   : > { %3821 = vmatpush3.msra.mxu0 %v1732_v1 }
 0x57e   : > { %3822 = vmatprep.subr.mxu0 %v4883_v8 }
 0x57f   : > { %3823 = vmatpush3.msra.mxu0 %v1731_v2 }
 0x580   : > { %3825 = vmatmul.mubr.msk.f32.vlgmr.msra.gmra.mxu0 %vm1413_vm0, %v1646_v62  ;;  %3838 = vmatprep.subr.mxu0 %v4883_v8 }
 0x581   : > { %3840 = vmatprep.mubr.msk.f32.mxu0 %vm4884_vm1, %v4883_v8 }
 0x638   : > { %v1727_v4 = vpop.f32.mrf.mxu0  ;;  %v1889_v5 = vpop.f32.mrf.mxu1 }
 0x639   : > { %v1728_v6 = vadd.f32 %v3644_v3, %v1727_v4  ;;  %v5474_v15 = vadd.f32 %v3648_v13, %v1889_v5 }
 0x63a   : > { %v3815_v7 = vpop.f32.mrf.mxu0  ;;  %v3837_v9 = vpop.f32.mrf.mxu1 }
 0x63b   : > { %2066 = vrot.lane.b32.xlu1 %v1728_v6, %s4885_s6 }
 0x640   : > { %v1808_v11 = vpop.f32.mrf.mxu0 }
 0x641   : > { %v1809_v12 = vadd.f32 %v3646_v10, %v1808_v11 }
 0x642   : > { %v3826_v14 = vpop.f32.mrf.mxu0 }
 0x643   : > { %3839 = vmatpush3.xpose.msk.msra.mxu0 %vm1895_vm3, %v1809_v12 }
 0x644   : > { %3843 = vmatprep.subr.mxu0 %v4883_v8 }
 0x646   : > { %3841 = vmatmul.mubr.msk.f32.vlgmr.msra.gmra.mxu0 %vm1895_vm3, %v1728_v6 }
 0x647   : > { %3844 = vmatpush3.msra.mxu0 %v5474_v15  ;;  %3845 = vmatprep.mubr.msk.f32.mxu0 %vm4884_vm1, %v4883_v8 }
 0x648   : > { %3848 = vmatprep.subr.mxu0 %v4883_v8 }
 0x6ad   : > { %v2067_v33 = vpop.permute.xlu1 %2066 }
 0x706   : > { %v1968_v23 = vpop.f32.mrf.mxu0 }
 0x707   : > { %v1972_v24 = vmul.f32 0.35355338, %v1968_v23 }
 0x708   : > { %v3842_v25 = vpop.f32.mrf.mxu0 }
 0x709   : > { %v1979_v26 = vsel %vm1978_vm5, %v1972_v24, -3.4028235e+38 }
 0x70a   : > { %v1980_v27 = vsel %vm1895_vm3, %v1979_v26, -inf }
 0x70b   : > { %1981 = vmax.xlane.f32.xlu0 %v1980_v27 }
 0x721   : > { %2068 = vrot.lane.b32.xlu0 %v1809_v12, %s4885_s6 }
 0x725   : > { %2417 = vrot.lane.b32.xlu0 %v1809_v12, %s4887_s4 }
 0x794   : > { %v1982_v28 = vpop.xlane.xlu0 %1981 }
 0x795   : > { %v1983_v29 = vsub.f32 %v1979_v26, %v1982_v28 }
 0x797   : > { %v1984_v30 = vmul.f32 1.442695, %v1983_v29  ;;  %v2593_v29 = vld [vmem:[%s5783_s22 + $0x18] sm:$0xff] }
 0x798   : > { %v2069_v40 = vpop.permute.xlu0 %2068 }
 0x799   : > { %4217 = vpow2.f32 %v1984_v30  ;;  %v2592_v30 = vld [vmem:[%s5783_s22 + $0x10] sm:$0xff] }
 0x79c   : > { %v2418_v42 = vpop.permute.xlu0 %2417 }
 0x7a6   : > { %v4218_v31 = vpop.eup %4217 }
 0x7a7   : > { %v1986_v32 = vsel %vm1895_vm3, %v4218_v31, 0.0 }
 0x7a8   : > { %1987 = vadd.xlane.f32.xlu1 %v1986_v32 }
 0x7b9   : > { %2243 = vrot.lane.b32.xlu1 %v1809_v12, %s4888_s9 }
 0x7bd   : > { %2241 = vrot.lane.b32.xlu1 %v1728_v6, %s4888_s9 }
 0x7c1   : > { %2415 = vrot.lane.b32.xlu1 %v1728_v6, %s4887_s4 }
 0x831   : > { %v1988_v34 = vpop.xlane.xlu1 %1987 }
 0x832   : > { %4219 = vrcp.f32 %v1988_v34 }
 0x835   : > { %v2244_v37 = vpop.permute.xlu1 %2243 }
 0x839   : > { %v2242_v41 = vpop.permute.xlu1 %2241 }
 0x83d   : > { %v2416_v43 = vpop.permute.xlu1 %2415 }
 0x83f   : > { %v4220_v35 = vpop.eup %4219 }
 0x840   : > { %v1990_v36 = vmul.f32 %v4220_v35, %v4218_v31  ;;  %v2591_v31 = vld [vmem:[%s5783_s22 + $0x8] sm:$0xff] }
 0x842   : > { %v1991_v38 = vsel %vm1978_vm5, %v1990_v36, 0.0 }
 0x843   : > { %3846 = vmatmul.mubr.msk.f32.vlgmr.msra.gmra.mxu0 %vm1895_vm3, %v1991_v38 }
 0x844   : > { %3849 = vmatpush3.xpose.msk.msra.mxu0 %vm1895_vm3, %v2069_v40  ;;  %3850 = vmatprep.mubr.msk.f32.mxu0 %vm4884_vm1, %v4883_v8 }
 0x845   : > { %3858 = vmatprep.subr.mxu0 %v4883_v8 }
 0x847   : > { %3851 = vmatmul.mubr.msk.f32.vlgmr.msra.gmra.mxu0 %vm1895_vm3, %v2067_v33  ;;  %v2590_v33 = vld [vmem:[%s5783_s22] sm:$0xff] }
 0x848   : > { %3859 = vmatpush3.xpose.msk.msra.mxu0 %vm1895_vm3, %v2244_v37  ;;  %3860 = vmatprep.mubr.msk.f32.mxu0 %vm4884_vm1, %v4883_v8 }
 0x849   : > { %3868 = vmatprep.subr.mxu0 %v4883_v8 }
 0x84b   : > { %3861 = vmatmul.mubr.msk.f32.vlgmr.msra.gmra.mxu0 %vm1895_vm3, %v2242_v41 }
 0x84c   : > { %3869 = vmatpush3.xpose.msk.msra.mxu0 %vm1895_vm3, %v2418_v42  ;;  %3870 = vmatprep.mubr.msk.f32.mxu0 %vm4884_vm1, %v4883_v8 }
 0x84d   : > { %3878 = vmatprep.subr.mxu0 %v4883_v8 }
 0x84f   : > { %3871 = vmatmul.mubr.msk.f32.vlgmr.msra.gmra.mxu0 %vm1895_vm3, %v2416_v43 }
 0x850   : > { %3886 = vmatprep.mubr.msk.f32.mxu0 %vm4884_vm1, %v4883_v8  ;;  %3879 = vmatpush3.msra.mxu0 %v2593_v29 }
 0x851   : > { %3880 = vmatprep.subr.mxu0 %v4883_v8 }
 0x852   : > { %3881 = vmatpush3.msra.mxu0 %v2592_v30 }
 0x853   : > { %3882 = vmatprep.subr.mxu0 %v4883_v8 }
 0x854   : > { %3883 = vmatpush3.msra.mxu0 %v2591_v31 }
 0x855   : > { %3884 = vmatprep.subr.mxu0 %v4883_v8 }
 0x856   : > { %3885 = vmatpush3.msra.mxu0 %v2590_v33 }
 0x857   : > { %3900 = vmatprep.subr.mxu0 %v4883_v8 }
 0x903   : > { %v2061_v44 = vpop.f32.mrf.mxu0 }
 0x904   : > { %2065 = vst.msk [vmem:[#allocation2] sm:$0xff] %vm1895_vm3, %v2061_v44  ;;  %v3663_v44 = vld [vmem:[#allocation22] ss:$0 sm:$0xff] }
 0x905   : > { %v3847_v45 = vpop.f32.mrf.mxu0 }
 0x907   : > { %v2140_v46 = vpop.f32.mrf.mxu0 }
 0x908   : > { %v2144_v47 = vmul.f32 0.35355338, %v2140_v46 }
 0x909   : > { %v3852_v48 = vpop.f32.mrf.mxu0 }
 0x90a   : > { %v2145_v49 = vsel %vm1978_vm5, %v2144_v47, -3.4028235e+38 }
 0x90b   : > { %v2315_v50 = vpop.f32.mrf.mxu0  ;;  %v2146_v51 = vsel %vm1895_vm3, %v2145_v49, -inf }
 0x90c   : > { %v2319_v52 = vmul.f32 0.35355338, %v2315_v50  ;;  %2147 = vmax.xlane.f32.xlu0 %v2146_v51 }
 0x90d   : > { %v3862_v53 = vpop.f32.mrf.mxu0 }
 0x90e   : > { %v2320_v54 = vsel %vm1978_vm5, %v2319_v52, -3.4028235e+38 }
 0x90f   : > { %v2489_v55 = vpop.f32.mrf.mxu0  ;;  %v2321_v56 = vsel %vm1895_vm3, %v2320_v54, -inf }
 0x910   : > { %v2493_v57 = vmul.f32 0.35355338, %v2489_v55  ;;  %2322 = vmax.xlane.f32.xlu1 %v2321_v56  ;;  %v2792_v55 = vld [vmem:[#allocation27 + $0x18] sm:$0xff]  ;;  %v2791_v56 = vld [vmem:[#allocation27 + $0x10] sm:$0xff] }
 0x911   : > { %v3872_v58 = vpop.f32.mrf.mxu0 }
 0x912   : > { %v2494_v59 = vsel %vm1978_vm5, %v2493_v57, -3.4028235e+38  ;;  %v2706_v57 = vld [vmem:[%s5784_s7 + $0x8] sm:$0xff] }
 0x913   : > { %v2495_v60 = vsel %vm1895_vm3, %v2494_v59, -inf  ;;  %v2790_v58 = vld [vmem:[#allocation27 + $0x8] sm:$0xff] }
 0x914   : > { %2496 = vmax.xlane.f32.xlu0 %v2495_v60  ;;  %v2789_v60 = vld [vmem:[#allocation27] sm:$0xff] }
 0x921   : > { %2333 = vrot.lane.b32.xlu1 %v5474_v15, %s4888_s9  ;;  %s5787_s9 = sld [smem:[#allocation66_spill]] }
 0x995   : > { %v2148_v61 = vpop.xlane.xlu0 %2147 }
 0x996   : > { %v2149_v62 = vsub.f32 %v2145_v49, %v2148_v61 }
 0x998   : > { %v2150_v63 = vmul.f32 1.442695, %v2149_v62 }
 0x999   : > { %v2323_v0 = vpop.xlane.xlu1 %2322 }
 0x99a   : > { %4221 = vpow2.f32 %v2150_v63  ;;  %v2324_v1 = vsub.f32 %v2320_v54, %v2323_v0  ;;  %v2708_v54 = vld [vmem:[%s5784_s7 + $0x18] sm:$0xff] }
 0x99c   : > { %v2325_v2 = vmul.f32 1.442695, %v2324_v1  ;;  %v3664_v1 = vld [vmem:[#allocation24] ss:$0 sm:$0xff] }
 0x99d   : > { %v2497_v3 = vpop.xlane.xlu0 %2496  ;;  %v2334_v14 = vpop.permute.xlu1 %2333 }
 0x99e   : > { %4223 = vpow2.f32 %v2325_v2  ;;  %v2498_v4 = vsub.f32 %v2494_v59, %v2497_v3  ;;  %v2705_v59 = vld [vmem:[%s5784_s7] sm:$0xff] }
 0x99f   : > { %v3665_v3 = vld [vmem:[#allocation25] ss:$0 sm:$0xff] }
 0x9a0   : > { %v2499_v5 = vmul.f32 1.442695, %v2498_v4 }
 0x9a2   : > { %4225 = vpow2.f32 %v2499_v5 }
 0x9a7   : > { %v4222_v6 = vpop.eup %4221 }
 0x9a8   : > { %v2152_v7 = vsel %vm1895_vm3, %v4222_v6, 0.0 }
 0x9a9   : > { %2153 = vadd.xlane.f32.xlu0 %v2152_v7  ;;  %v2983_v7 = vld [vmem:[#allocation30 + $0x10] sm:$0xff] }
 0x9ab   : > { %v4224_v9 = vpop.eup %4223 }
 0x9ac   : > { %v2327_v10 = vsel %vm1895_vm3, %v4224_v9, 0.0 }
 0x9ad   : > { %2328 = vadd.xlane.f32.xlu0 %v2327_v10  ;;  %v2981_v10 = vld [vmem:[#allocation30] sm:$0xff] }
 0x9af   : > { %v4226_v11 = vpop.eup %4225 }
 0x9b0   : > { %v2501_v12 = vsel %vm1895_vm3, %v4226_v11, 0.0 }
 0x9b1   : > { %2502 = vadd.xlane.f32.xlu1 %v2501_v12 }
 0x9c2   : > { %2507 = vrot.lane.b32.xlu1 %v5474_v15, %s4887_s4  ;;  %s5786_s4 = sld [smem:[#allocation65_spill]] }
 0x9c3   : > { %2159 = vrot.lane.b32.xlu0 %v5474_v15, %s4885_s6  ;;  %s5785_s6 = sld [smem:[#allocation64_spill]] }
 0x9c8   : > { %v3674_v31 = vld [vmem:[%s5786_s4 + $0x2] ss:$0 sm:$0xff] }
 0xa32   : > { %v2154_v13 = vpop.xlane.xlu0 %2153 }
 0xa33   : > { %4227 = vrcp.f32 %v2154_v13 }
 0xa36   : > { %v2329_v16 = vpop.xlane.xlu0 %2328 }
 0xa37   : > { %4229 = vrcp.f32 %v2329_v16 }
 0xa3a   : > { %v2503_v17 = vpop.xlane.xlu1 %2502  ;;  %v2160_v18 = vpop.permute.xlu0 %2159 }
 0xa3b   : > { %4231 = vrcp.f32 %v2503_v17  ;;  %3854 = vmatpush3.msra.mxu1 %v2160_v18 }
 0xa3c   : > { %3863 = vmatprep.subr.mxu1 %v4883_v8 }
 0xa3e   : > { %v2508_v26 = vpop.permute.xlu1 %2507 }
 0xa40   : > { %v4228_v19 = vpop.eup %4227 }
 0xa41   : > { %v2156_v20 = vmul.f32 %v4228_v19, %v4222_v6  ;;  %v2984_v6 = vld [vmem:[#allocation30 + $0x18] sm:$0xff] }
 0xa43   : > { %v2157_v21 = vsel %vm1978_vm5, %v2156_v20, 0.0 }
 0xa44   : > { %v4230_v23 = vpop.eup %4229  ;;  %3856 = vmatmul.mubr.msk.f32.vlgmr.msra.gmra.mxu1 %vm1895_vm3, %v2157_v21  ;;  %v3666_v21 = vld [vmem:[%s5785_s6] ss:$0 sm:$0xff]  ;;  %s5791_s6 = sld [smem:[#allocation75_spill]] }
 0xa45   : > { %3864 = vmatpush3.msra.mxu1 %v2334_v14  ;;  %3865 = vmatprep.mubr.msk.f32.mxu1 %vm4884_vm1, %v4883_v8  ;;  %v2331_v15 = vmul.f32 %v4230_v23, %v4224_v9  ;;  %v2982_v9 = vld [vmem:[#allocation30 + $0x8] sm:$0xff] }
 0xa46   : > { %3873 = vmatprep.subr.mxu1 %v4883_v8 }
 0xa47   : > { %v2332_v24 = vsel %vm1978_vm5, %v2331_v15, 0.0 }
 0xa48   : > { %v4232_v25 = vpop.eup %4231  ;;  %3866 = vmatmul.mubr.msk.f32.vlgmr.msra.gmra.mxu1 %vm1895_vm3, %v2332_v24 }
 0xa49   : > { %3874 = vmatpush3.msra.mxu1 %v2508_v26  ;;  %3875 = vmatprep.mubr.msk.f32.mxu1 %vm4884_vm1, %v4883_v8  ;;  %v2505_v27 = vmul.f32 %v4232_v25, %v4226_v11  ;;  %v3668_v11 = vld [vmem:[#allocation28] ss:$0 sm:$0xff]  ;;  %v3671_v25 = vld [vmem:[%s5786_s4] ss:$0 sm:$0xff]  ;;  %v3673_v26 = vld [vmem:[%s5786_s4 + $0x1] ss:$0 sm:$0xff] }
 0xa4a   : > { %3889 = vmatprep.subr.mxu1 %v4883_v8 }
 0xa4b   : > { %v2506_v28 = vsel %vm1978_vm5, %v2505_v27, 0.0  ;;  %v3672_v27 = vld [vmem:[%s5787_s9] ss:$0 sm:$0xff]  ;;  %s5792_s9 = sld [smem:[#allocation71_spill]] }
 0xa4c   : > { %3876 = vmatmul.mubr.msk.f32.vlgmr.msra.gmra.mxu1 %vm1895_vm3, %v2506_v28 }
 0xa4d   : > { %3897 = vmatprep.mubr.msk.f32.mxu1 %vm4884_vm1, %v4883_v8  ;;  %3890 = vmatpush3.msra.mxu1 %v2708_v54 }
 0xa4e   : > { %3891 = vmatprep.subr.mxu1 %v4883_v8 }
 0xb04   : > { %v2231_v32 = vpop.f32.mrf.mxu1 }
 0xb05   : > { %2236 = vrot.lane.b32.xlu1 %v2231_v32, %s4889_s1  ;;  %s5788_s1 = sld [smem:[#allocation67_spill]] }
 0xb06   : > { %v3857_v22 = vpop.f32.mrf.mxu1 }
 0xb08   : > { %v2405_v34 = vpop.f32.mrf.mxu1 }
 0xb09   : > { %2410 = vrot.lane.b32.xlu0 %v2405_v34, %s4890_s8  ;;  %v3675_v34 = vld [vmem:[%s5786_s4 + $0x3] ss:$0 sm:$0xff]  ;;  %s5789_s8 = sld [smem:[#allocation68_spill]] }
 0xb0a   : > { %v3867_v35 = vpop.f32.mrf.mxu1 }
 0xb0b   : > { %v3679_v54 = vld [vmem:[%s5788_s1] ss:$0 sm:$0xff]  ;;  %s5793_s1 = sld [smem:[#allocation72_spill]] }
 0xb0c   : > { %v2579_v36 = vpop.f32.mrf.mxu1 }
 0xb0d   : > { %2584 = vrot.lane.b32.xlu1 %v2579_v36, %s4891_s28  ;;  %s5790_s28 = sld [smem:[#allocation70_spill]] }
 0xb0e   : > { %v3877_v37 = vpop.f32.mrf.mxu1 }
 0xb77   : > { %v2237_v38 = vpop.permute.xlu1 %2236 }
 0xb78   : > { %2240 = vst.msk [vmem:[#allocation2] sm:$0xff] %vm2239_vm6, %v2237_v38  ;;  %v3676_v38 = vld [vmem:[%s5786_s4 + $0x4] ss:$0 sm:$0xff] }
 0xb7b   : > { %v2411_v40 = vpop.permute.xlu0 %2410 }
 0xb7c   : > { %2414 = vst.msk [vmem:[#allocation2] sm:$0xff] %vm2413_vm7, %v2411_v40 }
 0xb7f   : > { %v2585_v41 = vpop.permute.xlu1 %2584 }
 0xb80   : > { %2588 = vst.msk [vmem:[#allocation2] sm:$0xff] %vm2587_vm8, %v2585_v41 }
 0xb87   : > { %v2589_v42 = vld [vmem:[#allocation2] sm:$0xff] }
 0xb88   : > { %3887 = vmatmul.mubr.msk.f32.vlgmr.msra.gmra.mxu0 %vm1413_vm0, %v2589_v42 }
 0xb89   : > { %3908 = vmatprep.mubr.msk.f32.mxu0 %vm4884_vm1, %v4883_v8  ;;  %3901 = vmatpush3.msra.mxu0 %v2792_v55 }
 0xb8a   : > { %3902 = vmatprep.subr.mxu0 %v4883_v8 }
 0xb8b   : > { %3903 = vmatpush3.msra.mxu0 %v2791_v56 }
 0xb8c   : > { %3904 = vmatprep.subr.mxu0 %v4883_v8 }
 0xb8d   : > { %3905 = vmatpush3.msra.mxu0 %v2790_v58 }
 0xb8e   : > { %3906 = vmatprep.subr.mxu0 %v4883_v8 }
 0xb8f   : > { %3907 = vmatpush3.msra.mxu0 %v2789_v60 }
 0xb90   : > { %3922 = vmatprep.subr.mxu0 %v4883_v8 }
 0xc48   : > { %v2663_v43 = vpop.f32.mrf.mxu0 }
 0xc49   : > { %v2667_v45 = vadd.f32 %v2663_v43, %v5432_v39  ;;  %v2707_v39 = vld [vmem:[%s5784_s7 + $0x10] sm:$0xff]  ;;  %v3677_v43 = vld [vmem:[%s5786_s4 + $0x5] ss:$0 sm:$0xff] }
 0xc4a   : > { %v3888_v46 = vpop.f32.mrf.mxu0  ;;  %3892 = vmatpush3.msra.mxu1 %v2707_v39  ;;  %v3680_v39 = vld [vmem:[%s5789_s8] ss:$0 sm:$0xff]  ;;  %s5794_s8 = sld [smem:[#allocation74_spill]] }
 0xc4b   : > { %v5564_v47 = vadd.f32 %v3663_v44, %v2667_v45  ;;  %3893 = vmatprep.subr.mxu1 %v4883_v8 }
 0xc4c   : > { %3894 = vmatpush3.msra.mxu1 %v2706_v57 }
 0xc4d   : > { %v2678_v48 = vsel %vm1413_vm0, %v5564_v47, 0.0  ;;  %3895 = vmatprep.subr.mxu1 %v4883_v8 }
 0xc4e   : > { %2679 = vadd.xlane.f32.xlu0 %v2678_v48  ;;  %3896 = vmatpush3.msra.mxu1 %v2705_v59  ;;  %v3678_v48 = vld [vmem:[%s5786_s4 + $0x6] ss:$0 sm:$0xff]  ;;  %s3315_s4 = sshll.u32 %s1409_s3, 4  ;;  %s3316_s4 = int_to_ptr.vmem [resolvable:$true] %s3315_s4 }
 0xc4f   : > { %3911 = vmatprep.subr.mxu1 %v4883_v8  ;;  %s4719_s7 = scalar_lea.vmem %s3316_s4, 128 }
 0xc50   : > { %p4720_p9 = scmp.ne.s32.totalorder %s3316_s4, %s4719_s7 }
 0xc52   : > { %p4721_p13 = pnand %p4720_p9, %p5799_p12 }
 0xc54   : > { %p4722_p8 = pneg %p4721_p13 }
 0xcd7   : > { %v2680_v49 = vpop.xlane.xlu0 %2679 }
 0xcd8   : > { %v2681_v50 = vmul.f32 0.03125, %v2680_v49 }
 0xcda   : > { %v2682_v51 = vsub.f32 %v5564_v47, %v2681_v50 }
 0xcdc   : > { %v2683_v52 = vmul.f32 %v2682_v51, %v2682_v51 }
 0xcde   : > { %v2684_v53 = vsel %vm1413_vm0, %v2683_v52, 0.0 }
 0xcdf   : > { %2685 = vadd.xlane.f32.xlu1 %v2684_v53 }
 0xd68   : > { %v2686_v61 = vpop.xlane.xlu1 %2685 }
 0xd69   : > { %v2687_v62 = vmul.f32 0.03125, %v2686_v61 }
 0xd6b   : > { %v2688_v63 = vadd.f32 1e-12, %v2687_v62 }
 0xd6d   : > { %4233 = vrsqrt.f32 %v2688_v63 }
 0xd7a   : > { %v4234_v0 = vpop.eup %4233 }
 0xd7b   : > { %v2690_v2 = vmul.f32 %v4234_v0, %v2682_v51  ;;  %v3683_v0 = vld [vmem:[%s5790_s28] ss:$0 sm:$0xff]  ;;  %s5796_s28 = sld [smem:[#allocation77_spill]] }
 0xd7d   : > { %v2697_v4 = vmul.f32 %v3664_v1, %v2690_v2 }
 0xd7f   : > { %v2704_v5 = vadd.f32 %v3665_v3, %v2697_v4 }
 0xd81   : > { %3898 = vmatmul.mubr.msk.f32.vlgmr.msra.gmra.mxu1 %vm1413_vm0, %v2704_v5  ;;  %3909 = vmatmul.mubr.msk.f32.vlgmr.msra.gmra.mxu0 %vm1413_vm0, %v2704_v5 }
 0xd82   : > { %3919 = vmatprep.mubr.msk.f32.mxu1 %vm4884_vm1, %v4883_v8  ;;  %3930 = vmatprep.mubr.msk.f32.mxu0 %vm4884_vm1, %v4883_v8 }
 0xd83   : > { %3912 = vmatpush3.msra.mxu1 %v2984_v6 }
 0xd84   : > { %3913 = vmatprep.subr.mxu1 %v4883_v8 }
 0xd85   : > { %3914 = vmatpush3.msra.mxu1 %v2983_v7 }
 0xd86   : > { %3915 = vmatprep.subr.mxu1 %v4883_v8 }
 0xd87   : > { %3916 = vmatpush3.msra.mxu1 %v2982_v9 }
 0xd88   : > { %3917 = vmatprep.subr.mxu1 %v4883_v8 }
 0xd89   : > { %3918 = vmatpush3.msra.mxu1 %v2981_v10 }
 0xd8a   : > { %3933 = vmatprep.subr.mxu1 %v4883_v8 }
 0xe41   : > { %v2785_v12 = vpop.f32.mrf.mxu1  ;;  %v2866_v13 = vpop.f32.mrf.mxu0 }
 0xe42   : > { %v2867_v14 = vadd.f32 %v3668_v11, %v2866_v13  ;;  %v2786_v23 = vadd.f32 %v3666_v21, %v2785_v12  ;;  %v3099_v11 = vld [vmem:[#allocation31 + $0x18] sm:$0xff]  ;;  %v3097_v12 = vld [vmem:[#allocation31 + $0x8] sm:$0xff]  ;;  %v3096_v13 = vld [vmem:[#allocation31] sm:$0xff] }
 0xe43   : > { %v3899_v16 = vpop.f32.mrf.mxu1  ;;  %v3910_v17 = vpop.f32.mrf.mxu0  ;;  %3923 = vmatpush3.msra.mxu0 %v3099_v11 }
 0xe44   : > { %v3670_v18 = vmul.f32 -1.442695, %v2867_v14  ;;  %3924 = vmatprep.subr.mxu0 %v4883_v8  ;;  %v3188_v14 = vld [vmem:[%s5791_s6 + $0x38] sm:$0xff]  ;;  %v3187_v16 = vld [vmem:[%s5791_s6 + $0x30] sm:$0xff]  ;;  %v3186_v17 = vld [vmem:[%s5791_s6 + $0x28] sm:$0xff] }
 0xe46   : > { %4235 = vpow2.f32 %v3670_v18  ;;  %v3185_v18 = vld [vmem:[%s5791_s6 + $0x20] sm:$0xff] }
 0xe53   : > { %v4236_v19 = vpop.eup %4235 }
 0xe54   : > { %v2873_v20 = vadd.f32 1.0, %v4236_v19  ;;  %v3184_v19 = vld [vmem:[%s5791_s6 + $0x18] sm:$0xff] }
 0xe56   : > { %4237 = vrcp.f32 %v2873_v20 }
 0xe63   : > { %v4238_v15 = vpop.eup %4237 }
 0xe64   : > { %v2876_v24 = vmul.f32 %v4238_v15, %v2786_v23 }
 0xe66   : > { %2887 = vst.msk [vmem:[#allocation3 + $0x3] sm:$0xff] %vm1413_vm0, %v2876_v24  ;;  %v3684_v24 = vld [vmem:[%s5792_s9] ss:$0 sm:$0xff]  ;;  %s5797_s9 = sld [smem:[#allocation78_spill]] }
 0xe6d   : > { %v2889_v28 = vld [vmem:[#allocation3] sm:$0xff] }
 0xe6e   : > { %v2904_v29 = vld [vmem:[#allocation3 + $0x1] sm:$0xff]  ;;  %v2896_v30 = vmul.f32 %v3671_v25, %v2889_v28 }
 0xe6f   : > { %v2913_v32 = vld [vmem:[#allocation3 + $0x2] sm:$0xff]  ;;  %v2911_v22 = vmul.f32 %v3673_v26, %v2904_v29  ;;  %v3685_v26 = vld [vmem:[%s5793_s1] ss:$0 sm:$0xff]  ;;  %s5798_s1 = sld [smem:[#allocation79_spill]] }
 0xe70   : > { %v2903_v33 = vadd.f32 %v3672_v27, %v2896_v30  ;;  %v2922_v35 = vld [vmem:[#allocation3 + $0x3] sm:$0xff]  ;;  %v2920_v37 = vmul.f32 %v3674_v31, %v2913_v32  ;;  %v3181_v31 = vld [vmem:[%s5791_s6] sm:$0xff] }
 0xe71   : > { %v2931_v40 = vld [vmem:[#allocation3 + $0x4] sm:$0xff]  ;;  %v2929_v42 = vmul.f32 %v3675_v34, %v2922_v35  ;;  %v3686_v32 = vld [vmem:[%s5794_s8] ss:$0 sm:$0xff]  ;;  %s3693_s8 = sshll.u32 %s5114_s26, 7 }
 0xe72   : > { %v2912_v36 = vadd.f32 %v2911_v22, %v2903_v33  ;;  %v2940_v44 = vld [vmem:[#allocation3 + $0x5] sm:$0xff]  ;;  %v2938_v46 = vmul.f32 %v3676_v38, %v2931_v40 }
 0xe73   : > { %v2949_v49 = vld [vmem:[#allocation3 + $0x6] sm:$0xff]  ;;  %v2947_v51 = vmul.f32 %v3677_v43, %v2940_v44 }
 0xe74   : > { %v2921_v41 = vadd.f32 %v2920_v37, %v2912_v36  ;;  %v2956_v53 = vmul.f32 %v3678_v48, %v2949_v49  ;;  %v3183_v29 = vld [vmem:[%s5791_s6 + $0x10] sm:$0xff]  ;;  %v3182_v30 = vld [vmem:[%s5791_s6 + $0x8] sm:$0xff]  ;;  %v3688_v36 = vld [vmem:[%s5795_s5] ss:$0 sm:$0xff]  ;;  %s3302_s6 = scalar_lea.sflag [#allocation6], %s5337_s17 }
 0xe75   : > { %s3313_s5 = scalar_lea.hbm %s5798_s1, %s3693_s8 }
 0xe76   : > { %v2930_v45 = vadd.f32 %v2929_v42, %v2921_v41 }
 0xe78   : > { %v2939_v50 = vadd.f32 %v2938_v46, %v2930_v45 }
 0xe7a   : > { %v2948_v52 = vadd.f32 %v2947_v51, %v2939_v50 }
 0xe7c   : > { %v2957_v55 = vadd.f32 %v2956_v53, %v2948_v52  ;;  %v3690_v53 = vld [vmem:[%s5796_s28] ss:$0 sm:$0xff]  ;;  %s4723_s28 = sshll.u32 %s4892_s10, 4  ;;  %s4724_s28 = int_to_ptr.vmem [resolvable:$false] %s4723_s28 }
 0xe7d   : > { %p4726_p1 = scmp.lt.s32.totalorder %s3316_s4, %s4724_s28 }
 0xe7e   : > { %v2965_v56 = vmul.f32 %v3679_v54, %v2957_v55  ;;  %v3691_v55 = vld [vmem:[%s5797_s9] ss:$0 sm:$0xff]  ;;  %s4725_s9 = scalar_lea.vmem %s4724_s28, 256 }
 0xe7f   : > { %p4727_p4 = scmp.lt.s32.totalorder %s4725_s9, %s4719_s7 }
 0xe80   : > { %v2973_v57 = vadd.f32 %v3680_v39, %v2965_v56 }
 0xe81   : > { %p4728_p0 = por %p4727_p4, %p4726_p1 }
 0xe82   : > { %v3681_v58 = vmul.f32 -1.442695, %v2973_v57 }
 0xe83   : > { %p4729_p5 = pnand %p4728_p0, %p4722_p8 }
 0xe84   : > { %4239 = vpow2.f32 %v3681_v58 }
 0xe91   : > { %v4240_v59 = vpop.eup %4239 }
 0xe92   : > { %v2977_v60 = vadd.f32 1.0, %v4240_v59 }
 0xe94   : > { %4241 = vrcp.f32 %v2977_v60 }
 0xea1   : > { %v4242_v61 = vpop.eup %4241 }
 0xea2   : > { %v2980_v62 = vmul.f32 %v4242_v61, %v2973_v57 }
 0xea4   : > { %3920 = vmatmul.mubr.msk.f32.vlgmr.msra.gmra.mxu1 %vm1413_vm0, %v2980_v62 }
 0xea5   : > { %3949 = vmatprep.mubr.msk.f32.mxu1 %vm4884_vm1, %v4883_v8  ;;  %3934 = vmatpush3.msra.mxu1 %v3188_v14 }
 0xea6   : > { %3935 = vmatprep.subr.mxu1 %v4883_v8 }
 0xea7   : > { %3936 = vmatpush3.msra.mxu1 %v3187_v16 }
 0xea8   : > { %3937 = vmatprep.subr.mxu1 %v4883_v8 }
 0xea9   : > { %3938 = vmatpush3.msra.mxu1 %v3186_v17 }
 0xeaa   : > { %3939 = vmatprep.subr.mxu1 %v4883_v8 }
 0xeab   : > { %3940 = vmatpush3.msra.mxu1 %v3185_v18 }
 0xeac   : > { %3941 = vmatprep.subr.mxu1 %v4883_v8 }
 0xead   : > { %3942 = vmatpush3.msra.mxu1 %v3184_v19 }
 0xeae   : > { %3943 = vmatprep.subr.mxu1 %v4883_v8 }
 0xeaf   : > { %3944 = vmatpush3.msra.mxu1 %v3183_v29 }
 0xeb0   : > { %3945 = vmatprep.subr.mxu1 %v4883_v8 }
 0xeb1   : > { %3946 = vmatpush3.msra.mxu1 %v3182_v30 }
 0xeb2   : > { %3947 = vmatprep.subr.mxu1 %v4883_v8 }
 0xeb3   : > { %3948 = vmatpush3.msra.mxu1 %v3181_v31 }
 0xf64   : > { %v3054_v63 = vpop.f32.mrf.mxu1 }
 0xf65   : > { %v3058_v1 = vadd.f32 %v3054_v63, %v5564_v47  ;;  %v3098_v47 = vld [vmem:[#allocation31 + $0x10] sm:$0xff] }
 0xf66   : > { %v3921_v2 = vpop.f32.mrf.mxu1  ;;  %3925 = vmatpush3.msra.mxu0 %v3098_v47 }
 0xf67   : > { %v5611_v3 = vadd.f32 %v3683_v0, %v3058_v1  ;;  %3926 = vmatprep.subr.mxu0 %v4883_v8 }
 0xf68   : > { %3927 = vmatpush3.msra.mxu0 %v3097_v12 }
 0xf69   : > { %v3069_v4 = vsel %vm1413_vm0, %v5611_v3, 0.0  ;;  %3928 = vmatprep.subr.mxu0 %v4883_v8 }
 0xf6a   : > { %3070 = vadd.xlane.f32.xlu0 %v3069_v4  ;;  %3929 = vmatpush3.msra.mxu0 %v3096_v13 }
 0xff3   : > { %v3071_v5 = vpop.xlane.xlu0 %3070 }
 0xff4   : > { %v3072_v6 = vmul.f32 0.03125, %v3071_v5 }
 0xff6   : > { %v3073_v7 = vsub.f32 %v5611_v3, %v3072_v6 }
 0xff8   : > { %v3074_v9 = vmul.f32 %v3073_v7, %v3073_v7 }
 0xffa   : > { %v3075_v10 = vsel %vm1413_vm0, %v3074_v9, 0.0 }
 0xffb   : > { %3076 = vadd.xlane.f32.xlu0 %v3075_v10 }
0x1084   : > { %v3077_v20 = vpop.xlane.xlu0 %3076 }
0x1085   : > { %v3078_v21 = vmul.f32 0.03125, %v3077_v20 }
0x1087   : > { %v3079_v23 = vadd.f32 1e-12, %v3078_v21 }
0x1089   : > { %4243 = vrsqrt.f32 %v3079_v23 }
0x1096   : > { %v4244_v15 = vpop.eup %4243 }
0x1097   : > { %v3081_v25 = vmul.f32 %v4244_v15, %v3073_v7 }
0x1099   : > { %v3088_v27 = vmul.f32 %v3684_v24, %v3081_v25 }
0x109b   : > { %v3095_v28 = vadd.f32 %v3685_v26, %v3088_v27 }
0x109d   : > { %3931 = vmatmul.mubr.msk.f32.vlgmr.msra.gmra.mxu0 %vm1413_vm0, %v3095_v28 }
0x115d   : > { %v3176_v33 = vpop.f32.mrf.mxu0 }
0x115e   : > { %v3177_v22 = vadd.f32 %v3686_v32, %v3176_v33 }
0x115f   : > { %v3932_v34 = vpop.f32.mrf.mxu0 }
0x1160   : > { %v3180_v35 = vmax.f32 %v3177_v22, 0.0 }
0x1162   : > { %3950 = vmatmul.mubr.msk.f32.vlgmr.msra.gmra.mxu1 %vm1542_vm2, %v3180_v35 }
0x1222   : > { %v3265_v37 = vpop.f32.mrf.mxu1 }
0x1223   : > { %v3266_v38 = vadd.f32 %v3688_v36, %v3265_v37 }
0x1224   : > { %v3951_v40 = vpop.f32.mrf.mxu1 }
0x1225   : > { %v3269_v41 = vmul.f32 0.5, %v3266_v38 }
0x1227   : > { %v3270_v42 = vadd.f32 %v3269_v41, %v5611_v3 }
0x1229   : > { %v3273_v43 = vsel %vm1413_vm0, %v3270_v42, 0.0 }
0x122a   : > { %3274 = vadd.xlane.f32.xlu0 %v3273_v43 }
0x12b3   : > { %v3275_v8 = vpop.xlane.xlu0 %3274 }
0x12b4   : > { %v3276_v44 = vmul.f32 0.03125, %v3275_v8 }
0x12b6   : > { %v3277_v45 = vsub.f32 %v3270_v42, %v3276_v44 }
0x12b8   : > { %v3278_v46 = vmul.f32 %v3277_v45, %v3277_v45 }
0x12ba   : > { %v3279_v48 = vsel %vm1413_vm0, %v3278_v46, 0.0 }
0x12bb   : > { %3280 = vadd.xlane.f32.xlu1 %v3279_v48 }
0x1344   : > { %v3281_v49 = vpop.xlane.xlu1 %3280 }
0x1345   : > { %v3282_v50 = vmul.f32 0.03125, %v3281_v49 }
0x1347   : > { %v3283_v51 = vadd.f32 1e-12, %v3282_v50 }
0x1349   : > { %4245 = vrsqrt.f32 %v3283_v51 }
0x1356   : > { %v4246_v52 = vpop.eup %4245 }
0x1357   : > { %v3285_v54 = vmul.f32 %v4246_v52, %v3277_v45 }
0x1359   : > { %v3292_v39 = vmul.f32 %v3690_v53, %v3285_v54 }
0x135b   : > { %v3299_v56 = vadd.f32 %v3691_v55, %v3292_v39 }
0x135d   : > { %3300 = vst.msk [vmem:[%s1409_s3] sm:$0xff] %vm1413_vm0, %v3299_v56 }
0x135e   : > { %4732 = shalt.err (!%p4729_p5)
}
0x135f   : > { %s4733_s26 = scalar_lea.hbm %s3313_s5, 128  ;;  %s4737_s17 = scalar_lea.hbm %s5798_s1, 256 }
0x1360   : > { %p4734_p3 = scmp.ne.s32.totalorder %s3313_s5, %s4733_s26  ;;  %p4738_p2 = scmp.lt.s32.totalorder %s3313_s5, %s5798_s1 }
0x1361   : > { %p4739_p6 = scmp.lt.s32.totalorder %s4737_s17, %s4733_s26 }
0x1362   : > { %p4735_p7 = pnand %p4734_p3, %p5799_p12 }
0x1363   : > { %p4740_p10 = por %p4739_p6, %p4738_p2 }
0x1364   : > { %p4736_p11 = pneg %p4735_p7 }
0x1366   : > { %p4741_p9 = pnand %p4740_p10, %p4736_p11 }
0x1368   : > { %4744 = shalt.err (!%p4741_p9)
}
0x1369   : > { %4020 = dma.vmem_to_hbm [thread:$0]  (%p5799_p12), %s3316_s4, 128, %s3313_s5, %s3302_s6  }
0x136a PF: > { %s3327_s20 = sand.u32 1, %s4811_s15   ;;  %p5800_p13 = scmp.ne.s32.totalorder %s5754_s23, 0 }
0x136b   : > { %p5801_p8 = scmp.ge.s32.totalorder %s4823_s18, 2  ;;  %s3328_s3 = scalar_lea.sflag [#allocation6], %s3327_s20 }
0x136d   : > { %p4079_p1 = pnand %p5801_p8, %p5800_p13 }
0x136f   : > { %p4080_p4 = pneg %p4079_p1 }
0x1371   : > { %4806 = dma.done.wait (%p4080_p4), %s3328_s3, 128  }
0x1372   : > { %4808 = vsyncadd (%p4080_p4), %s3328_s3, 4294967168  ;;  %p101_p0 = scmp.ge.s32.totalorder %s5248_s11, 4   ;;  %s5802_s15 = smov %s4815_s16 }
0x1373   : > { %s5803_s16 = smov %s4819_s0  ;;  %s5804_s0 = smov %s5259_s2 }
0x1374   : > { %s5805_s18 = smov %s5248_s11  ;;  %103 = sbr.rel (!%p101_p0) target bundleno = 92 (0x5c), region = 332 }
0x1379   :  { %3333 = vsyncpa [#allocation5], 1 }
0x137a   :  { %3335 = vsyncpa [#allocation5 + $0x1], 1 }
0x137b   :  { %3336 = vsyncpa [#allocation8], 1 }
0x137c   :  { %3338 = vsyncpa [#allocation8 + $0x1], 1 }
0x137d   :  { %3339 = vsyncpa [#allocation11], 1 }
0x137e   :  { %3340 = vsyncpa [#allocation14], 1 }
0x137f   :  { %3341 = vsyncpa [#allocation17], 1 }
0x1380   :  { %3342 = vsyncpa [#allocation20], 1 }
0x1381   :  { %3343 = vsyncpa [#allocation23], 1 }
0x1382   :  { %3344 = vsyncpa [#allocation26], 1 }
0x1383   :  { %3345 = vsyncpa [#allocation29], 1 }
0x1384   :  { %3346 = vsyncpa [#allocation32], 1 }
0x1385   :  { %3347 = vsyncpa [#allocation6], 1 }
0x1386   :  { %3349 = vsyncpa [#allocation6 + $0x1], 1 }

</bundles_post_ra>
